<compile_context>
chip_gen: v7x
topology: tpu7x:2x2x1
jax: 0.10.0
libtpu: 0.0.40
codegen_flags: <defaults>
</compile_context>

<pallas_src>
import functools

import jax
import jax.numpy as jnp
from jax.experimental import pallas as pl
from jax.experimental.pallas import tpu as pltpu


# --------------------------------------------------------------------------- parameters
def _scaled(dims, net_scale):
    return [max(int(d * net_scale), 16) for d in dims]


def _init_linear(key, din, dout, w_scale=0.1, b_scale=0.01):
    kw, kb = jax.random.split(key)
    return {
        "w": jax.random.normal(kw, (din, dout), jnp.float32) * w_scale,
        "b": jax.random.normal(kb, (1, dout), jnp.float32) * b_scale,
    }


def _init_simple_mlp(key, din, dhid, dout):
    k1, k2 = jax.random.split(key)
    return {"l1": _init_linear(k1, din, dhid), "l2": _init_linear(k2, dhid, dout)}


def init_tnet(key, in_dim, net_scale=1.0):
    od = _scaled([16, 32, 256, 128, 64], net_scale)
    keys = jax.random.split(key, 6)
    p = {
        "mlp1": _init_simple_mlp(keys[0], in_dim, od[0] // 2, od[0]),
        "mlp2": _init_simple_mlp(keys[1], od[0], od[1] // 2, od[1]),
        "mlp3": _init_simple_mlp(keys[2], od[1], od[2] // 2, od[2]),
        "fc1": _init_linear(keys[3], od[2], od[3]),
        "fc2": _init_linear(keys[4], od[3], od[4]),
        "fc3": _init_linear(keys[5], od[4], in_dim * in_dim, w_scale=0.01),
    }
    # Standard PointNet practice: the learned transform starts near the identity.
    p["fc3"]["b"] = jnp.eye(in_dim, dtype=jnp.float32).reshape(1, in_dim * in_dim)
    return p


def init_pointnet(key, in_dim, out_dim=256, net_scale=1.0):
    od = _scaled([16, 16, 32], net_scale)
    keys = jax.random.split(key, 6)
    return {
        "tnet1": init_tnet(keys[0], in_dim, net_scale),
        "mlp1": _init_simple_mlp(keys[1], in_dim, od[0] // 2, od[0]),
        "mlp2": _init_simple_mlp(keys[2], od[0], od[1] // 2, od[1]),
        "tnet2": init_tnet(keys[3], od[1], net_scale),
        "mlp3": _init_simple_mlp(keys[4], od[1], od[2] // 2, od[2]),
        "mlp4": _init_simple_mlp(keys[5], od[2], out_dim // 2, out_dim),
    }


# --------------------------------------------------------------------------- weight packing
def _linear_names():
    """All 26 linear layers, addressed by path name (kernel uses the same names)."""
    names = []

    def mlp(prefix):
        names.extend([f"{prefix}/l1", f"{prefix}/l2"])

    def tnet(prefix):
        for m in ("mlp1", "mlp2", "mlp3"):
            mlp(f"{prefix}/{m}")
        names.extend([f"{prefix}/fc1", f"{prefix}/fc2", f"{prefix}/fc3"])

    tnet("tnet1")
    mlp("mlp1")
    mlp("mlp2")
    tnet("tnet2")
    mlp("mlp3")
    mlp("mlp4")
    return names


def _get_linear(params, name):
    node = params
    for part in name.split("/"):
        node = node[part]
    return node["w"], node["b"]


def _round_up(x, m):
    return ((x + m - 1) // m) * m


def pack_params(params, use_bf16=True):
    """Pack all linear layers into lane-dense VMEM slabs.

    Returns (weight_slabs, bias_slab, meta):
      weight_slabs : [f32 slab] or [f32 slab, bf16 slab], each (rows, width>=128)
      bias_slab    : (rows, width) f32, one bias row per layer
      meta         : name -> dict(slab, row, brow, din, dout)  (static Python ints)

    Wide layers (K or N >= 128) go to the bf16 slab; the TNet fc3 transform heads
    stay f32 for transform / L_reg fidelity (tiny cost).
    """
    names = _linear_names()
    width = _round_up(max(max(_get_linear(params, nm)[0].shape[1] for nm in names), 128), 128)

    meta = {}
    f32_names, bf16_names = [], []
    for nm in names:
        w, _ = _get_linear(params, nm)
        wide = w.shape[0] >= 128 or w.shape[1] >= 128
        to_bf16 = bool(use_bf16 and wide and not nm.endswith("fc3"))
        (bf16_names if to_bf16 else f32_names).append(nm)
        meta[nm] = {"din": int(w.shape[0]), "dout": int(w.shape[1])}

    def build(entry_names, dtype, align):
        rows, offs = 0, {}
        for nm in entry_names:
            offs[nm] = rows
            rows += _round_up(meta[nm]["din"], align)
        rows = max(_round_up(rows, align), align)
        slab = jnp.zeros((rows, width), jnp.float32)
        for nm in entry_names:
            w, _ = _get_linear(params, nm)
            slab = slab.at[offs[nm]:offs[nm] + w.shape[0], 0:w.shape[1]].set(
                w.astype(jnp.float32))
        return slab.astype(dtype), offs

    slabs = []
    f32_slab, offs = build(f32_names, jnp.float32, 8)        # f32 rows align to 8 sublanes
    slabs.append(f32_slab)
    for nm in f32_names:
        meta[nm].update(slab=0, row=offs[nm])

    if bf16_names:
        bf16_slab, offs = build(bf16_names, jnp.bfloat16, 16)  # bf16 rows align to 16
        slabs.append(bf16_slab)
        for nm in bf16_names:
            meta[nm].update(slab=1, row=offs[nm])

    b_slab = jnp.zeros((max(_round_up(len(names), 8), 8), width), jnp.float32)
    for i, nm in enumerate(names):
        _, b = _get_linear(params, nm)
        b_slab = b_slab.at[i:i + 1, 0:b.shape[1]].set(b.astype(jnp.float32))
        meta[nm]["brow"] = i

    return slabs, b_slab, meta


# --------------------------------------------------------------------------- fused kernel
def _make_kernel(meta, *, num_w_slabs, bf16_epilogue):
    """Build the fused PointNet kernel closed over static layer metadata."""

    def kernel(x_ref, *refs):
        w_slabs = refs[:num_w_slabs]
        b_ref = refs[num_w_slabs]
        gfeat_ref = refs[num_w_slabs + 1]
        hdtm_ref = refs[num_w_slabs + 2]

        tb, n_pts, d_in = x_ref.shape

        def dense(h, name, act=True):
            m = meta[name]
            # Static slices of the VMEM-resident slabs (zero-cost views).
            w = w_slabs[m["slab"]][m["row"]:m["row"] + m["din"], 0:m["dout"]]
            b = b_ref[m["brow"]:m["brow"] + 1, 0:m["dout"]]
            if w.dtype == jnp.bfloat16 and h.dtype != jnp.bfloat16:
                h = h.astype(jnp.bfloat16)
            y = jnp.dot(h, w, preferred_element_type=jnp.float32) + b  # MXU, f32 accumulate
            if act:
                if bf16_epilogue and m["dout"] >= 128:
                    # Wide-layer epilogue in bf16: halves the VALU work on v6e/v7x and the
                    # next (wide) layer / max-pool consumes bf16 directly.
                    y = y.astype(jnp.bfloat16)
                y = jnp.maximum(y, 0.2 * y)          # LeakyReLU(0.2) = mul + max (2 VALU ops)
            return y

        def simple_mlp(h, prefix):
            return dense(dense(h, prefix + "/l1"), prefix + "/l2")

        def tnet(pts, prefix):
            # pts: (tb, n_pts, d) f32.
            d = pts.shape[-1]
            h = simple_mlp(pts.reshape(tb * n_pts, d), prefix + "/mlp1")
            h = simple_mlp(h, prefix + "/mlp2")
            h = simple_mlp(h, prefix + "/mlp3")                              # (tb*n, 256)
            pooled = jnp.max(h.reshape(tb, n_pts, h.shape[-1]), axis=1)      # (tb, 256)
            f = dense(pooled, prefix + "/fc1")
            f = dense(f, prefix + "/fc2")
            tm_flat = dense(f, prefix + "/fc3", act=False)                   # f32 (tb, d*d)
            # x @ TM on the VPU (K = d unrolled): tm[b, k, j] == tm_flat[b, k*d + j].
            xt = pts[:, :, 0:1] * tm_flat[:, 0:d][:, None, :]
            for k in range(1, d):
                xt = xt + pts[:, :, k:k + 1] * tm_flat[:, k * d:(k + 1) * d][:, None, :]
            return xt, tm_flat

        x = x_ref[...].astype(jnp.float32)                                   # (tb, n, d_in)

        out1, _ = tnet(x, "tnet1")                                           # TNet 1
        h = simple_mlp(out1.reshape(tb * n_pts, d_in), "mlp1")               # shared_mlp1
        h = simple_mlp(h, "mlp2")                                            # shared_mlp2
        out2, hdtm_flat = tnet(h.reshape(tb, n_pts, h.shape[-1]), "tnet2")   # TNet 2
        g = simple_mlp(out2.reshape(tb * n_pts, out2.shape[-1]), "mlp3")     # shared_mlp3
        g = simple_mlp(g, "mlp4")                                            # shared_mlp4
        gfeat = jnp.max(g.reshape(tb, n_pts, g.shape[-1]), axis=1)           # pool over points

        gfeat_ref[...] = gfeat.astype(gfeat_ref.dtype)
        hdtm_ref[...] = hdtm_flat.astype(hdtm_ref.dtype)

    return kernel


# --------------------------------------------------------------------------- tiling / forward
def _pick_tile(B, n_pts, vmem_limit_bytes, block_pillars):
    """VMEM-budget derived pillar tile (scales with points-per-pillar n)."""
    # Reserve ~16 MiB for double-buffered slabs / inputs / outputs; budget ~10 live copies of
    # the widest (n, 256) f32 per-pillar activation slice (covers f32+bf16 duplicates,
    # reshape copies, and pipeline headroom).
    act_budget = max(vmem_limit_bytes - 16 * 1024 * 1024, 8 * 1024 * 1024)
    bytes_per_pillar = n_pts * 256 * 4 * 10
    tb = int(max(8, min(1024, act_budget // bytes_per_pillar)))
    if block_pillars is not None:
        tb = min(tb, int(block_pillars))
    tb = max(8, (tb // 8) * 8)                      # f32 sublane multiple
    tb = min(tb, pl.cdiv(B, 8) * 8)                 # don't pad tiny batches up to the budget
    # Keep >= 2 grid steps when there is enough work so both v7x TensorCores get a share.
    if B > 16 and pl.cdiv(B, tb) < 2:
        tb = max(8, _round_up(pl.cdiv(B, 2), 8))
    return tb


def pointnet_forward(x, params, *, use_bf16=True, bf16_epilogue=None,
                     block_pillars=None, vmem_limit_bytes=None):
    """x: (N, P, n, d) -> (gfeatures (N, P, out_dim), l_reg scalar)."""
    if bf16_epilogue is None:
        bf16_epilogue = use_bf16                    # NOTE: pass False on v5e (no bf16 VPU)
    N, P, n, d = x.shape
    B = N * P
    out_dim = params["mlp4"]["l2"]["w"].shape[1]
    d_mid = params["tnet2"]["mlp1"]["l1"]["w"].shape[0]

    # Generation-aware VMEM budget: ~96 MiB on v5e/v6e (128 MiB physical), ~48 MiB on v7x.
    if vmem_limit_bytes is None:
        try:
            vmem_cap = int(pltpu.get_tpu_info().vmem_capacity_bytes)
        except Exception:
            vmem_cap = 64 * 1024 * 1024             # v7x-safe fallback
        vmem_limit_bytes = min(vmem_cap * 3 // 4, 96 * 1024 * 1024)
    vmem_limit_bytes = int(vmem_limit_bytes)

    xb = x.reshape(B, n, d).astype(jnp.float32)
    tb = _pick_tile(B, n, vmem_limit_bytes, block_pillars)
    b_pad = pl.cdiv(B, tb) * tb
    if b_pad != B:
        xb = jnp.pad(xb, ((0, b_pad - B), (0, 0), (0, 0)))

    w_slabs, b_slab, meta = pack_params(params, use_bf16=use_bf16)

    const2d = lambda b: (0, 0)                      # slabs stay VMEM-resident across the grid
    in_specs = [pl.BlockSpec((tb, n, d), lambda b: (b, 0, 0))]
    in_specs += [pl.BlockSpec(s.shape, const2d) for s in w_slabs]
    in_specs += [pl.BlockSpec(b_slab.shape, const2d)]
    out_specs = (
        pl.BlockSpec((tb, out_dim), lambda b: (b, 0)),
        pl.BlockSpec((tb, d_mid * d_mid), lambda b: (b, 0)),
    )
    out_shape = (
        jax.ShapeDtypeStruct((b_pad, out_dim), jnp.float32),
        jax.ShapeDtypeStruct((b_pad, d_mid * d_mid), jnp.float32),
    )

    kernel = _make_kernel(meta, num_w_slabs=len(w_slabs), bf16_epilogue=bf16_epilogue)
    gfeat, hdtm_flat = pl.pallas_call(
        kernel,
        grid=(b_pad // tb,),
        in_specs=in_specs,
        out_specs=out_specs,
        out_shape=out_shape,
        compiler_params=pltpu.CompilerParams(
            dimension_semantics=("parallel",),      # shard pillar tiles across TensorCores
            vmem_limit_bytes=vmem_limit_bytes,
        ),
    )(xb, *w_slabs, b_slab)

    gfeatures = gfeat[:B].reshape(N, P, out_dim)

    # L_reg = sum over (N, P) of ||I - M M^T||_F^2 from the lane-dense flat transform of the
    # second TNet (tiny reduction left in plain JAX; padded rows are sliced off first).
    hdtm = hdtm_flat[:B].reshape(B, d_mid, d_mid)
    mmt = jnp.einsum("bij,bkj->bik", hdtm, hdtm)
    eye = jnp.eye(d_mid, dtype=jnp.float32)[None]
    l_reg = jnp.sum((eye - mmt) ** 2)
    return gfeatures, l_reg


# --------------------------------------------------------------------------- pure-JAX reference
def _ref_dense(h, p, act=True):
    y = jnp.dot(h, p["w"], precision=jax.lax.Precision.HIGHEST) + p["b"]
    return jnp.where(y >= 0.0, y, 0.2 * y) if act else y


def _ref_mlp(h, p):
    return _ref_dense(_ref_dense(h, p["l1"]), p["l2"])


def _ref_tnet(xb, p):
    B, n, d = xb.shape
    h = _ref_mlp(_ref_mlp(_ref_mlp(xb, p["mlp1"]), p["mlp2"]), p["mlp3"])
    pooled = jnp.max(h, axis=1)
    f = _ref_dense(pooled, p["fc1"])
    f = _ref_dense(f, p["fc2"])
    tm = _ref_dense(f, p["fc3"], act=False).reshape(B, d, d)
    return jnp.matmul(xb, tm, precision=jax.lax.Precision.HIGHEST), tm


def pointnet_reference(x, params):
    N, P, n, d = x.shape
    xb = x.reshape(N * P, n, d)
    out, _ = _ref_tnet(xb, params["tnet1"])
    h = _ref_mlp(_ref_mlp(out, params["mlp1"]), params["mlp2"])
    out, hdtm = _ref_tnet(h, params["tnet2"])
    g = _ref_mlp(_ref_mlp(out, params["mlp3"]), params["mlp4"])
    gfeat = jnp.max(g, axis=1).reshape(N, P, -1)
    eye = jnp.eye(hdtm.shape[-1], dtype=jnp.float32)[None]
    mmt = jnp.einsum("bij,bkj->bik", hdtm, hdtm)
    l_reg = jnp.sum((eye - mmt) ** 2)
    return gfeat, l_reg


# --------------------------------------------------------------------------- main
if __name__ == "__main__":
    key = jax.random.PRNGKey(0)
    k_params, k_x = jax.random.split(key)

    N, P, n, d = 2, 4, 8, 4          # batch, pillars, points per pillar, point dims
    out_dim = 256
    params = init_pointnet(k_params, in_dim=d, out_dim=out_dim, net_scale=1.0)
    x = jax.random.normal(k_x, (N, P, n, d), dtype=jnp.float32)

    g_ref, l_ref = pointnet_reference(x, params)

    # ---- f32 validation mode (use_bf16=False): tighter tolerance catches layer-order /
    #      bias / pooling bugs while leaving margin for MXU vs XLA f32 rounding.
    fwd_f32 = jax.jit(functools.partial(pointnet_forward, use_bf16=False))
    g32, l32 = fwd_f32(x, params)
    jax.block_until_ready((g32, l32))
    assert g32.shape == (N, P, out_dim) and l32.shape == ()
    assert jnp.allclose(g32, g_ref, rtol=5e-2, atol=1e-4), "f32 gfeatures mismatch"
    assert jnp.allclose(l32, l_ref, rtol=5e-2, atol=1e-4), "f32 l_reg mismatch"

    # ---- bf16 fast path (default): wide layers run with bf16 operands + bf16 epilogues,
    #      so only a loose-tolerance check is meaningful.
    fwd = jax.jit(pointnet_forward)
    gfeatures, l_reg = fwd(x, params)
    jax.block_until_ready((gfeatures, l_reg))
    assert gfeatures.shape == (N, P, out_dim) and l_reg.shape == ()
    assert jnp.allclose(gfeatures, g_ref, rtol=1e-1, atol=5e-2), "bf16 gfeatures mismatch"
    assert jnp.allclose(l_reg, l_ref, rtol=1e-1, atol=5e-2), "bf16 l_reg mismatch"

    print("KERNEL_OK")
</pallas_src>

<mosaic_0001>
module attributes {stable_mosaic.version = 11 : i64} {
  func.func @kernel(%arg0: i32, %arg1: memref<8x8x4xf32, #tpu.memory_space<vmem>>, %arg2: memref<1552x256xf32, #tpu.memory_space<vmem>>, %arg3: memref<32x256xf32, #tpu.memory_space<vmem>>, %arg4: memref<8x256xf32, #tpu.memory_space<vmem>>, %arg5: memref<8x256xf32, #tpu.memory_space<vmem>>) attributes {dimension_semantics = [#tpu.dimension_semantics<parallel>], iteration_bounds = array<i64: 1>, scalar_prefetch = 0 : i64, scratch_operands = 0 : i64, tpu.core_type = #tpu.core_type<tc>, window_params = [{transform_indices = @transform_0, window_bounds = array<i64: 8, 8, 4>}, {pipeline_mode = #tpu.pipeline_mode<synchronous>, transform_indices = @transform_1, window_bounds = array<i64: 1552, 256>}, {pipeline_mode = #tpu.pipeline_mode<synchronous>, transform_indices = @transform_2, window_bounds = array<i64: 32, 256>}, {transform_indices = @transform_3, window_bounds = array<i64: 8, 256>}, {transform_indices = @transform_4, window_bounds = array<i64: 8, 256>}]} {
    %c0 = arith.constant 0 : index
    %c0_0 = arith.constant 0 : index
    %c0_1 = arith.constant 0 : index
    %0 = vector.load %arg1[%c0, %c0_0, %c0_1] : memref<8x8x4xf32, #tpu.memory_space<vmem>>, vector<8x8x4xf32>
    %1 = vector.shape_cast %0 : vector<8x8x4xf32> to vector<64x4xf32>
    %c0_2 = arith.constant 0 : index
    %c0_3 = arith.constant 0 : index
    %2 = vector.load %arg2[%c0_2, %c0_3] : memref<1552x256xf32, #tpu.memory_space<vmem>>, vector<4x8xf32>
    %c0_4 = arith.constant 0 : index
    %c0_5 = arith.constant 0 : index
    %3 = vector.load %arg3[%c0_4, %c0_5] : memref<32x256xf32, #tpu.memory_space<vmem>>, vector<1x8xf32>
    %cst = arith.constant dense<0.000000e+00> : vector<64x8xf32>
    %4 = tpu.matmul %1, %2, %cst {dimension_numbers = #tpu.dot_dimension_numbers<[1], [0], [0], [1], [0, 0, 1, 1], [], []>} : vector<64x4xf32>, vector<4x8xf32>, vector<64x8xf32> -> vector<64x8xf32>
    %5 = vector.broadcast %3 : vector<1x8xf32> to vector<64x8xf32>
    %6 = arith.addf %4, %5 : vector<64x8xf32>
    %cst_6 = arith.constant 2.000000e-01 : f32
    %7 = vector.broadcast %cst_6 : f32 to vector<64x8xf32>
    %8 = arith.mulf %7, %6 : vector<64x8xf32>
    %9 = arith.maximumf %6, %8 : vector<64x8xf32>
    %c8 = arith.constant 8 : index
    %c0_7 = arith.constant 0 : index
    %10 = vector.load %arg2[%c8, %c0_7] : memref<1552x256xf32, #tpu.memory_space<vmem>>, vector<8x16xf32>
    %c1 = arith.constant 1 : index
    %c0_8 = arith.constant 0 : index
    %11 = vector.load %arg3[%c1, %c0_8] : memref<32x256xf32, #tpu.memory_space<vmem>>, vector<1x16xf32>
    %cst_9 = arith.constant dense<0.000000e+00> : vector<64x16xf32>
    %12 = tpu.matmul %9, %10, %cst_9 {dimension_numbers = #tpu.dot_dimension_numbers<[1], [0], [0], [1], [0, 0, 1, 1], [], []>} : vector<64x8xf32>, vector<8x16xf32>, vector<64x16xf32> -> vector<64x16xf32>
    %13 = vector.broadcast %11 : vector<1x16xf32> to vector<64x16xf32>
    %14 = arith.addf %12, %13 : vector<64x16xf32>
    %cst_10 = arith.constant 2.000000e-01 : f32
    %15 = vector.broadcast %cst_10 : f32 to vector<64x16xf32>
    %16 = arith.mulf %15, %14 : vector<64x16xf32>
    %17 = arith.maximumf %14, %16 : vector<64x16xf32>
    %c16 = arith.constant 16 : index
    %c0_11 = arith.constant 0 : index
    %18 = vector.load %arg2[%c16, %c0_11] : memref<1552x256xf32, #tpu.memory_space<vmem>>, vector<16x16xf32>
    %c2 = arith.constant 2 : index
    %c0_12 = arith.constant 0 : index
    %19 = vector.load %arg3[%c2, %c0_12] : memref<32x256xf32, #tpu.memory_space<vmem>>, vector<1x16xf32>
    %cst_13 = arith.constant dense<0.000000e+00> : vector<64x16xf32>
    %20 = tpu.matmul %17, %18, %cst_13 {dimension_numbers = #tpu.dot_dimension_numbers<[1], [0], [0], [1], [0, 0, 1, 1], [], []>} : vector<64x16xf32>, vector<16x16xf32>, vector<64x16xf32> -> vector<64x16xf32>
    %21 = vector.broadcast %19 : vector<1x16xf32> to vector<64x16xf32>
    %22 = arith.addf %20, %21 : vector<64x16xf32>
    %cst_14 = arith.constant 2.000000e-01 : f32
    %23 = vector.broadcast %cst_14 : f32 to vector<64x16xf32>
    %24 = arith.mulf %23, %22 : vector<64x16xf32>
    %25 = arith.maximumf %22, %24 : vector<64x16xf32>
    %c32 = arith.constant 32 : index
    %c0_15 = arith.constant 0 : index
    %26 = vector.load %arg2[%c32, %c0_15] : memref<1552x256xf32, #tpu.memory_space<vmem>>, vector<16x32xf32>
    %c3 = arith.constant 3 : index
    %c0_16 = arith.constant 0 : index
    %27 = vector.load %arg3[%c3, %c0_16] : memref<32x256xf32, #tpu.memory_space<vmem>>, vector<1x32xf32>
    %cst_17 = arith.constant dense<0.000000e+00> : vector<64x32xf32>
    %28 = tpu.matmul %25, %26, %cst_17 {dimension_numbers = #tpu.dot_dimension_numbers<[1], [0], [0], [1], [0, 0, 1, 1], [], []>} : vector<64x16xf32>, vector<16x32xf32>, vector<64x32xf32> -> vector<64x32xf32>
    %29 = vector.broadcast %27 : vector<1x32xf32> to vector<64x32xf32>
    %30 = arith.addf %28, %29 : vector<64x32xf32>
    %cst_18 = arith.constant 2.000000e-01 : f32
    %31 = vector.broadcast %cst_18 : f32 to vector<64x32xf32>
    %32 = arith.mulf %31, %30 : vector<64x32xf32>
    %33 = arith.maximumf %30, %32 : vector<64x32xf32>
    %c48 = arith.constant 48 : index
    %c0_19 = arith.constant 0 : index
    %34 = vector.load %arg2[%c48, %c0_19] : memref<1552x256xf32, #tpu.memory_space<vmem>>, vector<32x128xf32>
    %c4 = arith.constant 4 : index
    %c0_20 = arith.constant 0 : index
    %35 = vector.load %arg3[%c4, %c0_20] : memref<32x256xf32, #tpu.memory_space<vmem>>, vector<1x128xf32>
    %cst_21 = arith.constant dense<0.000000e+00> : vector<64x128xf32>
    %36 = tpu.matmul %33, %34, %cst_21 {dimension_numbers = #tpu.dot_dimension_numbers<[1], [0], [0], [1], [0, 0, 1, 1], [], []>} : vector<64x32xf32>, vector<32x128xf32>, vector<64x128xf32> -> vector<64x128xf32>
    %37 = vector.broadcast %35 : vector<1x128xf32> to vector<64x128xf32>
    %38 = arith.addf %36, %37 : vector<64x128xf32>
    %cst_22 = arith.constant 2.000000e-01 : f32
    %39 = vector.broadcast %cst_22 : f32 to vector<64x128xf32>
    %40 = arith.mulf %39, %38 : vector<64x128xf32>
    %41 = arith.maximumf %38, %40 : vector<64x128xf32>
    %c80 = arith.constant 80 : index
    %c0_23 = arith.constant 0 : index
    %42 = vector.load %arg2[%c80, %c0_23] : memref<1552x256xf32, #tpu.memory_space<vmem>>, vector<128x256xf32>
    %c5 = arith.constant 5 : index
    %c0_24 = arith.constant 0 : index
    %43 = vector.load %arg3[%c5, %c0_24] : memref<32x256xf32, #tpu.memory_space<vmem>>, vector<1x256xf32>
    %cst_25 = arith.constant dense<0.000000e+00> : vector<64x256xf32>
    %44 = tpu.matmul %41, %42, %cst_25 {dimension_numbers = #tpu.dot_dimension_numbers<[1], [0], [0], [1], [0, 0, 1, 1], [], []>} : vector<64x128xf32>, vector<128x256xf32>, vector<64x256xf32> -> vector<64x256xf32>
    %45 = vector.broadcast %43 : vector<1x256xf32> to vector<64x256xf32>
    %46 = arith.addf %44, %45 : vector<64x256xf32>
    %cst_26 = arith.constant 2.000000e-01 : f32
    %47 = vector.broadcast %cst_26 : f32 to vector<64x256xf32>
    %48 = arith.mulf %47, %46 : vector<64x256xf32>
    %49 = arith.maximumf %46, %48 : vector<64x256xf32>
    %50 = vector.shape_cast %49 : vector<64x256xf32> to vector<8x8x256xf32>
    %cst_27 = arith.constant dense<0xFF800000> : vector<8x256xf32>
    %51 = vector.multi_reduction <maximumf>, %50, %cst_27 [1] : vector<8x8x256xf32> to vector<8x256xf32>
    %c208 = arith.constant 208 : index
    %c0_28 = arith.constant 0 : index
    %52 = vector.load %arg2[%c208, %c0_28] : memref<1552x256xf32, #tpu.memory_space<vmem>>, vector<256x128xf32>
    %c6 = arith.constant 6 : index
    %c0_29 = arith.constant 0 : index
    %53 = vector.load %arg3[%c6, %c0_29] : memref<32x256xf32, #tpu.memory_space<vmem>>, vector<1x128xf32>
    %cst_30 = arith.constant dense<0.000000e+00> : vector<8x128xf32>
    %54 = tpu.matmul %51, %52, %cst_30 {dimension_numbers = #tpu.dot_dimension_numbers<[1], [0], [0], [1], [0, 0, 1, 1], [], []>} : vector<8x256xf32>, vector<256x128xf32>, vector<8x128xf32> -> vector<8x128xf32>
    %55 = vector.broadcast %53 : vector<1x128xf32> to vector<8x128xf32>
    %56 = arith.addf %54, %55 : vector<8x128xf32>
    %cst_31 = arith.constant 2.000000e-01 : f32
    %57 = vector.broadcast %cst_31 : f32 to vector<8x128xf32>
    %58 = arith.mulf %57, %56 : vector<8x128xf32>
    %59 = arith.maximumf %56, %58 : vector<8x128xf32>
    %c464 = arith.constant 464 : index
    %c0_32 = arith.constant 0 : index
    %60 = vector.load %arg2[%c464, %c0_32] : memref<1552x256xf32, #tpu.memory_space<vmem>>, vector<128x64xf32>
    %c7 = arith.constant 7 : index
    %c0_33 = arith.constant 0 : index
    %61 = vector.load %arg3[%c7, %c0_33] : memref<32x256xf32, #tpu.memory_space<vmem>>, vector<1x64xf32>
    %cst_34 = arith.constant dense<0.000000e+00> : vector<8x64xf32>
    %62 = tpu.matmul %59, %60, %cst_34 {dimension_numbers = #tpu.dot_dimension_numbers<[1], [0], [0], [1], [0, 0, 1, 1], [], []>} : vector<8x128xf32>, vector<128x64xf32>, vector<8x64xf32> -> vector<8x64xf32>
    %63 = vector.broadcast %61 : vector<1x64xf32> to vector<8x64xf32>
    %64 = arith.addf %62, %63 : vector<8x64xf32>
    %cst_35 = arith.constant 2.000000e-01 : f32
    %65 = vector.broadcast %cst_35 : f32 to vector<8x64xf32>
    %66 = arith.mulf %65, %64 : vector<8x64xf32>
    %67 = arith.maximumf %64, %66 : vector<8x64xf32>
    %c592 = arith.constant 592 : index
    %c0_36 = arith.constant 0 : index
    %68 = vector.load %arg2[%c592, %c0_36] : memref<1552x256xf32, #tpu.memory_space<vmem>>, vector<64x16xf32>
    %c8_37 = arith.constant 8 : index
    %c0_38 = arith.constant 0 : index
    %69 = vector.load %arg3[%c8_37, %c0_38] : memref<32x256xf32, #tpu.memory_space<vmem>>, vector<1x16xf32>
    %cst_39 = arith.constant dense<0.000000e+00> : vector<8x16xf32>
    %70 = tpu.matmul %67, %68, %cst_39 {dimension_numbers = #tpu.dot_dimension_numbers<[1], [0], [0], [1], [0, 0, 1, 1], [], []>} : vector<8x64xf32>, vector<64x16xf32>, vector<8x16xf32> -> vector<8x16xf32>
    %71 = vector.broadcast %69 : vector<1x16xf32> to vector<8x16xf32>
    %72 = arith.addf %70, %71 : vector<8x16xf32>
    %73 = vector.extract_strided_slice %0 {offsets = [0, 0, 0], sizes = [8, 8, 1], strides = [1, 1, 1]} : vector<8x8x4xf32> to vector<8x8x1xf32>
    %74 = vector.extract_strided_slice %72 {offsets = [0, 0], sizes = [8, 4], strides = [1, 1]} : vector<8x16xf32> to vector<8x4xf32>
    %75 = vector.shape_cast %74 : vector<8x4xf32> to vector<8x1x4xf32>
    %76 = vector.broadcast %73 : vector<8x8x1xf32> to vector<8x8x4xf32>
    %77 = vector.broadcast %75 : vector<8x1x4xf32> to vector<8x8x4xf32>
    %78 = arith.mulf %76, %77 : vector<8x8x4xf32>
    %79 = vector.extract_strided_slice %0 {offsets = [0, 0, 1], sizes = [8, 8, 1], strides = [1, 1, 1]} : vector<8x8x4xf32> to vector<8x8x1xf32>
    %80 = vector.extract_strided_slice %72 {offsets = [0, 4], sizes = [8, 4], strides = [1, 1]} : vector<8x16xf32> to vector<8x4xf32>
    %81 = vector.shape_cast %80 : vector<8x4xf32> to vector<8x1x4xf32>
    %82 = vector.broadcast %79 : vector<8x8x1xf32> to vector<8x8x4xf32>
    %83 = vector.broadcast %81 : vector<8x1x4xf32> to vector<8x8x4xf32>
    %84 = arith.mulf %82, %83 : vector<8x8x4xf32>
    %85 = arith.addf %78, %84 : vector<8x8x4xf32>
    %86 = vector.extract_strided_slice %0 {offsets = [0, 0, 2], sizes = [8, 8, 1], strides = [1, 1, 1]} : vector<8x8x4xf32> to vector<8x8x1xf32>
    %87 = vector.extract_strided_slice %72 {offsets = [0, 8], sizes = [8, 4], strides = [1, 1]} : vector<8x16xf32> to vector<8x4xf32>
    %88 = vector.shape_cast %87 : vector<8x4xf32> to vector<8x1x4xf32>
    %89 = vector.broadcast %86 : vector<8x8x1xf32> to vector<8x8x4xf32>
    %90 = vector.broadcast %88 : vector<8x1x4xf32> to vector<8x8x4xf32>
    %91 = arith.mulf %89, %90 : vector<8x8x4xf32>
    %92 = arith.addf %85, %91 : vector<8x8x4xf32>
    %93 = vector.extract_strided_slice %0 {offsets = [0, 0, 3], sizes = [8, 8, 1], strides = [1, 1, 1]} : vector<8x8x4xf32> to vector<8x8x1xf32>
    %94 = vector.extract_strided_slice %72 {offsets = [0, 12], sizes = [8, 4], strides = [1, 1]} : vector<8x16xf32> to vector<8x4xf32>
    %95 = vector.shape_cast %94 : vector<8x4xf32> to vector<8x1x4xf32>
    %96 = vector.broadcast %93 : vector<8x8x1xf32> to vector<8x8x4xf32>
    %97 = vector.broadcast %95 : vector<8x1x4xf32> to vector<8x8x4xf32>
    %98 = arith.mulf %96, %97 : vector<8x8x4xf32>
    %99 = arith.addf %92, %98 : vector<8x8x4xf32>
    %100 = vector.shape_cast %99 : vector<8x8x4xf32> to vector<64x4xf32>
    %c656 = arith.constant 656 : index
    %c0_40 = arith.constant 0 : index
    %101 = vector.load %arg2[%c656, %c0_40] : memref<1552x256xf32, #tpu.memory_space<vmem>>, vector<4x8xf32>
    %c9 = arith.constant 9 : index
    %c0_41 = arith.constant 0 : index
    %102 = vector.load %arg3[%c9, %c0_41] : memref<32x256xf32, #tpu.memory_space<vmem>>, vector<1x8xf32>
    %cst_42 = arith.constant dense<0.000000e+00> : vector<64x8xf32>
    %103 = tpu.matmul %100, %101, %cst_42 {dimension_numbers = #tpu.dot_dimension_numbers<[1], [0], [0], [1], [0, 0, 1, 1], [], []>} : vector<64x4xf32>, vector<4x8xf32>, vector<64x8xf32> -> vector<64x8xf32>
    %104 = vector.broadcast %102 : vector<1x8xf32> to vector<64x8xf32>
    %105 = arith.addf %103, %104 : vector<64x8xf32>
    %cst_43 = arith.constant 2.000000e-01 : f32
    %106 = vector.broadcast %cst_43 : f32 to vector<64x8xf32>
    %107 = arith.mulf %106, %105 : vector<64x8xf32>
    %108 = arith.maximumf %105, %107 : vector<64x8xf32>
    %c664 = arith.constant 664 : index
    %c0_44 = arith.constant 0 : index
    %109 = vector.load %arg2[%c664, %c0_44] : memref<1552x256xf32, #tpu.memory_space<vmem>>, vector<8x16xf32>
    %c10 = arith.constant 10 : index
    %c0_45 = arith.constant 0 : index
    %110 = vector.load %arg3[%c10, %c0_45] : memref<32x256xf32, #tpu.memory_space<vmem>>, vector<1x16xf32>
    %cst_46 = arith.constant dense<0.000000e+00> : vector<64x16xf32>
    %111 = tpu.matmul %108, %109, %cst_46 {dimension_numbers = #tpu.dot_dimension_numbers<[1], [0], [0], [1], [0, 0, 1, 1], [], []>} : vector<64x8xf32>, vector<8x16xf32>, vector<64x16xf32> -> vector<64x16xf32>
    %112 = vector.broadcast %110 : vector<1x16xf32> to vector<64x16xf32>
    %113 = arith.addf %111, %112 : vector<64x16xf32>
    %cst_47 = arith.constant 2.000000e-01 : f32
    %114 = vector.broadcast %cst_47 : f32 to vector<64x16xf32>
    %115 = arith.mulf %114, %113 : vector<64x16xf32>
    %116 = arith.maximumf %113, %115 : vector<64x16xf32>
    %c672 = arith.constant 672 : index
    %c0_48 = arith.constant 0 : index
    %117 = vector.load %arg2[%c672, %c0_48] : memref<1552x256xf32, #tpu.memory_space<vmem>>, vector<16x8xf32>
    %c11 = arith.constant 11 : index
    %c0_49 = arith.constant 0 : index
    %118 = vector.load %arg3[%c11, %c0_49] : memref<32x256xf32, #tpu.memory_space<vmem>>, vector<1x8xf32>
    %cst_50 = arith.constant dense<0.000000e+00> : vector<64x8xf32>
    %119 = tpu.matmul %116, %117, %cst_50 {dimension_numbers = #tpu.dot_dimension_numbers<[1], [0], [0], [1], [0, 0, 1, 1], [], []>} : vector<64x16xf32>, vector<16x8xf32>, vector<64x8xf32> -> vector<64x8xf32>
    %120 = vector.broadcast %118 : vector<1x8xf32> to vector<64x8xf32>
    %121 = arith.addf %119, %120 : vector<64x8xf32>
    %cst_51 = arith.constant 2.000000e-01 : f32
    %122 = vector.broadcast %cst_51 : f32 to vector<64x8xf32>
    %123 = arith.mulf %122, %121 : vector<64x8xf32>
    %124 = arith.maximumf %121, %123 : vector<64x8xf32>
    %c688 = arith.constant 688 : index
    %c0_52 = arith.constant 0 : index
    %125 = vector.load %arg2[%c688, %c0_52] : memref<1552x256xf32, #tpu.memory_space<vmem>>, vector<8x16xf32>
    %c12 = arith.constant 12 : index
    %c0_53 = arith.constant 0 : index
    %126 = vector.load %arg3[%c12, %c0_53] : memref<32x256xf32, #tpu.memory_space<vmem>>, vector<1x16xf32>
    %cst_54 = arith.constant dense<0.000000e+00> : vector<64x16xf32>
    %127 = tpu.matmul %124, %125, %cst_54 {dimension_numbers = #tpu.dot_dimension_numbers<[1], [0], [0], [1], [0, 0, 1, 1], [], []>} : vector<64x8xf32>, vector<8x16xf32>, vector<64x16xf32> -> vector<64x16xf32>
    %128 = vector.broadcast %126 : vector<1x16xf32> to vector<64x16xf32>
    %129 = arith.addf %127, %128 : vector<64x16xf32>
    %cst_55 = arith.constant 2.000000e-01 : f32
    %130 = vector.broadcast %cst_55 : f32 to vector<64x16xf32>
    %131 = arith.mulf %130, %129 : vector<64x16xf32>
    %132 = arith.maximumf %129, %131 : vector<64x16xf32>
    %133 = vector.shape_cast %132 : vector<64x16xf32> to vector<8x8x16xf32>
    %134 = vector.shape_cast %133 : vector<8x8x16xf32> to vector<64x16xf32>
    %c696 = arith.constant 696 : index
    %c0_56 = arith.constant 0 : index
    %135 = vector.load %arg2[%c696, %c0_56] : memref<1552x256xf32, #tpu.memory_space<vmem>>, vector<16x8xf32>
    %c13 = arith.constant 13 : index
    %c0_57 = arith.constant 0 : index
    %136 = vector.load %arg3[%c13, %c0_57] : memref<32x256xf32, #tpu.memory_space<vmem>>, vector<1x8xf32>
    %cst_58 = arith.constant dense<0.000000e+00> : vector<64x8xf32>
    %137 = tpu.matmul %134, %135, %cst_58 {dimension_numbers = #tpu.dot_dimension_numbers<[1], [0], [0], [1], [0, 0, 1, 1], [], []>} : vector<64x16xf32>, vector<16x8xf32>, vector<64x8xf32> -> vector<64x8xf32>
    %138 = vector.broadcast %136 : vector<1x8xf32> to vector<64x8xf32>
    %139 = arith.addf %137, %138 : vector<64x8xf32>
    %cst_59 = arith.constant 2.000000e-01 : f32
    %140 = vector.broadcast %cst_59 : f32 to vector<64x8xf32>
    %141 = arith.mulf %140, %139 : vector<64x8xf32>
    %142 = arith.maximumf %139, %141 : vector<64x8xf32>
    %c712 = arith.constant 712 : index
    %c0_60 = arith.constant 0 : index
    %143 = vector.load %arg2[%c712, %c0_60] : memref<1552x256xf32, #tpu.memory_space<vmem>>, vector<8x16xf32>
    %c14 = arith.constant 14 : index
    %c0_61 = arith.constant 0 : index
    %144 = vector.load %arg3[%c14, %c0_61] : memref<32x256xf32, #tpu.memory_space<vmem>>, vector<1x16xf32>
    %cst_62 = arith.constant dense<0.000000e+00> : vector<64x16xf32>
    %145 = tpu.matmul %142, %143, %cst_62 {dimension_numbers = #tpu.dot_dimension_numbers<[1], [0], [0], [1], [0, 0, 1, 1], [], []>} : vector<64x8xf32>, vector<8x16xf32>, vector<64x16xf32> -> vector<64x16xf32>
    %146 = vector.broadcast %144 : vector<1x16xf32> to vector<64x16xf32>
    %147 = arith.addf %145, %146 : vector<64x16xf32>
    %cst_63 = arith.constant 2.000000e-01 : f32
    %148 = vector.broadcast %cst_63 : f32 to vector<64x16xf32>
    %149 = arith.mulf %148, %147 : vector<64x16xf32>
    %150 = arith.maximumf %147, %149 : vector<64x16xf32>
    %c720 = arith.constant 720 : index
    %c0_64 = arith.constant 0 : index
    %151 = vector.load %arg2[%c720, %c0_64] : memref<1552x256xf32, #tpu.memory_space<vmem>>, vector<16x16xf32>
    %c15 = arith.constant 15 : index
    %c0_65 = arith.constant 0 : index
    %152 = vector.load %arg3[%c15, %c0_65] : memref<32x256xf32, #tpu.memory_space<vmem>>, vector<1x16xf32>
    %cst_66 = arith.constant dense<0.000000e+00> : vector<64x16xf32>
    %153 = tpu.matmul %150, %151, %cst_66 {dimension_numbers = #tpu.dot_dimension_numbers<[1], [0], [0], [1], [0, 0, 1, 1], [], []>} : vector<64x16xf32>, vector<16x16xf32>, vector<64x16xf32> -> vector<64x16xf32>
    %154 = vector.broadcast %152 : vector<1x16xf32> to vector<64x16xf32>
    %155 = arith.addf %153, %154 : vector<64x16xf32>
    %cst_67 = arith.constant 2.000000e-01 : f32
    %156 = vector.broadcast %cst_67 : f32 to vector<64x16xf32>
    %157 = arith.mulf %156, %155 : vector<64x16xf32>
    %158 = arith.maximumf %155, %157 : vector<64x16xf32>
    %c736 = arith.constant 736 : index
    %c0_68 = arith.constant 0 : index
    %159 = vector.load %arg2[%c736, %c0_68] : memref<1552x256xf32, #tpu.memory_space<vmem>>, vector<16x32xf32>
    %c16_69 = arith.constant 16 : index
    %c0_70 = arith.constant 0 : index
    %160 = vector.load %arg3[%c16_69, %c0_70] : memref<32x256xf32, #tpu.memory_space<vmem>>, vector<1x32xf32>
    %cst_71 = arith.constant dense<0.000000e+00> : vector<64x32xf32>
    %161 = tpu.matmul %158, %159, %cst_71 {dimension_numbers = #tpu.dot_dimension_numbers<[1], [0], [0], [1], [0, 0, 1, 1], [], []>} : vector<64x16xf32>, vector<16x32xf32>, vector<64x32xf32> -> vector<64x32xf32>
    %162 = vector.broadcast %160 : vector<1x32xf32> to vector<64x32xf32>
    %163 = arith.addf %161, %162 : vector<64x32xf32>
    %cst_72 = arith.constant 2.000000e-01 : f32
    %164 = vector.broadcast %cst_72 : f32 to vector<64x32xf32>
    %165 = arith.mulf %164, %163 : vector<64x32xf32>
    %166 = arith.maximumf %163, %165 : vector<64x32xf32>
    %c752 = arith.constant 752 : index
    %c0_73 = arith.constant 0 : index
    %167 = vector.load %arg2[%c752, %c0_73] : memref<1552x256xf32, #tpu.memory_space<vmem>>, vector<32x128xf32>
    %c17 = arith.constant 17 : index
    %c0_74 = arith.constant 0 : index
    %168 = vector.load %arg3[%c17, %c0_74] : memref<32x256xf32, #tpu.memory_space<vmem>>, vector<1x128xf32>
    %cst_75 = arith.constant dense<0.000000e+00> : vector<64x128xf32>
    %169 = tpu.matmul %166, %167, %cst_75 {dimension_numbers = #tpu.dot_dimension_numbers<[1], [0], [0], [1], [0, 0, 1, 1], [], []>} : vector<64x32xf32>, vector<32x128xf32>, vector<64x128xf32> -> vector<64x128xf32>
    %170 = vector.broadcast %168 : vector<1x128xf32> to vector<64x128xf32>
    %171 = arith.addf %169, %170 : vector<64x128xf32>
    %cst_76 = arith.constant 2.000000e-01 : f32
    %172 = vector.broadcast %cst_76 : f32 to vector<64x128xf32>
    %173 = arith.mulf %172, %171 : vector<64x128xf32>
    %174 = arith.maximumf %171, %173 : vector<64x128xf32>
    %c784 = arith.constant 784 : index
    %c0_77 = arith.constant 0 : index
    %175 = vector.load %arg2[%c784, %c0_77] : memref<1552x256xf32, #tpu.memory_space<vmem>>, vector<128x256xf32>
    %c18 = arith.constant 18 : index
    %c0_78 = arith.constant 0 : index
    %176 = vector.load %arg3[%c18, %c0_78] : memref<32x256xf32, #tpu.memory_space<vmem>>, vector<1x256xf32>
    %cst_79 = arith.constant dense<0.000000e+00> : vector<64x256xf32>
    %177 = tpu.matmul %174, %175, %cst_79 {dimension_numbers = #tpu.dot_dimension_numbers<[1], [0], [0], [1], [0, 0, 1, 1], [], []>} : vector<64x128xf32>, vector<128x256xf32>, vector<64x256xf32> -> vector<64x256xf32>
    %178 = vector.broadcast %176 : vector<1x256xf32> to vector<64x256xf32>
    %179 = arith.addf %177, %178 : vector<64x256xf32>
    %cst_80 = arith.constant 2.000000e-01 : f32
    %180 = vector.broadcast %cst_80 : f32 to vector<64x256xf32>
    %181 = arith.mulf %180, %179 : vector<64x256xf32>
    %182 = arith.maximumf %179, %181 : vector<64x256xf32>
    %183 = vector.shape_cast %182 : vector<64x256xf32> to vector<8x8x256xf32>
    %cst_81 = arith.constant dense<0xFF800000> : vector<8x256xf32>
    %184 = vector.multi_reduction <maximumf>, %183, %cst_81 [1] : vector<8x8x256xf32> to vector<8x256xf32>
    %c912 = arith.constant 912 : index
    %c0_82 = arith.constant 0 : index
    %185 = vector.load %arg2[%c912, %c0_82] : memref<1552x256xf32, #tpu.memory_space<vmem>>, vector<256x128xf32>
    %c19 = arith.constant 19 : index
    %c0_83 = arith.constant 0 : index
    %186 = vector.load %arg3[%c19, %c0_83] : memref<32x256xf32, #tpu.memory_space<vmem>>, vector<1x128xf32>
    %cst_84 = arith.constant dense<0.000000e+00> : vector<8x128xf32>
    %187 = tpu.matmul %184, %185, %cst_84 {dimension_numbers = #tpu.dot_dimension_numbers<[1], [0], [0], [1], [0, 0, 1, 1], [], []>} : vector<8x256xf32>, vector<256x128xf32>, vector<8x128xf32> -> vector<8x128xf32>
    %188 = vector.broadcast %186 : vector<1x128xf32> to vector<8x128xf32>
    %189 = arith.addf %187, %188 : vector<8x128xf32>
    %cst_85 = arith.constant 2.000000e-01 : f32
    %190 = vector.broadcast %cst_85 : f32 to vector<8x128xf32>
    %191 = arith.mulf %190, %189 : vector<8x128xf32>
    %192 = arith.maximumf %189, %191 : vector<8x128xf32>
    %c1168 = arith.constant 1168 : index
    %c0_86 = arith.constant 0 : index
    %193 = vector.load %arg2[%c1168, %c0_86] : memref<1552x256xf32, #tpu.memory_space<vmem>>, vector<128x64xf32>
    %c20 = arith.constant 20 : index
    %c0_87 = arith.constant 0 : index
    %194 = vector.load %arg3[%c20, %c0_87] : memref<32x256xf32, #tpu.memory_space<vmem>>, vector<1x64xf32>
    %cst_88 = arith.constant dense<0.000000e+00> : vector<8x64xf32>
    %195 = tpu.matmul %192, %193, %cst_88 {dimension_numbers = #tpu.dot_dimension_numbers<[1], [0], [0], [1], [0, 0, 1, 1], [], []>} : vector<8x128xf32>, vector<128x64xf32>, vector<8x64xf32> -> vector<8x64xf32>
    %196 = vector.broadcast %194 : vector<1x64xf32> to vector<8x64xf32>
    %197 = arith.addf %195, %196 : vector<8x64xf32>
    %cst_89 = arith.constant 2.000000e-01 : f32
    %198 = vector.broadcast %cst_89 : f32 to vector<8x64xf32>
    %199 = arith.mulf %198, %197 : vector<8x64xf32>
    %200 = arith.maximumf %197, %199 : vector<8x64xf32>
    %c1296 = arith.constant 1296 : index
    %c0_90 = arith.constant 0 : index
    %201 = vector.load %arg2[%c1296, %c0_90] : memref<1552x256xf32, #tpu.memory_space<vmem>>, vector<64x256xf32>
    %c21 = arith.constant 21 : index
    %c0_91 = arith.constant 0 : index
    %202 = vector.load %arg3[%c21, %c0_91] : memref<32x256xf32, #tpu.memory_space<vmem>>, vector<1x256xf32>
    %cst_92 = arith.constant dense<0.000000e+00> : vector<8x256xf32>
    %203 = tpu.matmul %200, %201, %cst_92 {dimension_numbers = #tpu.dot_dimension_numbers<[1], [0], [0], [1], [0, 0, 1, 1], [], []>} : vector<8x64xf32>, vector<64x256xf32>, vector<8x256xf32> -> vector<8x256xf32>
    %204 = vector.broadcast %202 : vector<1x256xf32> to vector<8x256xf32>
    %205 = arith.addf %203, %204 : vector<8x256xf32>
    %206 = vector.extract_strided_slice %133 {offsets = [0, 0, 0], sizes = [8, 8, 1], strides = [1, 1, 1]} : vector<8x8x16xf32> to vector<8x8x1xf32>
    %207 = vector.extract_strided_slice %205 {offsets = [0, 0], sizes = [8, 16], strides = [1, 1]} : vector<8x256xf32> to vector<8x16xf32>
    %208 = vector.shape_cast %207 : vector<8x16xf32> to vector<8x1x16xf32>
    %209 = vector.broadcast %206 : vector<8x8x1xf32> to vector<8x8x16xf32>
    %210 = vector.broadcast %208 : vector<8x1x16xf32> to vector<8x8x16xf32>
    %211 = arith.mulf %209, %210 : vector<8x8x16xf32>
    %212 = vector.extract_strided_slice %133 {offsets = [0, 0, 1], sizes = [8, 8, 1], strides = [1, 1, 1]} : vector<8x8x16xf32> to vector<8x8x1xf32>
    %213 = vector.extract_strided_slice %205 {offsets = [0, 16], sizes = [8, 16], strides = [1, 1]} : vector<8x256xf32> to vector<8x16xf32>
    %214 = vector.shape_cast %213 : vector<8x16xf32> to vector<8x1x16xf32>
    %215 = vector.broadcast %212 : vector<8x8x1xf32> to vector<8x8x16xf32>
    %216 = vector.broadcast %214 : vector<8x1x16xf32> to vector<8x8x16xf32>
    %217 = arith.mulf %215, %216 : vector<8x8x16xf32>
    %218 = arith.addf %211, %217 : vector<8x8x16xf32>
    %219 = vector.extract_strided_slice %133 {offsets = [0, 0, 2], sizes = [8, 8, 1], strides = [1, 1, 1]} : vector<8x8x16xf32> to vector<8x8x1xf32>
    %220 = vector.extract_strided_slice %205 {offsets = [0, 32], sizes = [8, 16], strides = [1, 1]} : vector<8x256xf32> to vector<8x16xf32>
    %221 = vector.shape_cast %220 : vector<8x16xf32> to vector<8x1x16xf32>
    %222 = vector.broadcast %219 : vector<8x8x1xf32> to vector<8x8x16xf32>
    %223 = vector.broadcast %221 : vector<8x1x16xf32> to vector<8x8x16xf32>
    %224 = arith.mulf %222, %223 : vector<8x8x16xf32>
    %225 = arith.addf %218, %224 : vector<8x8x16xf32>
    %226 = vector.extract_strided_slice %133 {offsets = [0, 0, 3], sizes = [8, 8, 1], strides = [1, 1, 1]} : vector<8x8x16xf32> to vector<8x8x1xf32>
    %227 = vector.extract_strided_slice %205 {offsets = [0, 48], sizes = [8, 16], strides = [1, 1]} : vector<8x256xf32> to vector<8x16xf32>
    %228 = vector.shape_cast %227 : vector<8x16xf32> to vector<8x1x16xf32>
    %229 = vector.broadcast %226 : vector<8x8x1xf32> to vector<8x8x16xf32>
    %230 = vector.broadcast %228 : vector<8x1x16xf32> to vector<8x8x16xf32>
    %231 = arith.mulf %229, %230 : vector<8x8x16xf32>
    %232 = arith.addf %225, %231 : vector<8x8x16xf32>
    %233 = vector.extract_strided_slice %133 {offsets = [0, 0, 4], sizes = [8, 8, 1], strides = [1, 1, 1]} : vector<8x8x16xf32> to vector<8x8x1xf32>
    %234 = vector.extract_strided_slice %205 {offsets = [0, 64], sizes = [8, 16], strides = [1, 1]} : vector<8x256xf32> to vector<8x16xf32>
    %235 = vector.shape_cast %234 : vector<8x16xf32> to vector<8x1x16xf32>
    %236 = vector.broadcast %233 : vector<8x8x1xf32> to vector<8x8x16xf32>
    %237 = vector.broadcast %235 : vector<8x1x16xf32> to vector<8x8x16xf32>
    %238 = arith.mulf %236, %237 : vector<8x8x16xf32>
    %239 = arith.addf %232, %238 : vector<8x8x16xf32>
    %240 = vector.extract_strided_slice %133 {offsets = [0, 0, 5], sizes = [8, 8, 1], strides = [1, 1, 1]} : vector<8x8x16xf32> to vector<8x8x1xf32>
    %241 = vector.extract_strided_slice %205 {offsets = [0, 80], sizes = [8, 16], strides = [1, 1]} : vector<8x256xf32> to vector<8x16xf32>
    %242 = vector.shape_cast %241 : vector<8x16xf32> to vector<8x1x16xf32>
    %243 = vector.broadcast %240 : vector<8x8x1xf32> to vector<8x8x16xf32>
    %244 = vector.broadcast %242 : vector<8x1x16xf32> to vector<8x8x16xf32>
    %245 = arith.mulf %243, %244 : vector<8x8x16xf32>
    %246 = arith.addf %239, %245 : vector<8x8x16xf32>
    %247 = vector.extract_strided_slice %133 {offsets = [0, 0, 6], sizes = [8, 8, 1], strides = [1, 1, 1]} : vector<8x8x16xf32> to vector<8x8x1xf32>
    %248 = vector.extract_strided_slice %205 {offsets = [0, 96], sizes = [8, 16], strides = [1, 1]} : vector<8x256xf32> to vector<8x16xf32>
    %249 = vector.shape_cast %248 : vector<8x16xf32> to vector<8x1x16xf32>
    %250 = vector.broadcast %247 : vector<8x8x1xf32> to vector<8x8x16xf32>
    %251 = vector.broadcast %249 : vector<8x1x16xf32> to vector<8x8x16xf32>
    %252 = arith.mulf %250, %251 : vector<8x8x16xf32>
    %253 = arith.addf %246, %252 : vector<8x8x16xf32>
    %254 = vector.extract_strided_slice %133 {offsets = [0, 0, 7], sizes = [8, 8, 1], strides = [1, 1, 1]} : vector<8x8x16xf32> to vector<8x8x1xf32>
    %255 = vector.extract_strided_slice %205 {offsets = [0, 112], sizes = [8, 16], strides = [1, 1]} : vector<8x256xf32> to vector<8x16xf32>
    %256 = vector.shape_cast %255 : vector<8x16xf32> to vector<8x1x16xf32>
    %257 = vector.broadcast %254 : vector<8x8x1xf32> to vector<8x8x16xf32>
    %258 = vector.broadcast %256 : vector<8x1x16xf32> to vector<8x8x16xf32>
    %259 = arith.mulf %257, %258 : vector<8x8x16xf32>
    %260 = arith.addf %253, %259 : vector<8x8x16xf32>
    %261 = vector.extract_strided_slice %133 {offsets = [0, 0, 8], sizes = [8, 8, 1], strides = [1, 1, 1]} : vector<8x8x16xf32> to vector<8x8x1xf32>
    %262 = vector.extract_strided_slice %205 {offsets = [0, 128], sizes = [8, 16], strides = [1, 1]} : vector<8x256xf32> to vector<8x16xf32>
    %263 = vector.shape_cast %262 : vector<8x16xf32> to vector<8x1x16xf32>
    %264 = vector.broadcast %261 : vector<8x8x1xf32> to vector<8x8x16xf32>
    %265 = vector.broadcast %263 : vector<8x1x16xf32> to vector<8x8x16xf32>
    %266 = arith.mulf %264, %265 : vector<8x8x16xf32>
    %267 = arith.addf %260, %266 : vector<8x8x16xf32>
    %268 = vector.extract_strided_slice %133 {offsets = [0, 0, 9], sizes = [8, 8, 1], strides = [1, 1, 1]} : vector<8x8x16xf32> to vector<8x8x1xf32>
    %269 = vector.extract_strided_slice %205 {offsets = [0, 144], sizes = [8, 16], strides = [1, 1]} : vector<8x256xf32> to vector<8x16xf32>
    %270 = vector.shape_cast %269 : vector<8x16xf32> to vector<8x1x16xf32>
    %271 = vector.broadcast %268 : vector<8x8x1xf32> to vector<8x8x16xf32>
    %272 = vector.broadcast %270 : vector<8x1x16xf32> to vector<8x8x16xf32>
    %273 = arith.mulf %271, %272 : vector<8x8x16xf32>
    %274 = arith.addf %267, %273 : vector<8x8x16xf32>
    %275 = vector.extract_strided_slice %133 {offsets = [0, 0, 10], sizes = [8, 8, 1], strides = [1, 1, 1]} : vector<8x8x16xf32> to vector<8x8x1xf32>
    %276 = vector.extract_strided_slice %205 {offsets = [0, 160], sizes = [8, 16], strides = [1, 1]} : vector<8x256xf32> to vector<8x16xf32>
    %277 = vector.shape_cast %276 : vector<8x16xf32> to vector<8x1x16xf32>
    %278 = vector.broadcast %275 : vector<8x8x1xf32> to vector<8x8x16xf32>
    %279 = vector.broadcast %277 : vector<8x1x16xf32> to vector<8x8x16xf32>
    %280 = arith.mulf %278, %279 : vector<8x8x16xf32>
    %281 = arith.addf %274, %280 : vector<8x8x16xf32>
    %282 = vector.extract_strided_slice %133 {offsets = [0, 0, 11], sizes = [8, 8, 1], strides = [1, 1, 1]} : vector<8x8x16xf32> to vector<8x8x1xf32>
    %283 = vector.extract_strided_slice %205 {offsets = [0, 176], sizes = [8, 16], strides = [1, 1]} : vector<8x256xf32> to vector<8x16xf32>
    %284 = vector.shape_cast %283 : vector<8x16xf32> to vector<8x1x16xf32>
    %285 = vector.broadcast %282 : vector<8x8x1xf32> to vector<8x8x16xf32>
    %286 = vector.broadcast %284 : vector<8x1x16xf32> to vector<8x8x16xf32>
    %287 = arith.mulf %285, %286 : vector<8x8x16xf32>
    %288 = arith.addf %281, %287 : vector<8x8x16xf32>
    %289 = vector.extract_strided_slice %133 {offsets = [0, 0, 12], sizes = [8, 8, 1], strides = [1, 1, 1]} : vector<8x8x16xf32> to vector<8x8x1xf32>
    %290 = vector.extract_strided_slice %205 {offsets = [0, 192], sizes = [8, 16], strides = [1, 1]} : vector<8x256xf32> to vector<8x16xf32>
    %291 = vector.shape_cast %290 : vector<8x16xf32> to vector<8x1x16xf32>
    %292 = vector.broadcast %289 : vector<8x8x1xf32> to vector<8x8x16xf32>
    %293 = vector.broadcast %291 : vector<8x1x16xf32> to vector<8x8x16xf32>
    %294 = arith.mulf %292, %293 : vector<8x8x16xf32>
    %295 = arith.addf %288, %294 : vector<8x8x16xf32>
    %296 = vector.extract_strided_slice %133 {offsets = [0, 0, 13], sizes = [8, 8, 1], strides = [1, 1, 1]} : vector<8x8x16xf32> to vector<8x8x1xf32>
    %297 = vector.extract_strided_slice %205 {offsets = [0, 208], sizes = [8, 16], strides = [1, 1]} : vector<8x256xf32> to vector<8x16xf32>
    %298 = vector.shape_cast %297 : vector<8x16xf32> to vector<8x1x16xf32>
    %299 = vector.broadcast %296 : vector<8x8x1xf32> to vector<8x8x16xf32>
    %300 = vector.broadcast %298 : vector<8x1x16xf32> to vector<8x8x16xf32>
    %301 = arith.mulf %299, %300 : vector<8x8x16xf32>
    %302 = arith.addf %295, %301 : vector<8x8x16xf32>
    %303 = vector.extract_strided_slice %133 {offsets = [0, 0, 14], sizes = [8, 8, 1], strides = [1, 1, 1]} : vector<8x8x16xf32> to vector<8x8x1xf32>
    %304 = vector.extract_strided_slice %205 {offsets = [0, 224], sizes = [8, 16], strides = [1, 1]} : vector<8x256xf32> to vector<8x16xf32>
    %305 = vector.shape_cast %304 : vector<8x16xf32> to vector<8x1x16xf32>
    %306 = vector.broadcast %303 : vector<8x8x1xf32> to vector<8x8x16xf32>
    %307 = vector.broadcast %305 : vector<8x1x16xf32> to vector<8x8x16xf32>
    %308 = arith.mulf %306, %307 : vector<8x8x16xf32>
    %309 = arith.addf %302, %308 : vector<8x8x16xf32>
    %310 = vector.extract_strided_slice %133 {offsets = [0, 0, 15], sizes = [8, 8, 1], strides = [1, 1, 1]} : vector<8x8x16xf32> to vector<8x8x1xf32>
    %311 = vector.extract_strided_slice %205 {offsets = [0, 240], sizes = [8, 16], strides = [1, 1]} : vector<8x256xf32> to vector<8x16xf32>
    %312 = vector.shape_cast %311 : vector<8x16xf32> to vector<8x1x16xf32>
    %313 = vector.broadcast %310 : vector<8x8x1xf32> to vector<8x8x16xf32>
    %314 = vector.broadcast %312 : vector<8x1x16xf32> to vector<8x8x16xf32>
    %315 = arith.mulf %313, %314 : vector<8x8x16xf32>
    %316 = arith.addf %309, %315 : vector<8x8x16xf32>
    %317 = vector.shape_cast %316 : vector<8x8x16xf32> to vector<64x16xf32>
    %c1360 = arith.constant 1360 : index
    %c0_93 = arith.constant 0 : index
    %318 = vector.load %arg2[%c1360, %c0_93] : memref<1552x256xf32, #tpu.memory_space<vmem>>, vector<16x16xf32>
    %c22 = arith.constant 22 : index
    %c0_94 = arith.constant 0 : index
    %319 = vector.load %arg3[%c22, %c0_94] : memref<32x256xf32, #tpu.memory_space<vmem>>, vector<1x16xf32>
    %cst_95 = arith.constant dense<0.000000e+00> : vector<64x16xf32>
    %320 = tpu.matmul %317, %318, %cst_95 {dimension_numbers = #tpu.dot_dimension_numbers<[1], [0], [0], [1], [0, 0, 1, 1], [], []>} : vector<64x16xf32>, vector<16x16xf32>, vector<64x16xf32> -> vector<64x16xf32>
    %321 = vector.broadcast %319 : vector<1x16xf32> to vector<64x16xf32>
    %322 = arith.addf %320, %321 : vector<64x16xf32>
    %cst_96 = arith.constant 2.000000e-01 : f32
    %323 = vector.broadcast %cst_96 : f32 to vector<64x16xf32>
    %324 = arith.mulf %323, %322 : vector<64x16xf32>
    %325 = arith.maximumf %322, %324 : vector<64x16xf32>
    %c1376 = arith.constant 1376 : index
    %c0_97 = arith.constant 0 : index
    %326 = vector.load %arg2[%c1376, %c0_97] : memref<1552x256xf32, #tpu.memory_space<vmem>>, vector<16x32xf32>
    %c23 = arith.constant 23 : index
    %c0_98 = arith.constant 0 : index
    %327 = vector.load %arg3[%c23, %c0_98] : memref<32x256xf32, #tpu.memory_space<vmem>>, vector<1x32xf32>
    %cst_99 = arith.constant dense<0.000000e+00> : vector<64x32xf32>
    %328 = tpu.matmul %325, %326, %cst_99 {dimension_numbers = #tpu.dot_dimension_numbers<[1], [0], [0], [1], [0, 0, 1, 1], [], []>} : vector<64x16xf32>, vector<16x32xf32>, vector<64x32xf32> -> vector<64x32xf32>
    %329 = vector.broadcast %327 : vector<1x32xf32> to vector<64x32xf32>
    %330 = arith.addf %328, %329 : vector<64x32xf32>
    %cst_100 = arith.constant 2.000000e-01 : f32
    %331 = vector.broadcast %cst_100 : f32 to vector<64x32xf32>
    %332 = arith.mulf %331, %330 : vector<64x32xf32>
    %333 = arith.maximumf %330, %332 : vector<64x32xf32>
    %c1392 = arith.constant 1392 : index
    %c0_101 = arith.constant 0 : index
    %334 = vector.load %arg2[%c1392, %c0_101] : memref<1552x256xf32, #tpu.memory_space<vmem>>, vector<32x128xf32>
    %c24 = arith.constant 24 : index
    %c0_102 = arith.constant 0 : index
    %335 = vector.load %arg3[%c24, %c0_102] : memref<32x256xf32, #tpu.memory_space<vmem>>, vector<1x128xf32>
    %cst_103 = arith.constant dense<0.000000e+00> : vector<64x128xf32>
    %336 = tpu.matmul %333, %334, %cst_103 {dimension_numbers = #tpu.dot_dimension_numbers<[1], [0], [0], [1], [0, 0, 1, 1], [], []>} : vector<64x32xf32>, vector<32x128xf32>, vector<64x128xf32> -> vector<64x128xf32>
    %337 = vector.broadcast %335 : vector<1x128xf32> to vector<64x128xf32>
    %338 = arith.addf %336, %337 : vector<64x128xf32>
    %cst_104 = arith.constant 2.000000e-01 : f32
    %339 = vector.broadcast %cst_104 : f32 to vector<64x128xf32>
    %340 = arith.mulf %339, %338 : vector<64x128xf32>
    %341 = arith.maximumf %338, %340 : vector<64x128xf32>
    %c1424 = arith.constant 1424 : index
    %c0_105 = arith.constant 0 : index
    %342 = vector.load %arg2[%c1424, %c0_105] : memref<1552x256xf32, #tpu.memory_space<vmem>>, vector<128x256xf32>
    %c25 = arith.constant 25 : index
    %c0_106 = arith.constant 0 : index
    %343 = vector.load %arg3[%c25, %c0_106] : memref<32x256xf32, #tpu.memory_space<vmem>>, vector<1x256xf32>
    %cst_107 = arith.constant dense<0.000000e+00> : vector<64x256xf32>
    %344 = tpu.matmul %341, %342, %cst_107 {dimension_numbers = #tpu.dot_dimension_numbers<[1], [0], [0], [1], [0, 0, 1, 1], [], []>} : vector<64x128xf32>, vector<128x256xf32>, vector<64x256xf32> -> vector<64x256xf32>
    %345 = vector.broadcast %343 : vector<1x256xf32> to vector<64x256xf32>
    %346 = arith.addf %344, %345 : vector<64x256xf32>
    %cst_108 = arith.constant 2.000000e-01 : f32
    %347 = vector.broadcast %cst_108 : f32 to vector<64x256xf32>
    %348 = arith.mulf %347, %346 : vector<64x256xf32>
    %349 = arith.maximumf %346, %348 : vector<64x256xf32>
    %350 = vector.shape_cast %349 : vector<64x256xf32> to vector<8x8x256xf32>
    %cst_109 = arith.constant dense<0xFF800000> : vector<8x256xf32>
    %351 = vector.multi_reduction <maximumf>, %350, %cst_109 [1] : vector<8x8x256xf32> to vector<8x256xf32>
    %c0_110 = arith.constant 0 : index
    %c0_111 = arith.constant 0 : index
    %352 = vector.load %arg4[%c0_110, %c0_111] : memref<8x256xf32, #tpu.memory_space<vmem>>, vector<8x256xf32>
    tpu.vector_store %arg4[%c0_110, %c0_111], %351 {strides = array<i32>} : memref<8x256xf32, #tpu.memory_space<vmem>>, vector<8x256xf32>,
    %c0_112 = arith.constant 0 : index
    %c0_113 = arith.constant 0 : index
    %353 = vector.load %arg5[%c0_112, %c0_113] : memref<8x256xf32, #tpu.memory_space<vmem>>, vector<8x256xf32>
    tpu.vector_store %arg5[%c0_112, %c0_113], %205 {strides = array<i32>} : memref<8x256xf32, #tpu.memory_space<vmem>>, vector<8x256xf32>,
    return
  }
  func.func @transform_0(%arg0: i32) -> (i32, i32, i32) {
    %c0_i32 = arith.constant 0 : i32
    %c0_i32_0 = arith.constant 0 : i32
    %c0_i32_1 = arith.constant 0 : i32
    return %arg0, %c0_i32, %c0_i32_0 : i32, i32, i32
  }
  func.func @transform_1(%arg0: i32) -> (i32, i32) {
    %c0_i32 = arith.constant 0 : i32
    %c0_i32_0 = arith.constant 0 : i32
    %c0_i32_1 = arith.constant 0 : i32
    return %c0_i32, %c0_i32_0 : i32, i32
  }
  func.func @transform_2(%arg0: i32) -> (i32, i32) {
    %c0_i32 = arith.constant 0 : i32
    %c0_i32_0 = arith.constant 0 : i32
    %c0_i32_1 = arith.constant 0 : i32
    return %c0_i32, %c0_i32_0 : i32, i32
  }
  func.func @transform_3(%arg0: i32) -> (i32, i32) {
    %c0_i32 = arith.constant 0 : i32
    %c0_i32_0 = arith.constant 0 : i32
    return %arg0, %c0_i32 : i32, i32
  }
  func.func @transform_4(%arg0: i32) -> (i32, i32) {
    %c0_i32 = arith.constant 0 : i32
    %c0_i32_0 = arith.constant 0 : i32
    return %arg0, %c0_i32 : i32, i32
  }
}

</mosaic_0001>

<bundles_post_ra>
// kernel: pointnet_forward.1
= control target key start
LH: loop header
LB: loop body
LE: loop exit
PB: predicated region body
PF: predicated region fallthrough
CT: control target
= control target key end

     0   :  { %vm51_vm0 = vcmask 1043456   ;;  %vm26_vm1 = vcmask 31744   ;;  %vm178_vm2 = vcmask 64512   ;;  %vm327_vm3 = vcmask 130048   ;;  %s7128_s28 = smov 124   ;;  %s7129_s29 = smov 120   ;;  %s9548_s1 = inlined_call_operand.vmem [shape: f32[1552,256], index: 1, kind: input, shape index: {}]   ;;  %s9549_s0 = inlined_call_operand.vmem [shape: f32[8,8,4], index: 0, kind: input, shape index: {}]   ;;  %s9550_s2 = inlined_call_operand.vmem [shape: f32[32,256], index: 2, kind: input, shape index: {}]   ;;  %s9551_s4 = inlined_call_operand.vmem [shape: f32[8,256], index: 4, kind: output, shape index: {1}]   ;;  %s9552_s3 = inlined_call_operand.vmem [shape: f32[8,256], index: 3, kind: output, shape index: {0}]  }
   0x1   :  { %v24_v0 = vld [vmem:[%s9548_s1] sm:$0xf]  ;;  %v17_v2 = vld [vmem:[%s9549_s0 + $0x8] sm:$0xff]  ;;  %v18_v3 = vld [vmem:[%s9549_s0 + $0x10] sm:$0xff]  ;;  %vm626_vm4 = vcmask 261120   ;;  %vm1107_vm5 = vcmask 1041409  }
   0x2   :  { %v16_v1 = vld [vmem:[%s9549_s0] sm:$0xff]  ;;  %6283 = vmatprep.subr.msk.mxu0 %vm51_vm0, %v24_v0  ;;  %v19_v4 = vld [vmem:[%s9549_s0 + $0x18] sm:$0xff]  ;;  %v21_v6 = vld [vmem:[%s9549_s0 + $0x28] sm:$0xff]  ;;  %vm1109_vm6 = vcmask 1042434   ;;  %vm1111_vm7 = vcmask 1043459   ;;  %vm1113_vm8 = vcmask 1044484  }
   0x3   :  { %6285 = vmatprep.mubr.msk.f32.mxu0 %vm26_vm1, %v16_v1  ;;  %6284 = vmatpush3.msk.msra.mxu0 %vm51_vm0, %v24_v0  ;;  %v20_v5 = vld [vmem:[%s9549_s0 + $0x20] sm:$0xff]  ;;  %v22_v7 = vld [vmem:[%s9549_s0 + $0x30] sm:$0xff]  ;;  %v23_v8 = vld [vmem:[%s9549_s0 + $0x38] sm:$0xff]  ;;  %vm1115_vm9 = vcmask 1045509   ;;  %vm1117_vm10 = vcmask 1046534   ;;  %vm1119_vm11 = vcmask 1047559  }
   0x4   :  { %6286 = vmatmul.mubr.msk.f32.vlgmr.msra.gmra.mrb[0].mxu0 %vm26_vm1, %v17_v2  ;;  %v176_v9 = vld [vmem:[%s9548_s1 + $0x10] sm:$0xff]  ;;  %v324_v10 = vld [vmem:[%s9548_s1 + $0x20] sm:$0xff]  ;;  %vm7122_vm12 = vmmov 0   ;;  %vm1300_vm13 = vcmask 523264   ;;  %s7130_s30 = smov 116   ;;  %s7144_s14 = smov 112  }
   0x5   :  { %6288 = vmatprep.mubr.msk.f32.mxu0 %vm26_vm1, %v18_v3  ;;  %6297 = vmatprep.subr.mxu1 %v176_v9  ;;  %v325_v11 = vld [vmem:[%s9548_s1 + $0x30] sm:$0xff]  ;;  %v25_v13 = vld [vmem:[%s9550_s2] ss:$0 sm:$0xff]  ;;  %v177_v49 = vld [vmem:[%s9550_s2 + $0x1] ss:$0 sm:$0xff]  ;;  %s7145_s15 = smov 48  }
   0x6   :  { %6298 = vmatpush3.msra.mxu1 %v176_v9  ;;  %v6644_v12 = vpack.c.bf16 %v325_v11, %v324_v10  ;;  %v473_v46 = vld [vmem:[%s9548_s1 + $0x40] sm:$0xff]  ;;  %v474_v47 = vld [vmem:[%s9548_s1 + $0x50] sm:$0xff]  ;;  %s7146_s16 = smov 96   ;;  %s7147_s17 = smov 32  }
   0x7   :  { %v6648_v48 = vpack.c.bf16 %v474_v47, %v473_v46  ;;  %s7148_s18 = smov 80   ;;  %s7149_s19 = smov 16  }
   0x8   :  { %6289 = vmatmul.mubr.msk.f32.gmra.mrb[2].mxu0 %vm26_vm1, %v19_v4  ;;  %6645 = vmatprep.subr.bf16.mxu0 %v6644_v12 }
   0x9   :  { %6291 = vmatprep.mubr.msk.f32.mxu0 %vm26_vm1, %v20_v5  ;;  %6647 = vmatpush3.bf16.msra.mxu0 %v6644_v12 }
   0xa   :  { %6649 = vmatprep.subr.bf16.mxu0 %v6648_v48 }
   0xc   :  { %6292 = vmatmul.mubr.msk.f32.gmra.mrb[4].mxu0 %vm26_vm1, %v21_v6 }
   0xd   :  { %6294 = vmatprep.mubr.msk.f32.mxu0 %vm26_vm1, %v22_v7 }
  0x10   :  { %6295 = vmatmul.mubr.msk.f32.gmra.mrb[6].mxu0 %vm26_vm1, %v23_v8 }
  0xd7   :  { %v6287_v14 = vpop.f32.mrb[0].mxu0 }
  0xd8   :  { %v127_v15 = vadd.f32 %v6287_v14, %v25_v13  ;;  %v121_v16 = vpop.f32.mrb[1].mxu0 }
  0xd9   :  { %v122_v17 = vadd.f32 %v121_v16, %v25_v13 }
  0xda   :  { %v161_v18 = vmul.f32 0.2, %v127_v15 }
  0xdb   :  { %v160_v19 = vmul.f32 0.2, %v122_v17  ;;  %v6290_v20 = vpop.f32.mrb[2].mxu0 }
  0xdc   :  { %v137_v21 = vadd.f32 %v6290_v20, %v25_v13  ;;  %v131_v22 = vpop.f32.mrb[3].mxu0  ;;  %v169_v25 = vmax.f32 %v127_v15, %v161_v18  ;;  %v621_v18 = vld [vmem:[%s9548_s1 + $0x60] sm:$0xff] }
  0xdd   :  { %v132_v23 = vadd.f32 %v131_v22, %v25_v13  ;;  %v168_v24 = vmax.f32 %v122_v17, %v160_v19  ;;  %v622_v19 = vld [vmem:[%s9548_s1 + $0x70] sm:$0xff] }
  0xde   :  { %v163_v26 = vmul.f32 0.2, %v137_v21  ;;  %v6652_v20 = vpack.c.bf16 %v622_v19, %v621_v18 }
  0xdf   :  { %v162_v27 = vmul.f32 0.2, %v132_v23  ;;  %v6293_v28 = vpop.f32.mrb[4].mxu0  ;;  %6299 = vmatprep.mubr.msk.f32.mxu1 %vm178_vm2, %v168_v24 }
  0xe0   :  { %v171_v29 = vmax.f32 %v137_v21, %v163_v26  ;;  %v147_v30 = vadd.f32 %v6293_v28, %v25_v13  ;;  %v141_v31 = vpop.f32.mrb[5].mxu0  ;;  %6300 = vmatmul.mubr.msk.f32.vlgmr.msra.gmra.mrb[0].mxu1 %vm178_vm2, %v169_v25  ;;  %v326_v21 = vld [vmem:[%s9550_s2 + $0x2] ss:$0 sm:$0xff] }
  0xe1   :  { %v170_v32 = vmax.f32 %v132_v23, %v162_v27  ;;  %v142_v33 = vadd.f32 %v141_v31, %v25_v13 }
  0xe2   :  { %v165_v34 = vmul.f32 0.2, %v147_v30 }
  0xe3   :  { %v164_v35 = vmul.f32 0.2, %v142_v33  ;;  %v6296_v36 = vpop.f32.mrb[6].mxu0  ;;  %6302 = vmatprep.mubr.msk.f32.mxu1 %vm178_vm2, %v170_v32 }
  0xe4   :  { %v173_v37 = vmax.f32 %v147_v30, %v165_v34  ;;  %v157_v38 = vadd.f32 %v6296_v36, %v25_v13  ;;  %v151_v39 = vpop.f32.mrb[7].mxu0  ;;  %6303 = vmatmul.mubr.msk.f32.gmra.mrb[2].mxu1 %vm178_vm2, %v171_v29 }
  0xe5   :  { %v172_v40 = vmax.f32 %v142_v33, %v164_v35  ;;  %v152_v41 = vadd.f32 %v151_v39, %v25_v13 }
  0xe6   :  { %v167_v42 = vmul.f32 0.2, %v157_v38 }
  0xe7   :  { %v166_v43 = vmul.f32 0.2, %v152_v41  ;;  %6305 = vmatprep.mubr.msk.f32.mxu1 %vm178_vm2, %v172_v40 }
  0xe8   :  { %v175_v44 = vmax.f32 %v157_v38, %v167_v42  ;;  %6306 = vmatmul.mubr.msk.f32.gmra.mrb[4].mxu1 %vm178_vm2, %v173_v37 }
  0xe9   :  { %v174_v45 = vmax.f32 %v152_v41, %v166_v43 }
  0xeb   :  { %6308 = vmatprep.mubr.msk.f32.mxu1 %vm178_vm2, %v174_v45 }
  0xec   :  { %6309 = vmatmul.mubr.msk.f32.gmra.mrb[6].mxu1 %vm178_vm2, %v175_v44 }
 0x1b3   :  { %v6301_v50 = vpop.f32.mrb[0].mxu1 }
 0x1b4   :  { %v275_v51 = vadd.f32 %v6301_v50, %v177_v49  ;;  %v269_v52 = vpop.f32.mrb[1].mxu1 }
 0x1b5   :  { %v270_v53 = vadd.f32 %v269_v52, %v177_v49 }
 0x1b6   :  { %v309_v54 = vmul.f32 0.2, %v275_v51 }
 0x1b7   :  { %v308_v55 = vmul.f32 0.2, %v270_v53  ;;  %v6304_v56 = vpop.f32.mrb[2].mxu1 }
 0x1b8   :  { %v285_v57 = vadd.f32 %v6304_v56, %v177_v49  ;;  %v279_v58 = vpop.f32.mrb[3].mxu1  ;;  %v317_v61 = vmax.f32 %v275_v51, %v309_v54  ;;  %v623_v54 = vld [vmem:[%s9548_s1 + $0x80] sm:$0xff] }
 0x1b9   :  { %v316_v59 = vmax.f32 %v270_v53, %v308_v55  ;;  %v280_v60 = vadd.f32 %v279_v58, %v177_v49  ;;  %v624_v55 = vld [vmem:[%s9548_s1 + $0x90] sm:$0xff]  ;;  %v775_v58 = vld [vmem:[%s9548_s1 + $0xb8] sm:$0xff] }
 0x1ba   :  { %v311_v62 = vmul.f32 0.2, %v285_v57  ;;  %v6656_v56 = vpack.c.bf16 %v624_v55, %v623_v54 }
 0x1bb   :  { %v310_v63 = vmul.f32 0.2, %v280_v60  ;;  %v6307_v0 = vpop.f32.mrb[4].mxu1  ;;  %6315 = vmatprep.mubr.msk.f32.mxu0 %vm327_vm3, %v316_v59  ;;  %v772_v59 = vld [vmem:[%s9548_s1 + $0xa0] sm:$0xff] }
 0x1bc   :  { %v295_v1 = vadd.f32 %v6307_v0, %v177_v49  ;;  %v289_v2 = vpop.f32.mrb[5].mxu1  ;;  %6316 = vmatmul.mubr.msk.f32.vlgmr.msra.gmra.mrb[8].mxu0 %vm327_vm3, %v317_v61  ;;  %v319_v5 = vmax.f32 %v285_v57, %v311_v62  ;;  %v773_v57 = vld [vmem:[%s9548_s1 + $0xa8] sm:$0xff]  ;;  %v774_v61 = vld [vmem:[%s9548_s1 + $0xb0] sm:$0xff] }
 0x1bd   :  { %v318_v3 = vmax.f32 %v280_v60, %v310_v63  ;;  %v290_v4 = vadd.f32 %v289_v2, %v177_v49  ;;  %6651 = vmatpush3.bf16.msra.mxu0 %v6648_v48  ;;  %v6660_v60 = vpack.c.bf16 %v775_v58, %v773_v57  ;;  %v777_v62 = vld [vmem:[%s9548_s1 + $0xc8] sm:$0xff]  ;;  %v779_v63 = vld [vmem:[%s9548_s1 + $0xd8] sm:$0xff]  ;;  %v6662_v0 = vpack.c.bf16 %v774_v61, %v772_v59  ;;  %v776_v2 = vld [vmem:[%s9548_s1 + $0xc0] sm:$0xff] }
 0x1be   :  { %v313_v6 = vmul.f32 0.2, %v295_v1  ;;  %6653 = vmatprep.subr.bf16.mxu0 %v6652_v20 }
 0x1bf   :  { %v312_v7 = vmul.f32 0.2, %v290_v4  ;;  %v6310_v8 = vpop.f32.mrb[6].mxu1  ;;  %6318 = vmatprep.mubr.msk.f32.mxu0 %vm327_vm3, %v318_v3  ;;  %v778_v3 = vld [vmem:[%s9548_s1 + $0xd0] sm:$0xff]  ;;  %6661 = vmatprep.subr.bf16.mxu1 %v6660_v60 }
 0x1c0   :  { %v321_v9 = vmax.f32 %v295_v1, %v313_v6  ;;  %v305_v10 = vadd.f32 %v6310_v8, %v177_v49  ;;  %v299_v11 = vpop.f32.mrb[7].mxu1  ;;  %6319 = vmatmul.mubr.msk.f32.gmra.mrb[10].mxu0 %vm327_vm3, %v319_v5  ;;  %v6664_v1 = vpack.c.bf16 %v779_v63, %v777_v62  ;;  %v783_v5 = vld [vmem:[%s9548_s1 + $0xf8] sm:$0xff]  ;;  %6663 = vmatpush1.bf16.msra.mxu1 %v6662_v0  ;;  %v780_v8 = vld [vmem:[%s9548_s1 + $0xe0] sm:$0xff]  ;;  %v797_v62 = vld [vmem:[%s9548_s1 + $0x168] sm:$0xff] }
 0x1c1   :  { %v320_v12 = vmax.f32 %v290_v4, %v312_v7  ;;  %v300_v13 = vadd.f32 %v299_v11, %v177_v49  ;;  %v781_v4 = vld [vmem:[%s9548_s1 + $0xe8] sm:$0xff]  ;;  %v6666_v6 = vpack.c.bf16 %v778_v3, %v776_v2  ;;  %v787_v11 = vld [vmem:[%s9548_s1 + $0x118] sm:$0xff]  ;;  %v798_v2 = vld [vmem:[%s9548_s1 + $0x170] sm:$0xff] }
 0x1c2   :  { %v315_v14 = vmul.f32 0.2, %v305_v10  ;;  %6665 = vmatprep.subr.bf16.mxu1 %v6664_v1  ;;  %v6668_v7 = vpack.c.bf16 %v783_v5, %v781_v4  ;;  %v799_v63 = vld [vmem:[%s9548_s1 + $0x178] sm:$0xff]  ;;  %v796_v1 = vld [vmem:[%s9548_s1 + $0x160] sm:$0xff]  ;;  %v801_v4 = vld [vmem:[%s9548_s1 + $0x188] sm:$0xff] }
 0x1c3   :  { %v314_v15 = vmul.f32 0.2, %v300_v13  ;;  %6321 = vmatprep.mubr.msk.f32.mxu0 %vm327_vm3, %v320_v12  ;;  %v6684_v0 = vpack.c.bf16 %v799_v63, %v797_v62  ;;  %v6686_v3 = vpack.c.bf16 %v798_v2, %v796_v1  ;;  %v803_v5 = vld [vmem:[%s9548_s1 + $0x198] sm:$0xff]  ;;  %v1080_v62 = vld [vmem:[%s9548_s1 + $0x300] sm:$0xff]  ;;  %v1081_v63 = vld [vmem:[%s9548_s1 + $0x310] sm:$0xff] }
 0x1c4   :  { %v323_v16 = vmax.f32 %v305_v10, %v315_v14  ;;  %6322 = vmatmul.mubr.msk.f32.gmra.mrb[12].mxu0 %vm327_vm3, %v321_v9  ;;  %v782_v9 = vld [vmem:[%s9548_s1 + $0xf0] sm:$0xff]  ;;  %v785_v10 = vld [vmem:[%s9548_s1 + $0x108] sm:$0xff]  ;;  %6667 = vmatpush1.bf16.msra.mxu1 %v6666_v6  ;;  %v784_v14 = vld [vmem:[%s9548_s1 + $0x100] sm:$0xff]  ;;  %v6688_v6 = vpack.c.bf16 %v803_v5, %v801_v4 }
 0x1c5   :  { %v322_v17 = vmax.f32 %v300_v13, %v314_v15  ;;  %v6670_v12 = vpack.c.bf16 %v782_v9, %v780_v8  ;;  %6669 = vmatprep.subr.bf16.mxu1 %v6668_v7  ;;  %v6672_v13 = vpack.c.bf16 %v787_v11, %v785_v10  ;;  %v786_v15 = vld [vmem:[%s9548_s1 + $0x110] sm:$0xff]  ;;  %v800_v7 = vld [vmem:[%s9548_s1 + $0x180] sm:$0xff]  ;;  %v9554_v10 = vmov 0.0  }
 0x1c6   :  { %v6674_v18 = vpack.c.bf16 %v786_v15, %v784_v14  ;;  %v802_v8 = vld [vmem:[%s9548_s1 + $0x190] sm:$0xff]  ;;  %881 = vmatprep.mubr.f32.mxu1 %v9554_v10  ;;  %v625_v11 = vld [vmem:[%s9550_s2 + $0x4] ss:$0 sm:$0xff] }
 0x1c7   :  { %6324 = vmatprep.mubr.msk.f32.mxu0 %vm327_vm3, %v322_v17  ;;  %v791_v17 = vld [vmem:[%s9548_s1 + $0x138] sm:$0xff]  ;;  %v6690_v9 = vpack.c.bf16 %v802_v8, %v800_v7  ;;  %v1064_v1 = vld [vmem:[%s9548_s1 + $0x200] sm:$0xff]  ;;  %v1065_v2 = vld [vmem:[%s9548_s1 + $0x210] sm:$0xff] }
 0x1c8   :  { %6325 = vmatmul.mubr.msk.f32.gmra.mrb[14].mxu0 %vm327_vm3, %v323_v16  ;;  %v789_v16 = vld [vmem:[%s9548_s1 + $0x128] sm:$0xff]  ;;  %6671 = vmatpush1.bf16.msra.mxu1 %v6670_v12  ;;  %v1082_v4 = vld [vmem:[%s9548_s1 + $0x320] sm:$0xff]  ;;  %v1083_v5 = vld [vmem:[%s9548_s1 + $0x330] sm:$0xff] }
 0x1c9   :  { %6673 = vmatprep.subr.bf16.mxu1 %v6672_v13  ;;  %v6676_v19 = vpack.c.bf16 %v791_v17, %v789_v16  ;;  %v1066_v7 = vld [vmem:[%s9548_s1 + $0x220] sm:$0xff]  ;;  %v1067_v8 = vld [vmem:[%s9548_s1 + $0x230] sm:$0xff] }
 0x1cc   :  { %6675 = vmatpush1.bf16.msra.mxu1 %v6674_v18 }
 0x1cd   :  { %6677 = vmatprep.subr.bf16.mxu1 %v6676_v19 }
 0x28f   :  { %v6317_v22 = vpop.f32.mrb[8].mxu0 }
 0x290   :  { %v424_v23 = vadd.f32 %v6317_v22, %v326_v21  ;;  %v418_v24 = vpop.f32.mrb[9].mxu0  ;;  %v793_v22 = vld [vmem:[%s9548_s1 + $0x148] sm:$0xff] }
 0x291   :  { %v419_v25 = vadd.f32 %v418_v24, %v326_v21 }
 0x292   :  { %v458_v26 = vmul.f32 0.2, %v424_v23 }
 0x293   :  { %v457_v27 = vmul.f32 0.2, %v419_v25  ;;  %v6320_v28 = vpop.f32.mrb[10].mxu0 }
 0x294   :  { %v434_v29 = vadd.f32 %v6320_v28, %v326_v21  ;;  %v428_v30 = vpop.f32.mrb[11].mxu0  ;;  %v466_v33 = vmax.f32 %v424_v23, %v458_v26  ;;  %v795_v23 = vld [vmem:[%s9548_s1 + $0x158] sm:$0xff]  ;;  %v792_v26 = vld [vmem:[%s9548_s1 + $0x140] sm:$0xff] }
 0x295   :  { %v465_v31 = vmax.f32 %v419_v25, %v457_v27  ;;  %v429_v32 = vadd.f32 %v428_v30, %v326_v21  ;;  %v6680_v25 = vpack.c.bf16 %v795_v23, %v793_v22  ;;  %v794_v27 = vld [vmem:[%s9548_s1 + $0x150] sm:$0xff] }
 0x296   :  { %v460_v34 = vmul.f32 0.2, %v434_v29  ;;  %v6682_v28 = vpack.c.bf16 %v794_v27, %v792_v26 }
 0x297   :  { %v459_v35 = vmul.f32 0.2, %v429_v32  ;;  %v6323_v36 = vpop.f32.mrb[12].mxu0  ;;  %6331 = vmatprep.mubr.msk.f32.mxu0 %vm327_vm3, %v465_v31 }
 0x298   :  { %v444_v37 = vadd.f32 %v6323_v36, %v326_v21  ;;  %v438_v38 = vpop.f32.mrb[13].mxu0  ;;  %6332 = vmatmul.mubr.msk.f32.vlgmr.msra.gmra.mrb[16].mxu0 %vm327_vm3, %v466_v33  ;;  %v468_v41 = vmax.f32 %v434_v29, %v460_v34  ;;  %v475_v29 = vld [vmem:[%s9550_s2 + $0x3] ss:$0 sm:$0xff] }
 0x299   :  { %v467_v39 = vmax.f32 %v429_v32, %v459_v35  ;;  %v439_v40 = vadd.f32 %v438_v38, %v326_v21  ;;  %6655 = vmatpush3.bf16.msra.mxu0 %v6652_v20  ;;  %v788_v20 = vld [vmem:[%s9548_s1 + $0x120] sm:$0xff] }
 0x29a   :  { %v462_v42 = vmul.f32 0.2, %v444_v37  ;;  %6657 = vmatprep.subr.bf16.mxu0 %v6656_v56 }
 0x29b   :  { %v461_v43 = vmul.f32 0.2, %v439_v40  ;;  %v6326_v44 = vpop.f32.mrb[14].mxu0  ;;  %6334 = vmatprep.mubr.msk.f32.mxu0 %vm327_vm3, %v467_v39 }
 0x29c   :  { %v454_v45 = vadd.f32 %v6326_v44, %v326_v21  ;;  %v448_v46 = vpop.f32.mrb[15].mxu0  ;;  %6335 = vmatmul.mubr.msk.f32.gmra.mrb[18].mxu0 %vm327_vm3, %v468_v41  ;;  %v470_v49 = vmax.f32 %v444_v37, %v462_v42 }
 0x29d   :  { %v469_v47 = vmax.f32 %v439_v40, %v461_v43  ;;  %v449_v48 = vadd.f32 %v448_v46, %v326_v21  ;;  %6659 = vmatpush3.bf16.msra.mxu0 %v6656_v56  ;;  %v790_v21 = vld [vmem:[%s9548_s1 + $0x130] sm:$0xff] }
 0x29e   :  { %v464_v50 = vmul.f32 0.2, %v454_v45  ;;  %v6678_v24 = vpack.c.bf16 %v790_v21, %v788_v20 }
 0x29f   :  { %v463_v51 = vmul.f32 0.2, %v449_v48  ;;  %6337 = vmatprep.mubr.msk.f32.mxu0 %vm327_vm3, %v469_v47 }
 0x2a0   :  { %v472_v52 = vmax.f32 %v454_v45, %v464_v50  ;;  %6338 = vmatmul.mubr.msk.f32.gmra.mrb[20].mxu0 %vm327_vm3, %v470_v49  ;;  %6679 = vmatpush1.bf16.msra.mxu1 %v6678_v24 }
 0x2a1   :  { %v471_v53 = vmax.f32 %v449_v48, %v463_v51  ;;  %6681 = vmatprep.subr.bf16.mxu1 %v6680_v25 }
 0x2a3   :  { %6340 = vmatprep.mubr.msk.f32.mxu0 %vm327_vm3, %v471_v53 }
 0x2a4   :  { %6341 = vmatmul.mubr.msk.f32.gmra.mrb[22].mxu0 %vm327_vm3, %v472_v52  ;;  %6683 = vmatpush1.bf16.msra.mxu1 %v6682_v28 }
 0x2a5   :  { %6685 = vmatprep.subr.bf16.mxu1 %v6684_v0  ;;  %v6704_v0 = vpack.c.bf16 %v1081_v63, %v1080_v62 }
 0x2a8   :  { %6687 = vmatpush1.bf16.msra.mxu1 %v6686_v3  ;;  %v6706_v3 = vpack.c.bf16 %v1065_v2, %v1064_v1 }
 0x2a9   :  { %6689 = vmatprep.subr.bf16.mxu1 %v6688_v6  ;;  %v6708_v6 = vpack.c.bf16 %v1083_v5, %v1082_v4 }
 0x2ac   :  { %6691 = vmatpush1.bf16.msra.mxu1 %v6690_v9  ;;  %v6710_v9 = vpack.c.bf16 %v1067_v8, %v1066_v7 }
 0x36b   :  { %v6333_v30 = vpop.f32.mrb[16].mxu0 }
 0x36c   :  { %v572_v31 = vadd.f32 %v6333_v30, %v475_v29  ;;  %v566_v32 = vpop.f32.mrb[17].mxu0 }
 0x36d   :  { %v567_v33 = vadd.f32 %v566_v32, %v475_v29 }
 0x36e   :  { %v606_v34 = vmul.f32 0.2, %v572_v31 }
 0x36f   :  { %v605_v35 = vmul.f32 0.2, %v567_v33  ;;  %v6336_v36 = vpop.f32.mrb[18].mxu0 }
 0x370   :  { %v582_v37 = vadd.f32 %v6336_v36, %v475_v29  ;;  %v576_v38 = vpop.f32.mrb[19].mxu0  ;;  %v614_v41 = vmax.f32 %v572_v31, %v606_v34 }
 0x371   :  { %v613_v39 = vmax.f32 %v567_v33, %v605_v35  ;;  %v577_v40 = vadd.f32 %v576_v38, %v475_v29 }
 0x372   :  { %v608_v42 = vmul.f32 0.2, %v582_v37 }
 0x373   :  { %v607_v43 = vmul.f32 0.2, %v577_v40  ;;  %v6339_v44 = vpop.f32.mrb[20].mxu0  ;;  %6351 = vmatprep.mubr.msk.f32.mxu0 %vm626_vm4, %v613_v39 }
 0x374   :  { %v592_v45 = vadd.f32 %v6339_v44, %v475_v29  ;;  %v586_v46 = vpop.f32.mrb[21].mxu0  ;;  %6352 = vmatmul.mubr.msk.f32.vlgmr.msra.gmra.mrb[24].mxu0 %vm626_vm4, %v614_v41  ;;  %v616_v49 = vmax.f32 %v582_v37, %v608_v42  ;;  %v1074_v44 = vld [vmem:[%s9548_s1 + $0x2a0] sm:$0xff] }
 0x375   :  { %v615_v47 = vmax.f32 %v577_v40, %v607_v43  ;;  %v587_v48 = vadd.f32 %v586_v46, %v475_v29 }
 0x376   :  { %v610_v50 = vmul.f32 0.2, %v592_v45 }
 0x377   :  { %v609_v51 = vmul.f32 0.2, %v587_v48  ;;  %v6342_v52 = vpop.f32.mrb[22].mxu0  ;;  %6354 = vmatprep.mubr.msk.f32.mxu0 %vm626_vm4, %v615_v47  ;;  %v1058_v47 = vld [vmem:[%s9548_s1 + $0x1a0] sm:$0xff] }
 0x378   :  { %v602_v53 = vadd.f32 %v6342_v52, %v475_v29  ;;  %v596_v54 = vpop.f32.mrb[23].mxu0  ;;  %6355 = vmatmul.mubr.msk.f32.gmra.mrb[26].mxu0 %vm626_vm4, %v616_v49  ;;  %v618_v57 = vmax.f32 %v592_v45, %v610_v50  ;;  %v1075_v45 = vld [vmem:[%s9548_s1 + $0x2b0] sm:$0xff]  ;;  %v1076_v50 = vld [vmem:[%s9548_s1 + $0x2c0] sm:$0xff] }
 0x379   :  { %v617_v55 = vmax.f32 %v587_v48, %v609_v51  ;;  %v597_v56 = vadd.f32 %v596_v54, %v475_v29  ;;  %v6692_v46 = vpack.c.bf16 %v1075_v45, %v1074_v44  ;;  %v1059_v48 = vld [vmem:[%s9548_s1 + $0x1b0] sm:$0xff]  ;;  %v1212_v45 = vld [vmem:[%s9548_s1 + $0x440] sm:$0xff] }
 0x37a   :  { %v612_v58 = vmul.f32 0.2, %v602_v53  ;;  %v6694_v49 = vpack.c.bf16 %v1059_v48, %v1058_v47  ;;  %v1077_v51 = vld [vmem:[%s9548_s1 + $0x2d0] sm:$0xff]  ;;  %v807_v48 = vlaneseq }
 0x37b   :  { %v611_v59 = vmul.f32 0.2, %v597_v56  ;;  %6357 = vmatprep.mubr.msk.f32.mxu0 %vm626_vm4, %v617_v55  ;;  %6693 = vmatprep.subr.bf16.mxu0 %v6692_v46  ;;  %v6696_v52 = vpack.c.bf16 %v1077_v51, %v1076_v50  ;;  %v1061_v54 = vld [vmem:[%s9548_s1 + $0x1d0] sm:$0xff]  ;;  %v5897_v51 = vld [vmem:[%s9550_s2 + $0x5] ss:$8 sm:$0x3] }
 0x37c   :  { %6358 = vmatmul.mubr.msk.f32.gmra.mrb[28].mxu0 %vm626_vm4, %v618_v57  ;;  %v620_v61 = vmax.f32 %v602_v53, %v612_v58  ;;  %v1060_v53 = vld [vmem:[%s9548_s1 + $0x1c0] sm:$0xff]  ;;  %v1079_v57 = vld [vmem:[%s9548_s1 + $0x2f0] sm:$0xff] }
 0x37d   :  { %v619_v60 = vmax.f32 %v597_v56, %v611_v59  ;;  %6695 = vmatpush3.bf16.msra.mxu0 %v6694_v49  ;;  %v6698_v55 = vpack.c.bf16 %v1061_v54, %v1060_v53  ;;  %v1078_v56 = vld [vmem:[%s9548_s1 + $0x2e0] sm:$0xff]  ;;  %v1213_v46 = vld [vmem:[%s9548_s1 + $0x450] sm:$0xff]  ;;  %v7530_v49 = vshrl.u32 %v807_v48, 7 }
 0x37e   :  { %6697 = vmatprep.subr.bf16.mxu0 %v6696_v52  ;;  %v6700_v58 = vpack.c.bf16 %v1079_v57, %v1078_v56  ;;  %v1062_v59 = vld [vmem:[%s9548_s1 + $0x1e0] sm:$0xff]  ;;  %v6740_v47 = vpack.c.bf16 %v1213_v46, %v1212_v45 }
 0x37f   :  { %6360 = vmatprep.mubr.msk.f32.mxu0 %vm626_vm4, %v619_v60  ;;  %v1063_v60 = vld [vmem:[%s9548_s1 + $0x1f0] sm:$0xff]  ;;  %v7533_v50 = vsub.s32 0, %v7530_v49  ;;  %v7539_v52 = vsub.s32 1, %v7530_v49 }
 0x380   :  { %6361 = vmatmul.mubr.msk.f32.gmra.mrb[30].mxu0 %vm626_vm4, %v620_v61  ;;  %v6702_v61 = vpack.c.bf16 %v1063_v60, %v1062_v59 }
 0x381   :  { %6699 = vmatpush3.bf16.msra.mxu0 %v6698_v55  ;;  %9557 = vst [vmem:[#allocation2_spill] sm:$0xff] %v7539_v52  ;;  %v7542_v53 = vrot.slane %v5897_v51, %v7533_v50  ;;  %v7545_v54 = vrot.slane %v5897_v51, %v7539_v52 }
 0x382   :  { %6701 = vmatprep.subr.bf16.mxu0 %v6700_v58 }
 0x385   :  { %6703 = vmatpush3.bf16.msra.mxu0 %v6702_v61 }
 0x386   :  { %6705 = vmatprep.subr.bf16.mxu0 %v6704_v0 }
 0x389   :  { %6707 = vmatpush3.bf16.msra.mxu0 %v6706_v3 }
 0x38a   :  { %6709 = vmatprep.subr.bf16.mxu0 %v6708_v6 }
 0x38d   :  { %6711 = vmatpush3.bf16.msra.mxu0 %v6710_v9 }
 0x447   :  { %v6353_v12 = vpop.f32.mrb[24].mxu0 }
 0x448   :  { %v717_v13 = vpop.f32.mrb[25].mxu0  ;;  %v723_v14 = vadd.f32 %v6353_v12, %v625_v11  ;;  %v1085_v12 = vld [vmem:[%s9548_s1 + $0x350] sm:$0xff] }
 0x449   :  { %v718_v15 = vadd.f32 %v717_v13, %v625_v11 }
 0x44a   :  { %v757_v19 = vmul.f32 0.2, %v723_v14 }
 0x44b   :  { %v756_v16 = vmul.f32 0.2, %v718_v15  ;;  %v6356_v17 = vpop.f32.mrb[26].mxu0 }
 0x44c   :  { %v727_v18 = vpop.f32.mrb[27].mxu0  ;;  %v765_v24 = vmax.f32 %v723_v14, %v757_v19  ;;  %v733_v25 = vadd.f32 %v6356_v17, %v625_v11  ;;  %v1068_v14 = vld [vmem:[%s9548_s1 + $0x240] sm:$0xff] }
 0x44d   :  { %v764_v20 = vmax.f32 %v718_v15, %v756_v16  ;;  %v728_v21 = vadd.f32 %v727_v18, %v625_v11  ;;  %v1069_v15 = vld [vmem:[%s9548_s1 + $0x250] sm:$0xff]  ;;  %v1086_v17 = vld [vmem:[%s9548_s1 + $0x360] sm:$0xff] }
 0x44e   :  { %v759_v29 = vmul.f32 0.2, %v733_v25  ;;  %v6714_v16 = vpack.c.bf16 %v1069_v15, %v1068_v14  ;;  %v1087_v18 = vld [vmem:[%s9548_s1 + $0x370] sm:$0xff] }
 0x44f   :  { %v6359_v22 = vpop.f32.mrb[28].mxu0  ;;  %882 = vmatmul.mubr.f32.vlgmr.msra.gmra.mrb[8].mxu1 %v764_v20  ;;  %v758_v26 = vmul.f32 0.2, %v728_v21  ;;  %v6716_v19 = vpack.c.bf16 %v1087_v18, %v1086_v17  ;;  %v1070_v20 = vld [vmem:[%s9548_s1 + $0x260] sm:$0xff] }
 0x450   :  { %v737_v23 = vpop.f32.mrb[29].mxu0  ;;  %887 = vmatprep.mubr.f32.mxu1 %v9554_v10  ;;  %v767_v32 = vmax.f32 %v733_v25, %v759_v29  ;;  %v743_v33 = vadd.f32 %v6359_v22, %v625_v11  ;;  %v1202_v29 = vld [vmem:[%s9548_s1 + $0x3a0] sm:$0xff] }
 0x451   :  { %v766_v30 = vmax.f32 %v728_v21, %v758_v26  ;;  %v738_v31 = vadd.f32 %v737_v23, %v625_v11  ;;  %v1071_v21 = vld [vmem:[%s9548_s1 + $0x270] sm:$0xff]  ;;  %v1088_v23 = vld [vmem:[%s9548_s1 + $0x380] sm:$0xff] }
 0x452   :  { %v761_v35 = vmul.f32 0.2, %v743_v33  ;;  %v6718_v22 = vpack.c.bf16 %v1071_v21, %v1070_v20  ;;  %v1072_v26 = vld [vmem:[%s9548_s1 + $0x280] sm:$0xff] }
 0x453   :  { %v6362_v27 = vpop.f32.mrb[30].mxu0  ;;  %888 = vmatmul.mubr.f32.gmra.mrb[10].mxu1 %v765_v24  ;;  %v760_v34 = vmul.f32 0.2, %v738_v31  ;;  %v1089_v24 = vld [vmem:[%s9548_s1 + $0x390] sm:$0xff] }
 0x454   :  { %v747_v28 = vpop.f32.mrb[31].mxu0  ;;  %893 = vmatprep.mubr.f32.mxu1 %v9554_v10  ;;  %v769_v38 = vmax.f32 %v743_v33, %v761_v35  ;;  %v753_v39 = vadd.f32 %v6362_v27, %v625_v11  ;;  %v6720_v25 = vpack.c.bf16 %v1089_v24, %v1088_v23  ;;  %v1073_v27 = vld [vmem:[%s9548_s1 + $0x290] sm:$0xff] }
 0x455   :  { %v768_v36 = vmax.f32 %v738_v31, %v760_v34  ;;  %v748_v37 = vadd.f32 %v747_v28, %v625_v11  ;;  %v1084_v11 = vld [vmem:[%s9548_s1 + $0x340] sm:$0xff]  ;;  %v6722_v28 = vpack.c.bf16 %v1073_v27, %v1072_v26  ;;  %v1205_v34 = vld [vmem:[%s9548_s1 + $0x3d0] sm:$0xff] }
 0x456   :  { %v763_v41 = vmul.f32 0.2, %v753_v39  ;;  %v6712_v13 = vpack.c.bf16 %v1085_v12, %v1084_v11  ;;  %v1204_v31 = vld [vmem:[%s9548_s1 + $0x3c0] sm:$0xff] }
 0x457   :  { %894 = vmatmul.mubr.f32.gmra.mrb[12].mxu1 %v766_v30  ;;  %v762_v40 = vmul.f32 0.2, %v748_v37  ;;  %v1203_v30 = vld [vmem:[%s9548_s1 + $0x3b0] sm:$0xff]  ;;  %v6728_v35 = vpack.c.bf16 %v1205_v34, %v1204_v31 }
 0x458   :  { %899 = vmatprep.mubr.f32.mxu1 %v9554_v10  ;;  %v771_v43 = vmax.f32 %v753_v39, %v763_v41  ;;  %6713 = vmatprep.subr.bf16.mxu0 %v6712_v13  ;;  %v6725_v33 = vpack.c.bf16 %v1203_v30, %v1202_v29  ;;  %v1208_v39 = vld [vmem:[%s9548_s1 + $0x400] sm:$0xff] }
 0x459   :  { %v770_v42 = vmax.f32 %v748_v37, %v762_v40  ;;  %6715 = vmatpush3.bf16.msra.mxu0 %v6714_v16  ;;  %v1207_v37 = vld [vmem:[%s9548_s1 + $0x3f0] sm:$0xff] }
 0x45a   :  { %6717 = vmatprep.subr.bf16.mxu0 %v6716_v19  ;;  %v1209_v40 = vld [vmem:[%s9548_s1 + $0x410] sm:$0xff] }
 0x45b   :  { %900 = vmatmul.mubr.f32.gmra.mrb[14].mxu1 %v767_v32  ;;  %v9553_v32 = vmov 0.0|0.0   ;;  %v6734_v41 = vpack.c.bf16 %v1209_v40, %v1208_v39 }
 0x45c   :  { %905 = vmatprep.mubr.f32.mxu1 %v9554_v10  ;;  %6724 = vmatprep.subr.bf16.mxu1 %v9553_v32 }
 0x45d   :  { %6719 = vmatpush3.bf16.msra.mxu0 %v6718_v22  ;;  %6726 = vmatpush3.bf16.msra.mxu1 %v6725_v33 }
 0x45e   :  { %6721 = vmatprep.subr.bf16.mxu0 %v6720_v25  ;;  %6727 = vmatprep.subr.bf16.mxu1 %v9553_v32 }
 0x45f   :  { %906 = vmatmul.mubr.f32.gmra.mrb[16].mxu1 %v768_v36  ;;  %v1206_v36 = vld [vmem:[%s9548_s1 + $0x3e0] sm:$0xff] }
 0x460   :  { %911 = vmatprep.mubr.f32.mxu1 %v9554_v10 }
 0x461   :  { %6723 = vmatpush3.bf16.msra.mxu0 %v6722_v28  ;;  %6729 = vmatpush3.bf16.msra.mxu1 %v6728_v35 }
 0x462   :  { %6748 = vmatprep.subr.bf16.mxu0 %v9553_v32  ;;  %6730 = vmatprep.subr.bf16.mxu1 %v9553_v32 }
 0x463   :  { %912 = vmatmul.mubr.f32.gmra.mrb[18].mxu1 %v769_v38  ;;  %v6731_v38 = vpack.c.bf16 %v1207_v37, %v1206_v36 }
 0x464   :  { %917 = vmatprep.mubr.f32.mxu1 %v9554_v10 }
 0x465   :  { %6732 = vmatpush3.bf16.msra.mxu1 %v6731_v38 }
 0x466   :  { %6733 = vmatprep.subr.bf16.mxu1 %v9553_v32 }
 0x467   :  { %918 = vmatmul.mubr.f32.gmra.mrb[20].mxu1 %v770_v42  ;;  %v1210_v42 = vld [vmem:[%s9548_s1 + $0x420] sm:$0xff] }
 0x468   :  { %923 = vmatprep.mubr.f32.mxu1 %v9554_v10 }
 0x469   :  { %6735 = vmatpush3.bf16.msra.mxu1 %v6734_v41 }
 0x46a   :  { %6736 = vmatprep.subr.bf16.mxu1 %v9553_v32 }
 0x46b   :  { %924 = vmatmul.mubr.f32.gmra.mrb[22].mxu1 %v771_v43  ;;  %v1211_v43 = vld [vmem:[%s9548_s1 + $0x430] sm:$0xff] }
 0x46c   :  { %v6737_v44 = vpack.c.bf16 %v1211_v43, %v1210_v42  ;;  %6395 = vmatprep.mubr.msk.f32.mxu1 %vm7122_vm12, %v9554_v10 }
 0x46e   :  { %6738 = vmatpush3.bf16.msra.mxu1 %v6737_v44 }
 0x46f   :  { %6739 = vmatprep.subr.bf16.mxu1 %v9553_v32 }
 0x472   :  { %6741 = vmatpush3.bf16.msra.mxu1 %v6740_v47 }
 0x473   :  { %6742 = vmatprep.subr.bf16.mxu1 %v9553_v32 }
 0x522   :  { %v883_v55 = vpop.f32.mrb[8].mxu1 }
 0x523   :  { %v884_v56 = vadd.f32 %v883_v55, %v7542_v53  ;;  %v885_v57 = vpop.f32.mrb[9].mxu1 }
 0x524   :  { %v886_v58 = vadd.f32 %v885_v57, %v7545_v54 }
 0x525   :  { %v930_v59 = vmul.f32 0.2, %v884_v56 }
 0x526   :  { %v931_v60 = vmul.f32 0.2, %v886_v58  ;;  %v889_v61 = vpop.f32.mrb[10].mxu1 }
 0x527   :  { %v946_v62 = vmax.f32 %v884_v56, %v930_v59  ;;  %v890_v63 = vadd.f32 %v889_v61, %v7542_v53  ;;  %v891_v0 = vpop.f32.mrb[11].mxu1 }
 0x528   :  { %v947_v1 = vmax.f32 %v886_v58, %v931_v60  ;;  %v892_v2 = vadd.f32 %v891_v0, %v7545_v54 }
 0x529   :  { %v962_v3 = vrot.slane %v946_v62, 4  ;;  %v932_v4 = vmul.f32 0.2, %v890_v63 }
 0x52a   :  { %v968_v5 = vrot.slane %v947_v1, 4  ;;  %v933_v6 = vmul.f32 0.2, %v892_v2  ;;  %v895_v7 = vpop.f32.mrb[12].mxu1 }
 0x52b   :  { %v963_v8 = vmax.f32 %v946_v62, %v962_v3  ;;  %v948_v9 = vmax.f32 %v890_v63, %v932_v4  ;;  %v896_v11 = vadd.f32 %v895_v7, %v7542_v53  ;;  %v897_v12 = vpop.f32.mrb[13].mxu1 }
 0x52c   :  { %v969_v13 = vmax.f32 %v947_v1, %v968_v5  ;;  %v949_v14 = vmax.f32 %v892_v2, %v933_v6  ;;  %v898_v15 = vadd.f32 %v897_v12, %v7545_v54 }
 0x52d   :  { %v964_v16 = vrot.slane %v963_v8, 2  ;;  %v974_v17 = vrot.slane %v948_v9, 4  ;;  %v934_v18 = vmul.f32 0.2, %v896_v11 }
 0x52e   :  { %v970_v19 = vrot.slane %v969_v13, 2  ;;  %v980_v20 = vrot.slane %v949_v14, 4  ;;  %v935_v21 = vmul.f32 0.2, %v898_v15  ;;  %v901_v22 = vpop.f32.mrb[14].mxu1 }
 0x52f   :  { %v965_v23 = vmax.f32 %v963_v8, %v964_v16  ;;  %v975_v24 = vmax.f32 %v948_v9, %v974_v17  ;;  %v950_v25 = vmax.f32 %v896_v11, %v934_v18  ;;  %v902_v26 = vadd.f32 %v901_v22, %v7542_v53  ;;  %v903_v27 = vpop.f32.mrb[15].mxu1 }
 0x530   :  { %v971_v28 = vmax.f32 %v969_v13, %v970_v19  ;;  %v981_v29 = vmax.f32 %v949_v14, %v980_v20  ;;  %v951_v30 = vmax.f32 %v898_v15, %v935_v21  ;;  %v904_v31 = vadd.f32 %v903_v27, %v7545_v54 }
 0x531   :  { %v966_v33 = vrot.slane %v965_v23, 1  ;;  %v976_v34 = vrot.slane %v975_v24, 2  ;;  %v986_v35 = vrot.slane %v950_v25, 4  ;;  %v936_v36 = vmul.f32 0.2, %v902_v26 }
 0x532   :  { %v972_v37 = vrot.slane %v971_v28, 1  ;;  %v982_v38 = vrot.slane %v981_v29, 2  ;;  %v992_v39 = vrot.slane %v951_v30, 4  ;;  %v937_v40 = vmul.f32 0.2, %v904_v31  ;;  %v907_v41 = vpop.f32.mrb[16].mxu1 }
 0x533   :  { %v967_v42 = vmax.f32 %v965_v23, %v966_v33  ;;  %v977_v43 = vmax.f32 %v975_v24, %v976_v34  ;;  %v987_v44 = vmax.f32 %v950_v25, %v986_v35  ;;  %v952_v45 = vmax.f32 %v902_v26, %v936_v36  ;;  %v909_v46 = vpop.f32.mrb[17].mxu1 }
 0x534   :  { %v973_v47 = vmax.f32 %v971_v28, %v972_v37  ;;  %v983_v48 = vmax.f32 %v981_v29, %v982_v38  ;;  %v993_v51 = vmax.f32 %v951_v30, %v992_v39  ;;  %v953_v55 = vmax.f32 %v904_v31, %v937_v40 }
 0x535   :  { %v978_v56 = vrot.slane %v977_v43, 1  ;;  %v988_v57 = vrot.slane %v987_v44, 2  ;;  %v998_v58 = vrot.slane %v952_v45, 4  ;;  %v908_v59 = vadd.f32 %v907_v41, %v7542_v53 }
 0x536   :  { %v984_v60 = vrot.slane %v983_v48, 1  ;;  %v994_v61 = vrot.slane %v993_v51, 2  ;;  %v1004_v62 = vrot.slane %v953_v55, 4  ;;  %v910_v63 = vadd.f32 %v909_v46, %v7545_v54  ;;  %v913_v0 = vpop.f32.mrb[18].mxu1 }
 0x537   :  { %v979_v1 = vmax.f32 %v977_v43, %v978_v56  ;;  %v989_v2 = vmax.f32 %v987_v44, %v988_v57  ;;  %v999_v3 = vmax.f32 %v952_v45, %v998_v58  ;;  %v938_v4 = vmul.f32 0.2, %v908_v59  ;;  %v915_v5 = vpop.f32.mrb[19].mxu1 }
 0x538   :  { %v985_v6 = vmax.f32 %v983_v48, %v984_v60  ;;  %v995_v7 = vmax.f32 %v993_v51, %v994_v61  ;;  %v1005_v8 = vmax.f32 %v953_v55, %v1004_v62  ;;  %v939_v9 = vmul.f32 0.2, %v910_v63 }
 0x539   :  { %v1108_v11 = vsel %vm1107_vm5, %v979_v1, %v967_v42  ;;  %v990_v12 = vrot.slane %v989_v2, 1  ;;  %v1000_v13 = vrot.slane %v999_v3, 2  ;;  %v954_v14 = vmax.f32 %v908_v59, %v938_v4 }
 0x53a   :  { %v1121_v15 = vsel %vm1107_vm5, %v985_v6, %v973_v47  ;;  %v996_v16 = vrot.slane %v995_v7, 1  ;;  %v1006_v17 = vrot.slane %v1005_v8, 2  ;;  %v955_v18 = vmax.f32 %v910_v63, %v939_v9  ;;  %v919_v19 = vpop.f32.mrb[20].mxu1 }
 0x53b   :  { %v991_v20 = vmax.f32 %v989_v2, %v990_v12  ;;  %v1001_v21 = vmax.f32 %v999_v3, %v1000_v13  ;;  %v1010_v22 = vrot.slane %v954_v14, 4  ;;  %v914_v23 = vadd.f32 %v913_v0, %v7542_v53  ;;  %v921_v24 = vpop.f32.mrb[21].mxu1 }
 0x53c   :  { %v997_v25 = vmax.f32 %v995_v7, %v996_v16  ;;  %v1007_v26 = vmax.f32 %v1005_v8, %v1006_v17  ;;  %v1016_v27 = vrot.slane %v955_v18, 4  ;;  %v916_v28 = vadd.f32 %v915_v5, %v7545_v54 }
 0x53d   :  { %v1110_v29 = vsel %vm1109_vm6, %v991_v20, %v1108_v11  ;;  %v1002_v30 = vrot.slane %v1001_v21, 1  ;;  %v1011_v31 = vmax.f32 %v954_v14, %v1010_v22  ;;  %v940_v33 = vmul.f32 0.2, %v914_v23 }
 0x53e   :  { %v1008_v34 = vrot.slane %v1007_v26, 1  ;;  %v1017_v35 = vmax.f32 %v955_v18, %v1016_v27  ;;  %v941_v36 = vmul.f32 0.2, %v916_v28  ;;  %v920_v37 = vadd.f32 %v919_v19, %v7542_v53  ;;  %v925_v38 = vpop.f32.mrb[22].mxu1 }
 0x53f   :  { %v1003_v39 = vmax.f32 %v1001_v21, %v1002_v30  ;;  %v1012_v40 = vrot.slane %v1011_v31, 2  ;;  %v956_v41 = vmax.f32 %v914_v23, %v940_v33  ;;  %v922_v42 = vadd.f32 %v921_v24, %v7545_v54  ;;  %v927_v43 = vpop.f32.mrb[23].mxu1 }
 0x540   :  { %v1009_v44 = vmax.f32 %v1007_v26, %v1008_v34  ;;  %v1018_v45 = vrot.slane %v1017_v35, 2  ;;  %v957_v46 = vmax.f32 %v916_v28, %v941_v36  ;;  %v942_v47 = vmul.f32 0.2, %v920_v37 }
 0x541   :  { %v1112_v48 = vsel %vm1111_vm7, %v1003_v39, %v1110_v29  ;;  %v1013_v51 = vmax.f32 %v1011_v31, %v1012_v40  ;;  %v1022_v55 = vrot.slane %v956_v41, 4  ;;  %v943_v56 = vmul.f32 0.2, %v922_v42 }
 0x542   :  { %v1019_v57 = vmax.f32 %v1017_v35, %v1018_v45  ;;  %v1028_v58 = vrot.slane %v957_v46, 4  ;;  %v958_v59 = vmax.f32 %v920_v37, %v942_v47  ;;  %v926_v60 = vadd.f32 %v925_v38, %v7542_v53 }
 0x543   :  { %v1014_v61 = vrot.slane %v1013_v51, 1  ;;  %v1023_v62 = vmax.f32 %v956_v41, %v1022_v55  ;;  %v959_v63 = vmax.f32 %v922_v42, %v943_v56  ;;  %v928_v0 = vadd.f32 %v927_v43, %v7545_v54  ;;  %v1214_v56 = vld [vmem:[%s9548_s1 + $0x460] sm:$0xff] }
 0x544   :  { %v1020_v1 = vrot.slane %v1019_v57, 1  ;;  %v1029_v2 = vmax.f32 %v957_v46, %v1028_v58  ;;  %v1034_v3 = vrot.slane %v958_v59, 4  ;;  %v944_v4 = vmul.f32 0.2, %v926_v60 }
 0x545   :  { %v1015_v5 = vmax.f32 %v1013_v51, %v1014_v61  ;;  %v1024_v6 = vrot.slane %v1023_v62, 2  ;;  %v1040_v7 = vrot.slane %v959_v63, 4  ;;  %v945_v8 = vmul.f32 0.2, %v928_v0 }
 0x546   :  { %v1021_v9 = vmax.f32 %v1019_v57, %v1020_v1  ;;  %v1030_v11 = vrot.slane %v1029_v2, 2  ;;  %v1035_v12 = vmax.f32 %v958_v59, %v1034_v3  ;;  %v960_v13 = vmax.f32 %v926_v60, %v944_v4  ;;  %v1215_v57 = vld [vmem:[%s9548_s1 + $0x470] sm:$0xff]  ;;  %v1216_v59 = vld [vmem:[%s9548_s1 + $0x480] sm:$0xff] }
 0x547   :  { %v1025_v14 = vmax.f32 %v1023_v62, %v1024_v6  ;;  %v1041_v53 = vmax.f32 %v959_v63, %v1040_v7  ;;  %v961_v16 = vmax.f32 %v928_v0, %v945_v8  ;;  %v1122_v17 = vsel %vm1109_vm6, %v997_v25, %v1121_v15  ;;  %v1217_v60 = vld [vmem:[%s9548_s1 + $0x490] sm:$0xff]  ;;  %v1291_v62 = vld [vmem:[%s9548_s1 + $0x4a0] sm:$0xff] }
 0x548   :  { %v1031_v18 = vmax.f32 %v1029_v2, %v1030_v11  ;;  %v1036_v19 = vrot.slane %v1035_v12, 2  ;;  %v1046_v54 = vrot.slane %v960_v13, 4  ;;  %v1123_v20 = vsel %vm1111_vm7, %v1009_v44, %v1122_v17  ;;  %v1292_v63 = vld [vmem:[%s9548_s1 + $0x4b0] sm:$0xff]  ;;  %v1293_v0 = vld [vmem:[%s9548_s1 + $0x4c0] sm:$0xff] }
 0x549   :  { %v1026_v21 = vrot.slane %v1025_v14, 1  ;;  %v1042_v22 = vrot.slane %v1041_v53, 2  ;;  %v1052_v23 = vrot.slane %v961_v16, 4  ;;  %v1124_v24 = vsel %vm1113_vm8, %v1021_v9, %v1123_v20  ;;  %v1294_v2 = vld [vmem:[%s9548_s1 + $0x4d0] sm:$0xff]  ;;  %v7113_v20 = vld [vmem:[%s9549_s0 + $0x8] sm:$0xff] }
 0x54a   :  { %v1032_v26 = vrot.slane %v1031_v18, 1  ;;  %v1037_v27 = vmax.f32 %v1035_v12, %v1036_v19  ;;  %v1047_v28 = vmax.f32 %v960_v13, %v1046_v54  ;;  %v1114_v29 = vsel %vm1113_vm8, %v1015_v5, %v1112_v48  ;;  %v1090_v5 = vld [vmem:[%s9550_s2 + $0x6] ss:$0 sm:$0xff]  ;;  %v1296_v13 = vld [vmem:[%s9548_s1 + $0x4f0] sm:$0xff] }
 0x54b   :  { %v1027_v30 = vmax.f32 %v1025_v14, %v1026_v21  ;;  %v1043_v31 = vmax.f32 %v1041_v53, %v1042_v22  ;;  %v1053_v33 = vmax.f32 %v961_v16, %v1052_v23  ;;  %v6743_v58 = vpack.c.bf16 %v1215_v57, %v1214_v56  ;;  %v1295_v12 = vld [vmem:[%s9548_s1 + $0x4e0] sm:$0xff]  ;;  %v1298_v16 = vld [vmem:[%s9548_s1 + $0x510] sm:$0xff]  ;;  %v7114_v22 = vld [vmem:[%s9549_s0 + $0x18] sm:$0xff] }
 0x54c   :  { %v1033_v34 = vmax.f32 %v1031_v18, %v1032_v26  ;;  %v1038_v15 = vrot.slane %v1037_v27, 1  ;;  %v1048_v25 = vrot.slane %v1047_v28, 2  ;;  %v6746_v61 = vpack.c.bf16 %v1217_v60, %v1216_v59  ;;  %v1297_v53 = vld [vmem:[%s9548_s1 + $0x500] sm:$0xff]  ;;  %v7115_v23 = vld [vmem:[%s9549_s0 + $0x10] sm:$0xff]  ;;  %v7117_v26 = vld [vmem:[%s9549_s0 + $0x28] sm:$0xff] }
 0x54d   :  { %v1044_v35 = vrot.slane %v1043_v31, 1  ;;  %v1054_v36 = vrot.slane %v1053_v33, 2  ;;  %v1116_v37 = vsel %vm1115_vm9, %v1027_v30, %v1114_v29  ;;  %6744 = vmatpush3.bf16.msra.mxu1 %v6743_v58  ;;  %v6749_v1 = vpack.c.bf16 %v1292_v63, %v1291_v62  ;;  %v7112_v54 = vld [vmem:[%s9549_s0] sm:$0xff] }
 0x54e   :  { %v1039_v38 = vmax.f32 %v1037_v27, %v1038_v15  ;;  %v1049_v39 = vmax.f32 %v1047_v28, %v1048_v25  ;;  %v1125_v40 = vsel %vm1115_vm9, %v1033_v34, %v1124_v24  ;;  %6745 = vmatprep.subr.bf16.mxu1 %v9553_v32  ;;  %v6752_v3 = vpack.c.bf16 %v1294_v2, %v1293_v0  ;;  %v7116_v24 = vld [vmem:[%s9549_s0 + $0x20] sm:$0xff]  ;;  %v7118_v27 = vld [vmem:[%s9549_s0 + $0x38] sm:$0xff]  ;;  %v7119_v28 = vld [vmem:[%s9549_s0 + $0x30] sm:$0xff] }
 0x54f   :  { %v1055_v41 = vmax.f32 %v1053_v33, %v1054_v36  ;;  %v1045_v42 = vmax.f32 %v1043_v31, %v1044_v35  ;;  %v6755_v14 = vpack.c.bf16 %v1296_v13, %v1295_v12  ;;  %v6758_v17 = vpack.c.bf16 %v1298_v16, %v1297_v53  ;;  %v1218_v30 = vld [vmem:[%s9550_s2 + $0x7] ss:$0 sm:$0xff]  ;;  %v1744_v62 = vld [vmem:[%s9548_s1 + $0x520] sm:$0xf] }
 0x550   :  { %v1050_v43 = vrot.slane %v1049_v39, 1  ;;  %v1118_v44 = vsel %vm1117_vm10, %v1039_v38, %v1116_v37  ;;  %v7123_v18 = vmov 2   ;;  %v7124_v19 = vmov 1  }
 0x551   :  { %v1056_v45 = vrot.slane %v1055_v41, 1  ;;  %v1126_v46 = vsel %vm1117_vm10, %v1045_v42, %v1125_v40  ;;  %6747 = vmatpush3.bf16.msra.mxu1 %v6746_v61  ;;  %6967 = vset.pattern.permute.xlu1 %v7123_v18  ;;  %v7125_v21 = vmov 3   ;;  %v7126_v29 = vmov 0  }
 0x552   :  { %v1051_v47 = vmax.f32 %v1049_v39, %v1050_v43  ;;  %6966 = vset.pattern.permute.xlu0 %v7124_v19  ;;  %1585 = vperm.xlu1 %6967, %v7112_v54   ;;  %v7127_v39 = vmov 1966171168   ;;  %v1299_v43 = vld [vmem:[%s9550_s2 + $0x10] ss:$0 sm:$0xff] }
 0x553   :  { %v1057_v48 = vmax.f32 %v1055_v41, %v1056_v45  ;;  %1505 = vperm.xlu0 %6966, %v7112_v54   ;;  %v1377_v40 = vunpack.c.l.s4 %v7127_v39 }
 0x554   :  { %v1120_v51 = vsel %vm1119_vm11, %v1051_v47, %v1118_v44 }
 0x555   :  { %v1127_v55 = vsel %vm1119_vm11, %v1057_v48, %v1126_v46  ;;  %v1378_v41 = vunpack.c.0.s8 %v1377_v40 }
 0x556   :  { %1194 = vmatprep.mubr.f32.mxu0 %v1127_v55  ;;  %1589 = vperm.xlu1 %6967, %v7113_v20  }
 0x557   :  { %1195 = vmatmul.mubr.f32.vlgmr.msra.gmra.mrb[32].mxu0 %v1120_v51  ;;  %1509 = vperm.xlu0 %6966, %v7113_v20   ;;  %v7675_v44 = vsub.s32 %v1378_v41, %v7530_v49 }
 0x558   :  { %6414 = vmatprep.mubr.msk.f32.mxu0 %vm7122_vm12, %v9554_v10  ;;  %6750 = vmatpush3.bf16.msra.mxu0 %v6749_v1 }
 0x559   :  { %6751 = vmatprep.subr.bf16.mxu0 %v9553_v32 }
 0x55a   :  { %6968 = vset.pattern.permute.xlu1 %v7125_v21 }
 0x55b   :  { %1517 = vperm.xlu0 %6966, %v7114_v22   ;;  %1669 = vperm.xlu1 %6968, %v7113_v20  }
 0x55c   :  { %6753 = vmatpush3.bf16.msra.mxu0 %v6752_v3 }
 0x55d   :  { %6754 = vmatprep.subr.bf16.mxu0 %v9553_v32 }
 0x55f   :  { %6970 = vset.pattern.permute.xlu0 %v7125_v21  ;;  %6969 = vset.pattern.permute.xlu1 %v7124_v19 }
 0x560   :  { %6756 = vmatpush3.bf16.msra.mxu0 %v6755_v14  ;;  %1665 = vperm.xlu0 %6970, %v7112_v54  }
 0x561   :  { %6757 = vmatprep.subr.bf16.mxu0 %v9553_v32  ;;  %1513 = vperm.xlu1 %6969, %v7115_v23  }
 0x564   :  { %6759 = vmatpush3.bf16.msra.mxu0 %v6758_v17  ;;  %1673 = vperm.xlu0 %6970, %v7115_v23  }
 0x565   :  { %6971 = vset.pattern.permute.xlu1 %v7123_v18  ;;  %6417 = vmatprep.subr.msk.mxu0 %vm51_vm0, %v1744_v62 }
 0x566   :  { %1593 = vperm.xlu1 %6971, %v7115_v23  }
 0x568   :  { %1681 = vperm.xlu0 %6970, %v7116_v24  }
 0x56a   :  { %1597 = vperm.xlu1 %6971, %v7114_v22  }
 0x56c   :  { %6975 = vset.pattern.permute.xlu0 %v7124_v19 }
 0x56d   :  { %1525 = vperm.xlu0 %6975, %v7117_v26  }
 0x56e   :  { %6972 = vset.pattern.permute.xlu1 %v7125_v21 }
 0x56f   :  { %1677 = vperm.xlu1 %6972, %v7114_v22  }
 0x571   :  { %1533 = vperm.xlu0 %6975, %v7118_v27  }
 0x573   :  { %6973 = vset.pattern.permute.xlu1 %v7124_v19 }
 0x574   :  { %1521 = vperm.xlu1 %6973, %v7116_v24  }
 0x575   :  { %6979 = vset.pattern.permute.xlu0 %v7125_v21 }
 0x576   :  { %1689 = vperm.xlu0 %6979, %v7119_v28  }
 0x578   :  { %6974 = vset.pattern.permute.xlu1 %v7123_v18 }
 0x579   :  { %1601 = vperm.xlu1 %6974, %v7116_v24  }
 0x57a   :  { %6982 = vset.pattern.permute.xlu0 %v7126_v29 }
 0x57b   :  { %1429 = vperm.xlu0 %6982, %v7113_v20  }
 0x57d   :  { %1605 = vperm.xlu1 %6974, %v7117_v26  }
 0x57f   :  { %1441 = vperm.xlu0 %6982, %v7116_v24  }
 0x581   :  { %6976 = vset.pattern.permute.xlu1 %v7125_v21 }
 0x582   :  { %1685 = vperm.xlu1 %6976, %v7117_v26  }
 0x583   :  { %1449 = vperm.xlu0 %6982, %v7119_v28  }
 0x586   :  { %6977 = vset.pattern.permute.xlu1 %v7124_v19 }
 0x587   :  { %1529 = vperm.xlu1 %6977, %v7119_v28   ;;  %6984 = vset.pattern.permute.xlu0 %v7123_v18 }
 0x58b   :  { %6978 = vset.pattern.permute.xlu1 %v7123_v18 }
 0x58c   :  { %1609 = vperm.xlu1 %6978, %v7119_v28  }
 0x590   :  { %1613 = vperm.xlu1 %6978, %v7118_v27  }
 0x594   :  { %6980 = vset.pattern.permute.xlu1 %v7125_v21 }
 0x595   :  { %1693 = vperm.xlu1 %6980, %v7118_v27  }
 0x599   :  { %6981 = vset.pattern.permute.xlu1 %v7126_v29 }
 0x59a   :  { %1425 = vperm.xlu1 %6981, %v7112_v54  }
 0x59e   :  { %1433 = vperm.xlu1 %6981, %v7115_v23  }
 0x5a2   :  { %1437 = vperm.xlu1 %6981, %v7114_v22  }
 0x5a6   :  { %1445 = vperm.xlu1 %6981, %v7117_v26  }
 0x5aa   :  { %1453 = vperm.xlu1 %6981, %v7118_v27  }
 0x5ae   :  { %6983 = vset.pattern.permute.xlu1 %v7124_v19 }
 0x5d1   :  { %v1586_v35 = vpop.permute.xlu1 %1585 }
 0x5d2   :  { %v1506_v45 = vpop.permute.xlu0 %1505 }
 0x5d5   :  { %v1590_v36 = vpop.permute.xlu1 %1589 }
 0x5d6   :  { %v1510_v56 = vpop.permute.xlu0 %1509 }
 0x5da   :  { %v1670_v37 = vpop.permute.xlu1 %1669  ;;  %v1518_v0 = vpop.permute.xlu0 %1517 }
 0x5e0   :  { %v1514_v38 = vpop.permute.xlu1 %1513 }
 0x5e5   :  { %v1594_v42 = vpop.permute.xlu1 %1593 }
 0x5e9   :  { %v1598_v47 = vpop.permute.xlu1 %1597 }
 0x5ee   :  { %v1678_v59 = vpop.permute.xlu1 %1677 }
 0x5f3   :  { %v1522_v2 = vpop.permute.xlu1 %1521 }
 0x5f8   :  { %v1602_v12 = vpop.permute.xlu1 %1601 }
 0x5fc   :  { %v1606_v22 = vpop.permute.xlu1 %1605 }
 0x62a   :  { %v6082_v4 = vpop.f32.mrb[32].mxu0 }
 0x62b   :  { %v6083_v6 = vpop.f32.mrb[33].mxu0 }
 0x62c   :  { %v6084_v7 = vadd.f32 %v6083_v6, %v6082_v4 }
 0x62e   :  { %v1197_v8 = vadd.f32 %v6084_v7, %v1090_v5 }
 0x630   :  { %v1200_v9 = vmul.f32 0.2, %v1197_v8 }
 0x632   :  { %v1201_v11 = vmax.f32 %v1197_v8, %v1200_v9  ;;  %v1666_v8 = vpop.permute.xlu0 %1665 }
 0x634   :  { %6396 = vmatmul.mubr.f32.vlgmr.msra.gmra.mrb[24].mxu1 %v1201_v11 }
 0x636   :  { %v1674_v17 = vpop.permute.xlu0 %1673 }
 0x63a   :  { %v1682_v28 = vpop.permute.xlu0 %1681 }
 0x707   :  { %v1285_v31 = vpop.f32.mrb[24].mxu1 }
 0x708   :  { %v1286_v33 = vadd.f32 %v1285_v31, %v1218_v30  ;;  %v6397_v34 = vpop.f32.mrb[25].mxu1 }
 0x70a   :  { %v1289_v15 = vmul.f32 0.2, %v1286_v33 }
 0x70c   :  { %v1290_v25 = vmax.f32 %v1286_v33, %v1289_v15  ;;  %v1686_v33 = vpop.permute.xlu1 %1685 }
 0x70e   :  { %6415 = vmatmul.mubr.msk.f32.vlgmr.msra.gmra.mrb[34].mxu0 %vm1300_vm13, %v1290_v25 }
 0x70f   :  { %6418 = vmatpush3.msk.msra.mxu0 %vm51_vm0, %v1744_v62 }
 0x7e1   :  { %v1370_v46 = vpop.f32.mrb[34].mxu0 }
 0x7e2   :  { %v1371_v48 = vadd.f32 %v1370_v46, %v1299_v43  ;;  %v6416_v51 = vpop.f32.mrb[35].mxu0 }
 0x7e4   :  { %v1382_v55 = vrot.slane %v1371_v48, %v7675_v44  ;;  %v1375_v5 = vcombine.high %v1371_v48, %v1371_v48 }
 0x7e6   :  { %v1390_v57 = vcombine.high %v1382_v55, %v1382_v55  ;;  %v1398_v58 = vrot.slane %v1382_v55, %v7675_v44  ;;  %v1389_v13 = vrot.slane %v1375_v5, %v7675_v44 }
 0x7e8   :  { %v1412_v60 = vrot.slane %v1390_v57, %v7675_v44  ;;  %v7681_v61 = vrot.slane %v1398_v58, %v7533_v50  ;;  %v1420_v3 = vcombine.high %v1398_v58, %v1398_v58  ;;  %v1391_v54 = vcombine.high %v1389_v13, %v1389_v13 }
 0x7e9   :  { %v1405_v23 = vrot.slane %v1389_v13, %v7675_v44 }
 0x7ea   :  { %v7684_v49 = vrot.slane %v1412_v60, %v7533_v50  ;;  %v1536_v63 = vmul.f32 %v1506_v45, %v7681_v61  ;;  %v1616_v4 = vmul.f32 %v1586_v35, %v7681_v61  ;;  %v1422_v6 = vcombine.high %v1412_v60, %v1412_v60  ;;  %v1526_v35 = vpop.permute.xlu0 %1525 }
 0x7eb   :  { %v7699_v9 = vrot.slane %v1420_v3, %v7533_v50  ;;  %v1696_v11 = vmul.f32 %v1666_v8, %v7681_v61  ;;  %v1419_v26 = vrot.slane %v1391_v54, %v7675_v44  ;;  %v7720_v30 = vrot.slane %v1405_v23, %v7533_v50 }
 0x7ec   :  { %1552 = vrot.lane.b32.xlu0 %v1536_v63, %s7128_s28  ;;  %v1537_v1 = vmul.f32 %v1510_v56, %v7684_v49  ;;  %v1617_v7 = vmul.f32 %v1590_v36, %v7684_v49  ;;  %v7705_v14 = vrot.slane %v1422_v6, %v7533_v50  ;;  %v1697_v53 = vmul.f32 %v1670_v37, %v7684_v49  ;;  %v1530_v37 = vpop.permute.xlu1 %1529 }
 0x7ed   :  { %v1538_v16 = vmul.f32 %v1514_v38, %v7699_v9  ;;  %v1618_v24 = vmul.f32 %v1594_v42, %v7699_v9  ;;  %v1698_v31 = vmul.f32 %v1674_v17, %v7699_v9  ;;  %v7725_v34 = vrot.slane %v1419_v26, %v7533_v50 }
 0x7ee   :  { %1554 = vrot.lane.b32.xlu1 %v1537_v1, %s7128_s28  ;;  %v1539_v20 = vmul.f32 %v1518_v0, %v7705_v14  ;;  %v1619_v27 = vmul.f32 %v1598_v47, %v7705_v14  ;;  %v1699_v15 = vmul.f32 %v1678_v59, %v7705_v14  ;;  %v1540_v25 = vmul.f32 %v1522_v2, %v7720_v30  ;;  %v1534_v51 = vpop.permute.xlu0 %1533 }
 0x7ef   :  { %v1541_v36 = vmul.f32 %v1526_v35, %v7725_v34  ;;  %v1421_v38 = vcombine.high %v1405_v23, %v1405_v23  ;;  %v1620_v39 = vmul.f32 %v1602_v12, %v7720_v30  ;;  %v1423_v40 = vcombine.high %v1419_v26, %v1419_v26 }
 0x7f0   :  { %1632 = vrot.lane.b32.xlu0 %v1616_v4, %s7129_s29  ;;  %v1621_v41 = vmul.f32 %v1606_v22, %v7725_v34  ;;  %v1700_v43 = vmul.f32 %v1682_v28, %v7720_v30  ;;  %v1610_v45 = vpop.permute.xlu1 %1609  ;;  %v1701_v47 = vmul.f32 %v1686_v33, %v7725_v34 }
 0x7f1   :  { %v7738_v42 = vrot.slane %v1421_v38, %v7533_v50  ;;  %v7743_v46 = vrot.slane %v1423_v40, %v7533_v50 }
 0x7f2   :  { %1634 = vrot.lane.b32.xlu1 %v1617_v7, %s7129_s29  ;;  %v1690_v59 = vpop.permute.xlu0 %1689 }
 0x7f3   :  { %v1542_v48 = vmul.f32 %v1530_v37, %v7738_v42  ;;  %v1543_v55 = vmul.f32 %v1534_v51, %v7743_v46  ;;  %v1622_v57 = vmul.f32 %v1610_v45, %v7738_v42  ;;  %v1702_v60 = vmul.f32 %v1690_v59, %v7738_v42 }
 0x7f4   :  { %1712 = vrot.lane.b32.xlu0 %v1696_v11, %s7130_s30  ;;  %v1614_v56 = vpop.permute.xlu1 %1613 }
 0x7f5   :  { %v1623_v58 = vmul.f32 %v1614_v56, %v7743_v46 }
 0x7f6   :  { %1714 = vrot.lane.b32.xlu1 %v1697_v53, %s7130_s30  ;;  %v1430_v2 = vpop.permute.xlu0 %1429 }
 0x7f7   :  { %v1497_v53 = vmul.f32 %v7684_v49, %v1430_v2 }
 0x7f8   :  { %1556 = vrot.lane.b32.xlu0 %v1538_v16, %s7128_s28  ;;  %v1694_v62 = vpop.permute.xlu1 %1693 }
 0x7f9   :  { %v1703_v63 = vmul.f32 %v1694_v62, %v7743_v46 }
 0x7fa   :  { %1558 = vrot.lane.b32.xlu1 %v1539_v20, %s7128_s28  ;;  %v1442_v4 = vpop.permute.xlu0 %1441 }
 0x7fc   :  { %1636 = vrot.lane.b32.xlu0 %v1618_v24, %s7129_s29  ;;  %v1426_v0 = vpop.permute.xlu1 %1425 }
 0x7fd   :  { %v1496_v12 = vmul.f32 %v7681_v61, %v1426_v0 }
 0x7fe   :  { %1638 = vrot.lane.b32.xlu1 %v1619_v27, %s7129_s29  ;;  %v1450_v6 = vpop.permute.xlu0 %1449 }
 0x800   :  { %1716 = vrot.lane.b32.xlu0 %v1698_v31, %s7130_s30  ;;  %v1434_v1 = vpop.permute.xlu1 %1433 }
 0x801   :  { %v1498_v61 = vmul.f32 %v7699_v9, %v1434_v1  ;;  %v1500_v9 = vmul.f32 %v7720_v30, %v1442_v4  ;;  %v1502_v30 = vmul.f32 %v7738_v42, %v1450_v6  ;;  %v1894_v42 = vld [vmem:[%s9548_s1 + $0x530] sm:$0xff] }
 0x802   :  { %1718 = vrot.lane.b32.xlu1 %v1699_v15, %s7130_s30  ;;  %6431 = vmatprep.subr.mxu1 %v1894_v42 }
 0x803   :  { %6432 = vmatpush3.msra.mxu1 %v1894_v42 }
 0x804   :  { %1560 = vrot.lane.b32.xlu0 %v1540_v25, %s7128_s28  ;;  %v1438_v3 = vpop.permute.xlu1 %1437 }
 0x805   :  { %v1499_v49 = vmul.f32 %v7705_v14, %v1438_v3 }
 0x806   :  { %1562 = vrot.lane.b32.xlu1 %v1541_v36, %s7128_s28 }
 0x808   :  { %1640 = vrot.lane.b32.xlu0 %v1620_v39, %s7129_s29  ;;  %v1446_v5 = vpop.permute.xlu1 %1445 }
 0x809   :  { %v1501_v14 = vmul.f32 %v7725_v34, %v1446_v5 }
 0x80a   :  { %1642 = vrot.lane.b32.xlu1 %v1621_v41, %s7129_s29 }
 0x80c   :  { %1720 = vrot.lane.b32.xlu0 %v1700_v43, %s7130_s30  ;;  %v1454_v7 = vpop.permute.xlu1 %1453 }
 0x80d   :  { %v1503_v34 = vmul.f32 %v7743_v46, %v1454_v7  ;;  %v1745_v46 = vld [vmem:[%s9550_s2 + $0x11] ss:$0 sm:$0xff] }
 0x80e   :  { %1722 = vrot.lane.b32.xlu1 %v1701_v47, %s7130_s30 }
 0x810   :  { %1564 = vrot.lane.b32.xlu0 %v1542_v48, %s7128_s28 }
 0x812   :  { %1566 = vrot.lane.b32.xlu1 %v1543_v55, %s7128_s28 }
 0x814   :  { %1644 = vrot.lane.b32.xlu0 %v1622_v57, %s7129_s29 }
 0x816   :  { %1646 = vrot.lane.b32.xlu1 %v1623_v58, %s7129_s29 }
 0x818   :  { %1724 = vrot.lane.b32.xlu0 %v1702_v60, %s7130_s30 }
 0x81a   :  { %1726 = vrot.lane.b32.xlu1 %v1703_v63, %s7130_s30 }
 0x85e   :  { %v1553_v8 = vpop.permute.xlu0 %1552 }
 0x85f   :  { %v1576_v16 = vadd.f32 %v1553_v8, %v1496_v12 }
 0x860   :  { %v1555_v11 = vpop.permute.xlu1 %1554 }
 0x861   :  { %v1577_v54 = vadd.f32 %v1555_v11, %v1497_v53 }
 0x862   :  { %v1633_v13 = vpop.permute.xlu0 %1632 }
 0x863   :  { %v1656_v20 = vadd.f32 %v1633_v13, %v1576_v16 }
 0x864   :  { %v1635_v17 = vpop.permute.xlu1 %1634 }
 0x865   :  { %v1657_v23 = vadd.f32 %v1635_v17, %v1577_v54 }
 0x866   :  { %v1713_v22 = vpop.permute.xlu0 %1712 }
 0x867   :  { %v1736_v24 = vadd.f32 %v1713_v22, %v1656_v20 }
 0x868   :  { %v1715_v26 = vpop.permute.xlu1 %1714 }
 0x869   :  { %v1737_v27 = vadd.f32 %v1715_v26, %v1657_v23  ;;  %6419 = vmatprep.mubr.msk.f32.mxu0 %vm26_vm1, %v1736_v24 }
 0x86a   :  { %v1557_v28 = vpop.permute.xlu0 %1556 }
 0x86b   :  { %6420 = vmatmul.mubr.msk.f32.vlgmr.msra.gmra.mrb[36].mxu0 %vm26_vm1, %v1737_v27  ;;  %v1578_v15 = vadd.f32 %v1557_v28, %v1498_v61 }
 0x86c   :  { %v1559_v31 = vpop.permute.xlu1 %1558 }
 0x86d   :  { %v1579_v35 = vadd.f32 %v1559_v31, %v1499_v49 }
 0x86e   :  { %v1637_v33 = vpop.permute.xlu0 %1636 }
 0x86f   :  { %v1658_v36 = vadd.f32 %v1637_v33, %v1578_v15 }
 0x870   :  { %v1639_v25 = vpop.permute.xlu1 %1638 }
 0x871   :  { %v1659_v38 = vadd.f32 %v1639_v25, %v1579_v35 }
 0x872   :  { %v1717_v37 = vpop.permute.xlu0 %1716 }
 0x873   :  { %v1738_v39 = vadd.f32 %v1717_v37, %v1658_v36 }
 0x874   :  { %v1719_v40 = vpop.permute.xlu1 %1718 }
 0x875   :  { %v1739_v41 = vadd.f32 %v1719_v40, %v1659_v38  ;;  %6422 = vmatprep.mubr.msk.f32.mxu0 %vm26_vm1, %v1738_v39 }
 0x876   :  { %v1561_v43 = vpop.permute.xlu0 %1560 }
 0x877   :  { %6423 = vmatmul.mubr.msk.f32.gmra.mrb[38].mxu0 %vm26_vm1, %v1739_v41  ;;  %v1580_v48 = vadd.f32 %v1561_v43, %v1500_v9 }
 0x878   :  { %v1563_v45 = vpop.permute.xlu1 %1562 }
 0x879   :  { %v1581_v55 = vadd.f32 %v1563_v45, %v1501_v14 }
 0x87a   :  { %v1641_v47 = vpop.permute.xlu0 %1640 }
 0x87b   :  { %v1660_v56 = vadd.f32 %v1641_v47, %v1580_v48 }
 0x87c   :  { %v1643_v51 = vpop.permute.xlu1 %1642 }
 0x87d   :  { %v1661_v58 = vadd.f32 %v1643_v51, %v1581_v55  ;;  %v2041_v55 = vld [vmem:[%s9548_s1 + $0x540] sm:$0xff] }
 0x87e   :  { %v1721_v57 = vpop.permute.xlu0 %1720 }
 0x87f   :  { %v1740_v59 = vadd.f32 %v1721_v57, %v1660_v56  ;;  %v2042_v56 = vld [vmem:[%s9548_s1 + $0x550] sm:$0xff] }
 0x880   :  { %v1723_v60 = vpop.permute.xlu1 %1722  ;;  %v6760_v57 = vpack.c.bf16 %v2042_v56, %v2041_v55 }
 0x881   :  { %v1741_v62 = vadd.f32 %v1723_v60, %v1661_v58  ;;  %6425 = vmatprep.mubr.msk.f32.mxu0 %vm26_vm1, %v1740_v59  ;;  %v1895_v58 = vld [vmem:[%s9550_s2 + $0x12] ss:$0 sm:$0xff] }
 0x882   :  { %v1565_v63 = vpop.permute.xlu0 %1564  ;;  %6761 = vmatprep.subr.bf16.mxu0 %v6760_v57 }
 0x883   :  { %6426 = vmatmul.mubr.msk.f32.gmra.mrb[40].mxu0 %vm26_vm1, %v1741_v62  ;;  %v1582_v2 = vadd.f32 %v1565_v63, %v1502_v30 }
 0x884   :  { %v1567_v0 = vpop.permute.xlu1 %1566  ;;  %6763 = vmatpush3.bf16.msra.mxu0 %v6760_v57 }
 0x885   :  { %v1583_v4 = vadd.f32 %v1567_v0, %v1503_v34 }
 0x886   :  { %v1645_v1 = vpop.permute.xlu0 %1644 }
 0x887   :  { %v1662_v5 = vadd.f32 %v1645_v1, %v1582_v2 }
 0x888   :  { %v1647_v3 = vpop.permute.xlu1 %1646 }
 0x889   :  { %v1663_v11 = vadd.f32 %v1647_v3, %v1583_v4 }
 0x88a   :  { %v1725_v8 = vpop.permute.xlu0 %1724 }
 0x88b   :  { %v1742_v12 = vadd.f32 %v1725_v8, %v1662_v5 }
 0x88c   :  { %v1727_v13 = vpop.permute.xlu1 %1726 }
 0x88d   :  { %v1743_v53 = vadd.f32 %v1727_v13, %v1663_v11  ;;  %6428 = vmatprep.mubr.msk.f32.mxu0 %vm26_vm1, %v1742_v12 }
 0x88f   :  { %6429 = vmatmul.mubr.msk.f32.gmra.mrb[42].mxu0 %vm26_vm1, %v1743_v53 }
 0x93e   :  { %v6421_v6 = vpop.f32.mrb[36].mxu0 }
 0x93f   :  { %v1845_v7 = vadd.f32 %v6421_v6, %v1745_v46  ;;  %v1839_v16 = vpop.f32.mrb[37].mxu0 }
 0x940   :  { %v1840_v17 = vadd.f32 %v1839_v16, %v1745_v46 }
 0x941   :  { %v1879_v54 = vmul.f32 0.2, %v1845_v7 }
 0x942   :  { %v1878_v20 = vmul.f32 0.2, %v1840_v17 }
 0x943   :  { %v1887_v23 = vmax.f32 %v1845_v7, %v1879_v54 }
 0x944   :  { %v1886_v22 = vmax.f32 %v1840_v17, %v1878_v20 }
 0x946   :  { %6433 = vmatprep.mubr.msk.f32.mxu1 %vm178_vm2, %v1886_v22 }
 0x947   :  { %6434 = vmatmul.mubr.msk.f32.vlgmr.msra.gmra.mrb[26].mxu1 %vm178_vm2, %v1887_v23 }
 0x94a   :  { %v6424_v24 = vpop.f32.mrb[38].mxu0 }
 0x94b   :  { %v1855_v26 = vadd.f32 %v6424_v24, %v1745_v46  ;;  %v1849_v27 = vpop.f32.mrb[39].mxu0 }
 0x94c   :  { %v1850_v28 = vadd.f32 %v1849_v27, %v1745_v46 }
 0x94d   :  { %v1881_v31 = vmul.f32 0.2, %v1855_v26 }
 0x94e   :  { %v1880_v61 = vmul.f32 0.2, %v1850_v28 }
 0x94f   :  { %v1889_v49 = vmax.f32 %v1855_v26, %v1881_v31 }
 0x950   :  { %v1888_v33 = vmax.f32 %v1850_v28, %v1880_v61  ;;  %v2189_v61 = vld [vmem:[%s9548_s1 + $0x560] sm:$0xff] }
 0x951   :  { %6461 = vmatprep.subr.mxu1 %v2189_v61 }
 0x952   :  { %6436 = vmatprep.mubr.msk.f32.mxu1 %vm178_vm2, %v1888_v33  ;;  %6462 = vmatpush3.msra.mxu1 %v2189_v61  ;;  %v2043_v33 = vld [vmem:[%s9550_s2 + $0x13] ss:$0 sm:$0xff] }
 0x953   :  { %6437 = vmatmul.mubr.msk.f32.gmra.mrb[28].mxu1 %vm178_vm2, %v1889_v49 }
 0x956   :  { %v6427_v15 = vpop.f32.mrb[40].mxu0 }
 0x957   :  { %v1865_v25 = vadd.f32 %v6427_v15, %v1745_v46  ;;  %v1859_v35 = vpop.f32.mrb[41].mxu0 }
 0x958   :  { %v1860_v36 = vadd.f32 %v1859_v35, %v1745_v46 }
 0x959   :  { %v1883_v37 = vmul.f32 0.2, %v1865_v25 }
 0x95a   :  { %v1882_v38 = vmul.f32 0.2, %v1860_v36 }
 0x95b   :  { %v1891_v40 = vmax.f32 %v1865_v25, %v1883_v37 }
 0x95c   :  { %v1890_v39 = vmax.f32 %v1860_v36, %v1882_v38 }
 0x95e   :  { %6439 = vmatprep.mubr.msk.f32.mxu1 %vm178_vm2, %v1890_v39 }
 0x95f   :  { %6440 = vmatmul.mubr.msk.f32.gmra.mrb[30].mxu1 %vm178_vm2, %v1891_v40 }
 0x962   :  { %v6430_v41 = vpop.f32.mrb[42].mxu0 }
 0x963   :  { %v1875_v43 = vadd.f32 %v6430_v41, %v1745_v46  ;;  %v1869_v45 = vpop.f32.mrb[43].mxu0 }
 0x964   :  { %v1870_v9 = vadd.f32 %v1869_v45, %v1745_v46 }
 0x965   :  { %v1885_v47 = vmul.f32 0.2, %v1875_v43 }
 0x966   :  { %v1884_v14 = vmul.f32 0.2, %v1870_v9 }
 0x967   :  { %v1893_v51 = vmax.f32 %v1875_v43, %v1885_v47 }
 0x968   :  { %v1892_v48 = vmax.f32 %v1870_v9, %v1884_v14 }
 0x96a   :  { %6442 = vmatprep.mubr.msk.f32.mxu1 %vm178_vm2, %v1892_v48 }
 0x96b   :  { %6443 = vmatmul.mubr.msk.f32.gmra.mrb[32].mxu1 %vm178_vm2, %v1893_v51 }
 0xa1a   :  { %v6435_v59 = vpop.f32.mrb[26].mxu1 }
 0xa1b   :  { %v1992_v60 = vadd.f32 %v6435_v59, %v1895_v58  ;;  %v1986_v62 = vpop.f32.mrb[27].mxu1 }
 0xa1c   :  { %v1987_v63 = vadd.f32 %v1986_v62, %v1895_v58 }
 0xa1d   :  { %v2026_v0 = vmul.f32 0.2, %v1992_v60 }
 0xa1e   :  { %v2025_v30 = vmul.f32 0.2, %v1987_v63 }
 0xa1f   :  { %v2034_v34 = vmax.f32 %v1992_v60, %v2026_v0 }
 0xa20   :  { %v2033_v1 = vmax.f32 %v1987_v63, %v2025_v30 }
 0xa22   :  { %6449 = vmatprep.mubr.msk.f32.mxu0 %vm327_vm3, %v2033_v1 }
 0xa23   :  { %6450 = vmatmul.mubr.msk.f32.vlgmr.msra.gmra.mrb[44].mxu0 %vm327_vm3, %v2034_v34 }
 0xa26   :  { %v6438_v2 = vpop.f32.mrb[28].mxu1 }
 0xa27   :  { %v2002_v3 = vadd.f32 %v6438_v2, %v1895_v58  ;;  %v1996_v4 = vpop.f32.mrb[29].mxu1 }
 0xa28   :  { %v1997_v5 = vadd.f32 %v1996_v4, %v1895_v58 }
 0xa29   :  { %v2028_v8 = vmul.f32 0.2, %v2002_v3 }
 0xa2a   :  { %v2027_v11 = vmul.f32 0.2, %v1997_v5 }
 0xa2b   :  { %v2036_v13 = vmax.f32 %v2002_v3, %v2028_v8  ;;  %v2337_v8 = vld [vmem:[%s9548_s1 + $0x580] sm:$0xff] }
 0xa2c   :  { %v2035_v12 = vmax.f32 %v1997_v5, %v2027_v11  ;;  %v2336_v5 = vld [vmem:[%s9548_s1 + $0x570] sm:$0xff] }
 0xa2d   :  { %v6764_v11 = vpack.c.bf16 %v2337_v8, %v2336_v5 }
 0xa2e   :  { %6452 = vmatprep.mubr.msk.f32.mxu0 %vm327_vm3, %v2035_v12  ;;  %v7830_v12 = vld [vmem:[%s9550_s2 + $0x14] ss:$0 sm:$0xff] }
 0xa2f   :  { %6453 = vmatmul.mubr.msk.f32.gmra.mrb[46].mxu0 %vm327_vm3, %v2036_v13  ;;  %6765 = vmatprep.subr.bf16.mxu0 %v6764_v11 }
 0xa30   :  { %6767 = vmatpush3.bf16.msra.mxu0 %v6764_v11 }
 0xa32   :  { %v6441_v53 = vpop.f32.mrb[30].mxu1 }
 0xa33   :  { %v2012_v42 = vadd.f32 %v6441_v53, %v1895_v58  ;;  %v2006_v46 = vpop.f32.mrb[31].mxu1 }
 0xa34   :  { %v2007_v6 = vadd.f32 %v2006_v46, %v1895_v58 }
 0xa35   :  { %v2030_v7 = vmul.f32 0.2, %v2012_v42 }
 0xa36   :  { %v2029_v16 = vmul.f32 0.2, %v2007_v6 }
 0xa37   :  { %v2038_v54 = vmax.f32 %v2012_v42, %v2030_v7 }
 0xa38   :  { %v2037_v17 = vmax.f32 %v2007_v6, %v2029_v16 }
 0xa3a   :  { %6455 = vmatprep.mubr.msk.f32.mxu0 %vm327_vm3, %v2037_v17 }
 0xa3b   :  { %6456 = vmatmul.mubr.msk.f32.gmra.mrb[48].mxu0 %vm327_vm3, %v2038_v54  ;;  %v7131_v54 = vmov 6  }
 0xa3e   :  { %v6444_v20 = vpop.f32.mrb[32].mxu1 }
 0xa3f   :  { %v2022_v22 = vadd.f32 %v6444_v20, %v1895_v58  ;;  %v2016_v23 = vpop.f32.mrb[33].mxu1 }
 0xa40   :  { %v2017_v24 = vadd.f32 %v2016_v23, %v1895_v58 }
 0xa41   :  { %v2032_v26 = vmul.f32 0.2, %v2022_v22 }
 0xa42   :  { %v2031_v27 = vmul.f32 0.2, %v2017_v24 }
 0xa43   :  { %v2040_v31 = vmax.f32 %v2022_v22, %v2032_v26 }
 0xa44   :  { %v2039_v28 = vmax.f32 %v2017_v24, %v2031_v27 }
 0xa46   :  { %6458 = vmatprep.mubr.msk.f32.mxu0 %vm327_vm3, %v2039_v28  ;;  %v7132_v28 = vmov 9  }
 0xa47   :  { %6459 = vmatmul.mubr.msk.f32.gmra.mrb[50].mxu0 %vm327_vm3, %v2040_v31  ;;  %v7133_v31 = vmov 4  }
 0xaf6   :  { %v6451_v49 = vpop.f32.mrb[44].mxu0 }
 0xaf7   :  { %v2140_v15 = vadd.f32 %v6451_v49, %v2043_v33  ;;  %v2134_v25 = vpop.f32.mrb[45].mxu0  ;;  %v7134_v49 = vmov 11  }
 0xaf8   :  { %v2135_v35 = vadd.f32 %v2134_v25, %v2043_v33 }
 0xaf9   :  { %v2174_v36 = vmul.f32 0.2, %v2140_v15 }
 0xafa   :  { %v2173_v37 = vmul.f32 0.2, %v2135_v35 }
 0xafb   :  { %v2182_v39 = vmax.f32 %v2140_v15, %v2174_v36  ;;  %v7135_v15 = vmov 5  }
 0xafc   :  { %v2181_v38 = vmax.f32 %v2135_v35, %v2173_v37 }
 0xafe   :  { %6463 = vmatprep.mubr.msk.f32.mxu1 %vm178_vm2, %v2181_v38  ;;  %v7136_v38 = vmov 13  }
 0xaff   :  { %6464 = vmatmul.mubr.msk.f32.vlgmr.msra.gmra.mrb[34].mxu1 %vm178_vm2, %v2182_v39  ;;  %v7137_v39 = vmov 7  }
 0xb02   :  { %v6454_v40 = vpop.f32.mrb[46].mxu0 }
 0xb03   :  { %v2150_v41 = vadd.f32 %v6454_v40, %v2043_v33  ;;  %v2144_v43 = vpop.f32.mrb[47].mxu0 }
 0xb04   :  { %v2145_v45 = vadd.f32 %v2144_v43, %v2043_v33 }
 0xb05   :  { %v2176_v9 = vmul.f32 0.2, %v2150_v41 }
 0xb06   :  { %v2175_v47 = vmul.f32 0.2, %v2145_v45 }
 0xb07   :  { %v2184_v48 = vmax.f32 %v2150_v41, %v2176_v9  ;;  %v7138_v9 = vmov 10  }
 0xb08   :  { %v2183_v14 = vmax.f32 %v2145_v45, %v2175_v47 }
 0xb0a   :  { %6466 = vmatprep.mubr.msk.f32.mxu1 %vm178_vm2, %v2183_v14  ;;  %v7139_v14 = vmov 12  }
 0xb0b   :  { %6467 = vmatmul.mubr.msk.f32.gmra.mrb[36].mxu1 %vm178_vm2, %v2184_v48 }
 0xb0e   :  { %v6457_v51 = vpop.f32.mrb[48].mxu0 }
 0xb0f   :  { %v2160_v55 = vadd.f32 %v6457_v51, %v2043_v33  ;;  %v2154_v56 = vpop.f32.mrb[49].mxu0 }
 0xb10   :  { %v2155_v57 = vadd.f32 %v2154_v56, %v2043_v33 }
 0xb11   :  { %v2178_v58 = vmul.f32 0.2, %v2160_v55 }
 0xb12   :  { %v2177_v59 = vmul.f32 0.2, %v2155_v57 }
 0xb13   :  { %v2186_v62 = vmax.f32 %v2160_v55, %v2178_v58 }
 0xb14   :  { %v2185_v60 = vmax.f32 %v2155_v57, %v2177_v59  ;;  %v7140_v59 = vmov 14  }
 0xb16   :  { %6469 = vmatprep.mubr.msk.f32.mxu1 %vm178_vm2, %v2185_v60 }
 0xb17   :  { %6470 = vmatmul.mubr.msk.f32.gmra.mrb[38].mxu1 %vm178_vm2, %v2186_v62  ;;  %v7141_v62 = vmov 15  }
 0xb1a   :  { %v6460_v63 = vpop.f32.mrb[50].mxu0 }
 0xb1b   :  { %v2170_v0 = vadd.f32 %v6460_v63, %v2043_v33  ;;  %v2164_v30 = vpop.f32.mrb[51].mxu0  ;;  %v7142_v63 = vmov 8  }
 0xb1c   :  { %v2165_v1 = vadd.f32 %v2164_v30, %v2043_v33  ;;  %v8048_v30 = vld [vmem:[%s9550_s2 + $0x15] ss:$0 sm:$0xff] }
 0xb1d   :  { %v2180_v34 = vmul.f32 0.2, %v2170_v0 }
 0xb1e   :  { %v2179_v2 = vmul.f32 0.2, %v2165_v1 }
 0xb1f   :  { %v2188_v4 = vmax.f32 %v2170_v0, %v2180_v34  ;;  %v2484_v0 = vld [vmem:[%s9548_s1 + $0x590] sm:$0xff] }
 0xb20   :  { %v2187_v3 = vmax.f32 %v2165_v1, %v2179_v2  ;;  %6491 = vmatprep.subr.mxu1 %v2484_v0 }
 0xb21   :  { %6492 = vmatpush3.msra.mxu1 %v2484_v0 }
 0xb22   :  { %6472 = vmatprep.mubr.msk.f32.mxu1 %vm178_vm2, %v2187_v3 }
 0xb23   :  { %6473 = vmatmul.mubr.msk.f32.gmra.mrb[40].mxu1 %vm178_vm2, %v2188_v4 }
 0xbd2   :  { %v6465_v13 = vpop.f32.mrb[34].mxu1 }
 0xbd3   :  { %v2287_v53 = vadd.f32 %v6465_v13, %v7830_v12  ;;  %v2281_v42 = vpop.f32.mrb[35].mxu1 }
 0xbd4   :  { %v2282_v46 = vadd.f32 %v2281_v42, %v7830_v12 }
 0xbd5   :  { %v2321_v6 = vmul.f32 0.2, %v2287_v53 }
 0xbd6   :  { %v2320_v7 = vmul.f32 0.2, %v2282_v46 }
 0xbd7   :  { %v7834_v16 = vmax.f32 %v2287_v53, %v2321_v6 }
 0xbd8   :  { %v7836_v17 = vmax.f32 %v2282_v46, %v2320_v7 }
 0xbd9   :  { %3907 = vperm.xlu0 %6984, %v7834_v16   ;;  %3827 = vperm.xlu1 %6983, %v7834_v16  }
 0xbda   :  { %6479 = vmatprep.mubr.msk.f32.mxu0 %vm327_vm3, %v7836_v17 }
 0xbdb   :  { %6480 = vmatmul.mubr.msk.f32.vlgmr.msra.gmra.mrb[52].mxu0 %vm327_vm3, %v7834_v16 }
 0xbdd   :  { %6988 = vset.pattern.permute.xlu0 %v7131_v54  ;;  %6985 = vset.pattern.permute.xlu1 %v7125_v21 }
 0xbde   :  { %4227 = vperm.xlu0 %6988, %v7834_v16   ;;  %3987 = vperm.xlu1 %6985, %v7834_v16   ;;  %v6468_v20 = vpop.f32.mrb[36].mxu1 }
 0xbdf   :  { %v2297_v22 = vadd.f32 %v6468_v20, %v7830_v12  ;;  %v2291_v23 = vpop.f32.mrb[37].mxu1 }
 0xbe0   :  { %v2292_v24 = vadd.f32 %v2291_v23, %v7830_v12 }
 0xbe1   :  { %v2323_v26 = vmul.f32 0.2, %v2297_v22 }
 0xbe2   :  { %v2322_v27 = vmul.f32 0.2, %v2292_v24  ;;  %6990 = vset.pattern.permute.xlu0 %v7132_v28  ;;  %6986 = vset.pattern.permute.xlu1 %v7133_v31 }
 0xbe3   :  { %4525 = vperm.xlu0 %6990, %v7834_v16   ;;  %4067 = vperm.xlu1 %6986, %v7834_v16   ;;  %v7856_v33 = vmax.f32 %v2297_v22, %v2323_v26 }
 0xbe4   :  { %v7854_v61 = vmax.f32 %v2292_v24, %v2322_v27 }
 0xbe6   :  { %6482 = vmatprep.mubr.msk.f32.mxu0 %vm327_vm3, %v7854_v61 }
 0xbe7   :  { %6992 = vset.pattern.permute.xlu0 %v7134_v49  ;;  %6987 = vset.pattern.permute.xlu1 %v7135_v15 }
 0xbe8   :  { %6483 = vmatmul.mubr.msk.f32.gmra.mrb[54].mxu0 %vm327_vm3, %v7856_v33  ;;  %4685 = vperm.xlu0 %6992, %v7834_v16  }
 0xbe9   :  { %4147 = vperm.xlu1 %6987, %v7834_v16  }
 0xbea   :  { %v6471_v25 = vpop.f32.mrb[38].mxu1 }
 0xbeb   :  { %v2307_v35 = vadd.f32 %v6471_v25, %v7830_v12  ;;  %v2301_v36 = vpop.f32.mrb[39].mxu1 }
 0xbec   :  { %v2302_v37 = vadd.f32 %v2301_v36, %v7830_v12  ;;  %6994 = vset.pattern.permute.xlu0 %v7136_v38 }
 0xbed   :  { %6989 = vset.pattern.permute.xlu1 %v7137_v39  ;;  %4845 = vperm.xlu0 %6994, %v7834_v16   ;;  %v2325_v40 = vmul.f32 0.2, %v2307_v35 }
 0xbee   :  { %v2324_v41 = vmul.f32 0.2, %v2302_v37  ;;  %4307 = vperm.xlu1 %6989, %v7834_v16  }
 0xbef   :  { %v7875_v45 = vmax.f32 %v2307_v35, %v2325_v40 }
 0xbf0   :  { %v7872_v43 = vmax.f32 %v2302_v37, %v2324_v41 }
 0xbf1   :  { %6999 = vset.pattern.permute.xlu0 %v7124_v19 }
 0xbf2   :  { %6991 = vset.pattern.permute.xlu1 %v7138_v9  ;;  %3823 = vperm.xlu0 %6999, %v7836_v17  }
 0xbf3   :  { %4605 = vperm.xlu1 %6991, %v7834_v16   ;;  %6485 = vmatprep.mubr.msk.f32.mxu0 %vm327_vm3, %v7872_v43 }
 0xbf4   :  { %6486 = vmatmul.mubr.msk.f32.gmra.mrb[56].mxu0 %vm327_vm3, %v7875_v45 }
 0xbf6   :  { %v6474_v47 = vpop.f32.mrb[40].mxu1  ;;  %7002 = vset.pattern.permute.xlu0 %v7133_v31 }
 0xbf7   :  { %6993 = vset.pattern.permute.xlu1 %v7139_v14  ;;  %v2317_v48 = vadd.f32 %v6474_v47, %v7830_v12  ;;  %v2311_v51 = vpop.f32.mrb[41].mxu1  ;;  %4063 = vperm.xlu0 %7002, %v7836_v17  }
 0xbf8   :  { %4765 = vperm.xlu1 %6993, %v7834_v16   ;;  %v2312_v55 = vadd.f32 %v2311_v51, %v7830_v12 }
 0xbf9   :  { %v2327_v56 = vmul.f32 0.2, %v2317_v48 }
 0xbfa   :  { %v2326_v57 = vmul.f32 0.2, %v2312_v55 }
 0xbfb   :  { %7003 = vset.pattern.permute.xlu0 %v7135_v15  ;;  %v7895_v60 = vmax.f32 %v2317_v48, %v2327_v56 }
 0xbfc   :  { %v7891_v58 = vmax.f32 %v2312_v55, %v2326_v57  ;;  %6995 = vset.pattern.permute.xlu1 %v7140_v59  ;;  %4143 = vperm.xlu0 %7003, %v7836_v17  }
 0xbfd   :  { %4925 = vperm.xlu1 %6995, %v7834_v16  }
 0xbfe   :  { %6488 = vmatprep.mubr.msk.f32.mxu0 %vm327_vm3, %v7891_v58 }
 0xbff   :  { %6489 = vmatmul.mubr.msk.f32.gmra.mrb[58].mxu0 %vm327_vm3, %v7895_v60 }
 0xc00   :  { %7006 = vset.pattern.permute.xlu0 %v7132_v28 }
 0xc01   :  { %6996 = vset.pattern.permute.xlu1 %v7141_v62  ;;  %4521 = vperm.xlu0 %7006, %v7836_v17  }
 0xc02   :  { %5005 = vperm.xlu1 %6996, %v7834_v16  }
 0xc05   :  { %7012 = vset.pattern.permute.xlu0 %v7141_v62 }
 0xc06   :  { %6997 = vset.pattern.permute.xlu1 %v7126_v29  ;;  %5001 = vperm.xlu0 %7012, %v7836_v17  }
 0xc07   :  { %3747 = vperm.xlu1 %6997, %v7834_v16  }
 0xc0a   :  { %7017 = vset.pattern.permute.xlu0 %v7125_v21 }
 0xc0b   :  { %6998 = vset.pattern.permute.xlu1 %v7142_v63  ;;  %3995 = vperm.xlu0 %7017, %v7856_v33  }
 0xc0c   :  { %4437 = vperm.xlu1 %6998, %v7834_v16  }
 0xc0f   :  { %7018 = vset.pattern.permute.xlu0 %v7133_v31 }
 0xc10   :  { %7000 = vset.pattern.permute.xlu1 %v7123_v18  ;;  %4075 = vperm.xlu0 %7018, %v7856_v33  }
 0xc11   :  { %3903 = vperm.xlu1 %7000, %v7836_v17  }
 0xc14   :  { %7020 = vset.pattern.permute.xlu0 %v7131_v54 }
 0xc15   :  { %7001 = vset.pattern.permute.xlu1 %v7125_v21  ;;  %4235 = vperm.xlu0 %7020, %v7856_v33  }
 0xc16   :  { %3983 = vperm.xlu1 %7001, %v7836_v17  }
 0xc19   :  { %7024 = vset.pattern.permute.xlu0 %v7134_v49 }
 0xc1a   :  { %7004 = vset.pattern.permute.xlu1 %v7131_v54  ;;  %4693 = vperm.xlu0 %7024, %v7856_v33  }
 0xc1b   :  { %4223 = vperm.xlu1 %7004, %v7836_v17  }
 0xc1e   :  { %7026 = vset.pattern.permute.xlu0 %v7136_v38 }
 0xc1f   :  { %7005 = vset.pattern.permute.xlu1 %v7137_v39  ;;  %4853 = vperm.xlu0 %7026, %v7856_v33  }
 0xc20   :  { %4303 = vperm.xlu1 %7005, %v7836_v17  }
 0xc23   :  { %7027 = vset.pattern.permute.xlu0 %v7140_v59 }
 0xc24   :  { %7007 = vset.pattern.permute.xlu1 %v7138_v9  ;;  %4933 = vperm.xlu0 %7027, %v7856_v33  }
 0xc25   :  { %4601 = vperm.xlu1 %7007, %v7836_v17  }
 0xc28   :  { %7032 = vset.pattern.permute.xlu0 %v7123_v18 }
 0xc29   :  { %7008 = vset.pattern.permute.xlu1 %v7134_v49  ;;  %3911 = vperm.xlu0 %7032, %v7854_v61  }
 0xc2a   :  { %4681 = vperm.xlu1 %7008, %v7836_v17  }
 0xc2d   :  { %7036 = vset.pattern.permute.xlu0 %v7131_v54 }
 0xc2e   :  { %7009 = vset.pattern.permute.xlu1 %v7139_v14  ;;  %4231 = vperm.xlu0 %7036, %v7854_v61  }
 0xc2f   :  { %4761 = vperm.xlu1 %7009, %v7836_v17  }
 0xc32   :  { %7039 = vset.pattern.permute.xlu0 %v7138_v9 }
 0xc33   :  { %7010 = vset.pattern.permute.xlu1 %v7136_v38  ;;  %4609 = vperm.xlu0 %7039, %v7854_v61  }
 0xc34   :  { %4841 = vperm.xlu1 %7010, %v7836_v17  }
 0xc37   :  { %7041 = vset.pattern.permute.xlu0 %v7139_v14 }
 0xc38   :  { %7011 = vset.pattern.permute.xlu1 %v7140_v59  ;;  %4769 = vperm.xlu0 %7041, %v7854_v61  }
 0xc39   :  { %4921 = vperm.xlu1 %7011, %v7836_v17  }
 0xc3c   :  { %7043 = vset.pattern.permute.xlu0 %v7140_v59 }
 0xc3d   :  { %7013 = vset.pattern.permute.xlu1 %v7126_v29  ;;  %4929 = vperm.xlu0 %7043, %v7854_v61  }
 0xc3e   :  { %3743 = vperm.xlu1 %7013, %v7836_v17  }
 0xc41   :  { %7045 = vset.pattern.permute.xlu0 %v7126_v29 }
 0xc42   :  { %7014 = vset.pattern.permute.xlu1 %v7142_v63  ;;  %3751 = vperm.xlu0 %7045, %v7854_v61  }
 0xc43   :  { %4433 = vperm.xlu1 %7014, %v7836_v17  }
 0xc46   :  { %7049 = vset.pattern.permute.xlu0 %v7125_v21 }
 0xc47   :  { %7015 = vset.pattern.permute.xlu1 %v7124_v19  ;;  %4003 = vperm.xlu0 %7049, %v7875_v45  }
 0xc48   :  { %3835 = vperm.xlu1 %7015, %v7856_v33  }
 0xc4b   :  { %7050 = vset.pattern.permute.xlu0 %v7133_v31 }
 0xc4c   :  { %7016 = vset.pattern.permute.xlu1 %v7123_v18  ;;  %4083 = vperm.xlu0 %7050, %v7875_v45  }
 0xc4d   :  { %3915 = vperm.xlu1 %7016, %v7856_v33  }
 0xc50   :  { %7052 = vset.pattern.permute.xlu0 %v7131_v54 }
 0xc51   :  { %7019 = vset.pattern.permute.xlu1 %v7135_v15  ;;  %4243 = vperm.xlu0 %7052, %v7875_v45  }
 0xc52   :  { %4155 = vperm.xlu1 %7019, %v7856_v33  }
 0xc55   :  { %7056 = vset.pattern.permute.xlu0 %v7134_v49 }
 0xc56   :  { %7021 = vset.pattern.permute.xlu1 %v7137_v39  ;;  %4701 = vperm.xlu0 %7056, %v7875_v45  }
 0xc57   :  { %4315 = vperm.xlu1 %7021, %v7856_v33  }
 0xc58   :  { %v8056_v5 = vpop.permute.xlu1 %3827 }
 0xc5a   :  { %7059 = vset.pattern.permute.xlu0 %v7140_v59 }
 0xc5b   :  { %7022 = vset.pattern.permute.xlu1 %v7132_v28  ;;  %4941 = vperm.xlu0 %7059, %v7875_v45  }
 0xc5c   :  { %4533 = vperm.xlu1 %7022, %v7856_v33  }
 0xc5d   :  { %v8064_v13 = vpop.permute.xlu1 %3987 }
 0xc5f   :  { %7061 = vset.pattern.permute.xlu0 %v7126_v29 }
 0xc60   :  { %7023 = vset.pattern.permute.xlu1 %v7138_v9  ;;  %3763 = vperm.xlu0 %7061, %v7875_v45  }
 0xc61   :  { %4613 = vperm.xlu1 %7023, %v7856_v33  }
 0xc62   :  { %v8072_v7 = vpop.permute.xlu1 %4067 }
 0xc64   :  { %7062 = vset.pattern.permute.xlu0 %v7142_v63 }
 0xc65   :  { %7025 = vset.pattern.permute.xlu1 %v7139_v14  ;;  %4453 = vperm.xlu0 %7062, %v7875_v45  }
 0xc66   :  { %4773 = vperm.xlu1 %7025, %v7856_v33  }
 0xc68   :  { %v8080_v23 = vpop.permute.xlu1 %4147 }
 0xc69   :  { %7065 = vset.pattern.permute.xlu0 %v7125_v21 }
 0xc6a   :  { %7028 = vset.pattern.permute.xlu1 %v7141_v62  ;;  %3999 = vperm.xlu0 %7065, %v7872_v43  }
 0xc6b   :  { %5013 = vperm.xlu1 %7028, %v7856_v33  }
 0xc6e   :  { %7067 = vset.pattern.permute.xlu0 %v7135_v15 }
 0xc6f   :  { %7029 = vset.pattern.permute.xlu1 %v7126_v29  ;;  %4159 = vperm.xlu0 %7067, %v7872_v43  }
 0xc70   :  { %3755 = vperm.xlu1 %7029, %v7856_v33  }
 0xc73   :  { %7072 = vset.pattern.permute.xlu0 %v7134_v49 }
 0xc74   :  { %7030 = vset.pattern.permute.xlu1 %v7142_v63  ;;  %4697 = vperm.xlu0 %7072, %v7872_v43  }
 0xc75   :  { %4445 = vperm.xlu1 %7030, %v7856_v33  }
 0xc78   :  { %7073 = vset.pattern.permute.xlu0 %v7139_v14 }
 0xc79   :  { %7031 = vset.pattern.permute.xlu1 %v7124_v19  ;;  %4777 = vperm.xlu0 %7073, %v7872_v43  }
 0xc7a   :  { %3831 = vperm.xlu1 %7031, %v7854_v61  }
 0xc7d   :  { %7074 = vset.pattern.permute.xlu0 %v7136_v38 }
 0xc7e   :  { %7033 = vset.pattern.permute.xlu1 %v7125_v21  ;;  %4857 = vperm.xlu0 %7074, %v7872_v43  }
 0xc7f   :  { %3991 = vperm.xlu1 %7033, %v7854_v61  }
 0xc82   :  { %7077 = vset.pattern.permute.xlu0 %v7126_v29 }
 0xc83   :  { %7034 = vset.pattern.permute.xlu1 %v7133_v31  ;;  %3759 = vperm.xlu0 %7077, %v7872_v43  }
 0xc84   :  { %4071 = vperm.xlu1 %7034, %v7854_v61  }
 0xc87   :  { %7078 = vset.pattern.permute.xlu0 %v7142_v63 }
 0xc88   :  { %7035 = vset.pattern.permute.xlu1 %v7135_v15  ;;  %4449 = vperm.xlu0 %7078, %v7872_v43  }
 0xc89   :  { %4151 = vperm.xlu1 %7035, %v7854_v61  }
 0xc8c   :  { %7079 = vset.pattern.permute.xlu0 %v7124_v19 }
 0xc8d   :  { %7037 = vset.pattern.permute.xlu1 %v7137_v39  ;;  %3851 = vperm.xlu0 %7079, %v7895_v60  }
 0xc8e   :  { %4311 = vperm.xlu1 %7037, %v7854_v61  }
 0xc91   :  { %7083 = vset.pattern.permute.xlu0 %v7135_v15 }
 0xc92   :  { %7038 = vset.pattern.permute.xlu1 %v7132_v28  ;;  %4171 = vperm.xlu0 %7083, %v7895_v60  }
 0xc93   :  { %4529 = vperm.xlu1 %7038, %v7854_v61  }
 0xc96   :  { %7088 = vset.pattern.permute.xlu0 %v7134_v49 }
 0xc97   :  { %7040 = vset.pattern.permute.xlu1 %v7134_v49  ;;  %4709 = vperm.xlu0 %7088, %v7895_v60  }
 0xc98   :  { %4689 = vperm.xlu1 %7040, %v7854_v61  }
 0xc9b   :  { %7089 = vset.pattern.permute.xlu0 %v7139_v14 }
 0xc9c   :  { %7042 = vset.pattern.permute.xlu1 %v7136_v38  ;;  %4789 = vperm.xlu0 %7089, %v7895_v60  }
 0xc9d   :  { %4849 = vperm.xlu1 %7042, %v7854_v61  }
 0xca0   :  { %7092 = vset.pattern.permute.xlu0 %v7141_v62 }
 0xca1   :  { %7044 = vset.pattern.permute.xlu1 %v7141_v62  ;;  %5029 = vperm.xlu0 %7092, %v7895_v60  }
 0xca2   :  { %5009 = vperm.xlu1 %7044, %v7854_v61  }
 0xca5   :  { %7093 = vset.pattern.permute.xlu0 %v7126_v29 }
 0xca6   :  { %7046 = vset.pattern.permute.xlu1 %v7142_v63  ;;  %3771 = vperm.xlu0 %7093, %v7895_v60  }
 0xca7   :  { %4441 = vperm.xlu1 %7046, %v7854_v61  }
 0xcaa   :  { %7094 = vset.pattern.permute.xlu0 %v7142_v63 }
 0xcab   :  { %7047 = vset.pattern.permute.xlu1 %v7124_v19  ;;  %4461 = vperm.xlu0 %7094, %v7895_v60  }
 0xcac   :  { %3843 = vperm.xlu1 %7047, %v7875_v45  }
 0xcae   :  { %v6481_v1 = vpop.f32.mrb[52].mxu0 }
 0xcaf   :  { %v2435_v34 = vadd.f32 %v6481_v1, %v8048_v30  ;;  %7097 = vset.pattern.permute.xlu0 %v7125_v21  ;;  %v2429_v2 = vpop.f32.mrb[53].mxu0 }
 0xcb0   :  { %7048 = vset.pattern.permute.xlu1 %v7123_v18  ;;  %v2430_v3 = vadd.f32 %v2429_v2, %v8048_v30  ;;  %4007 = vperm.xlu0 %7097, %v7891_v58  }
 0xcb1   :  { %v2469_v4 = vmul.f32 0.2, %v2435_v34  ;;  %3923 = vperm.xlu1 %7048, %v7875_v45  }
 0xcb2   :  { %v2468_v8 = vmul.f32 0.2, %v2430_v3 }
 0xcb3   :  { %v2477_v12 = vmax.f32 %v2435_v34, %v2469_v4 }
 0xcb4   :  { %v2476_v11 = vmax.f32 %v2430_v3, %v2468_v8  ;;  %7099 = vset.pattern.permute.xlu0 %v7135_v15  ;;  %v2632_v8 = vld [vmem:[%s9548_s1 + $0x5b0] sm:$0xff] }
 0xcb5   :  { %7051 = vset.pattern.permute.xlu1 %v7135_v15  ;;  %4167 = vperm.xlu0 %7099, %v7891_v58  }
 0xcb6   :  { %4163 = vperm.xlu1 %7051, %v7875_v45   ;;  %6493 = vmatprep.mubr.msk.f32.mxu1 %vm178_vm2, %v2476_v11 }
 0xcb7   :  { %6494 = vmatmul.mubr.msk.f32.vlgmr.msra.gmra.mrb[42].mxu1 %vm178_vm2, %v2477_v12 }
 0xcb9   :  { %7103 = vset.pattern.permute.xlu0 %v7138_v9 }
 0xcba   :  { %7053 = vset.pattern.permute.xlu1 %v7137_v39  ;;  %4625 = vperm.xlu0 %7103, %v7891_v58  }
 0xcbb   :  { %4323 = vperm.xlu1 %7053, %v7875_v45   ;;  %v6484_v53 = vpop.f32.mrb[54].mxu0 }
 0xcbc   :  { %v2445_v42 = vadd.f32 %v6484_v53, %v8048_v30  ;;  %v2439_v46 = vpop.f32.mrb[55].mxu0 }
 0xcbd   :  { %v2440_v6 = vadd.f32 %v2439_v46, %v8048_v30 }
 0xcbe   :  { %v2471_v16 = vmul.f32 0.2, %v2445_v42  ;;  %7107 = vset.pattern.permute.xlu0 %v7140_v59 }
 0xcbf   :  { %v2470_v17 = vmul.f32 0.2, %v2440_v6  ;;  %7054 = vset.pattern.permute.xlu1 %v7132_v28  ;;  %4945 = vperm.xlu0 %7107, %v7891_v58  }
 0xcc0   :  { %4541 = vperm.xlu1 %7054, %v7875_v45   ;;  %v2479_v22 = vmax.f32 %v2445_v42, %v2471_v16 }
 0xcc1   :  { %v2478_v20 = vmax.f32 %v2440_v6, %v2470_v17 }
 0xcc3   :  { %6496 = vmatprep.mubr.msk.f32.mxu1 %vm178_vm2, %v2478_v20  ;;  %7109 = vset.pattern.permute.xlu0 %v7126_v29  ;;  %v8090_v29 = vpop.permute.xlu1 %4307 }
 0xcc4   :  { %7055 = vset.pattern.permute.xlu1 %v7138_v9  ;;  %6497 = vmatmul.mubr.msk.f32.gmra.mrb[44].mxu1 %vm178_vm2, %v2479_v22 }
 0xcc5   :  { %4621 = vperm.xlu1 %7055, %v7875_v45   ;;  %3767 = vperm.xlu0 %7109, %v7891_v58  }
 0xcc7   :  { %v6487_v24 = vpop.f32.mrb[56].mxu0  ;;  %v8098_v36 = vpop.permute.xlu1 %4605 }
 0xcc8   :  { %v2455_v26 = vadd.f32 %v6487_v24, %v8048_v30  ;;  %v2449_v27 = vpop.f32.mrb[57].mxu0 }
 0xcc9   :  { %v2450_v61 = vadd.f32 %v2449_v27, %v8048_v30  ;;  %7057 = vset.pattern.permute.xlu1 %v7139_v14  ;;  %7110 = vset.pattern.permute.xlu0 %v7142_v63 }
 0xcca   :  { %v2473_v33 = vmul.f32 0.2, %v2455_v26  ;;  %4781 = vperm.xlu1 %7057, %v7875_v45   ;;  %4457 = vperm.xlu0 %7110, %v7891_v58  }
 0xccb   :  { %v2472_v15 = vmul.f32 0.2, %v2450_v61  ;;  %v8105_v51 = vpop.permute.xlu1 %4765 }
 0xccc   :  { %v2481_v35 = vmax.f32 %v2455_v26, %v2473_v33 }
 0xccd   :  { %v2480_v25 = vmax.f32 %v2450_v61, %v2472_v15 }
 0xcce   :  { %7058 = vset.pattern.permute.xlu1 %v7136_v38  ;;  %7111 = vset.pattern.permute.xlu0 %v7141_v62 }
 0xccf   :  { %4861 = vperm.xlu1 %7058, %v7875_v45   ;;  %6499 = vmatprep.mubr.msk.f32.mxu1 %vm178_vm2, %v2480_v25  ;;  %v8111_v63 = vpop.permute.xlu1 %4925 }
 0xcd0   :  { %6500 = vmatmul.mubr.msk.f32.gmra.mrb[46].mxu1 %vm178_vm2, %v2481_v35 }
 0xcd2   :  { %v6490_v37 = vpop.f32.mrb[58].mxu0 }
 0xcd3   :  { %7060 = vset.pattern.permute.xlu1 %v7141_v62  ;;  %v2465_v40 = vadd.f32 %v6490_v37, %v8048_v30  ;;  %v2459_v41 = vpop.f32.mrb[59].mxu0 }
 0xcd4   :  { %5021 = vperm.xlu1 %7060, %v7875_v45   ;;  %v2460_v47 = vadd.f32 %v2459_v41, %v8048_v30  ;;  %v8115_v45 = vpop.permute.xlu1 %5005 }
 0xcd5   :  { %v2475_v48 = vmul.f32 0.2, %v2465_v40 }
 0xcd6   :  { %v2474_v55 = vmul.f32 0.2, %v2460_v47 }
 0xcd7   :  { %v2483_v57 = vmax.f32 %v2465_v40, %v2475_v48 }
 0xcd8   :  { %v2482_v56 = vmax.f32 %v2460_v47, %v2474_v55  ;;  %7063 = vset.pattern.permute.xlu1 %v7124_v19  ;;  %v8120_v0 = vpop.permute.xlu1 %3747 }
 0xcd9   :  { %3839 = vperm.xlu1 %7063, %v7872_v43   ;;  %9558 = vst [vmem:[#allocation3_spill] sm:$0xff] %v8120_v0 }
 0xcda   :  { %6502 = vmatprep.mubr.msk.f32.mxu1 %vm178_vm2, %v2482_v56 }
 0xcdb   :  { %6503 = vmatmul.mubr.msk.f32.gmra.mrb[48].mxu1 %vm178_vm2, %v2483_v57 }
 0xcdc   :  { %v8125_v30 = vpop.permute.xlu1 %4437 }
 0xcdd   :  { %7064 = vset.pattern.permute.xlu1 %v7123_v18  ;;  %9559 = vst [vmem:[#allocation4_spill] sm:$0xff] %v8125_v30 }
 0xcde   :  { %3919 = vperm.xlu1 %7064, %v7872_v43  }
 0xce0   :  { %v8129_v1 = vpop.permute.xlu1 %3903 }
 0xce2   :  { %7066 = vset.pattern.permute.xlu1 %v7133_v31 }
 0xce3   :  { %4079 = vperm.xlu1 %7066, %v7872_v43  }
 0xce4   :  { %v8133_v34 = vpop.permute.xlu1 %3983 }
 0xce7   :  { %7068 = vset.pattern.permute.xlu1 %v7131_v54 }
 0xce8   :  { %4239 = vperm.xlu1 %7068, %v7872_v43   ;;  %v8137_v2 = vpop.permute.xlu1 %4223 }
 0xcec   :  { %7069 = vset.pattern.permute.xlu1 %v7137_v39  ;;  %v8142_v3 = vpop.permute.xlu1 %4303 }
 0xced   :  { %4319 = vperm.xlu1 %7069, %v7872_v43  }
 0xcf0   :  { %v8147_v4 = vpop.permute.xlu1 %4601 }
 0xcf1   :  { %7070 = vset.pattern.permute.xlu1 %v7132_v28 }
 0xcf2   :  { %4537 = vperm.xlu1 %7070, %v7872_v43  }
 0xcf4   :  { %v8157_v12 = vpop.permute.xlu1 %4681 }
 0xcf6   :  { %7071 = vset.pattern.permute.xlu1 %v7138_v9 }
 0xcf7   :  { %4617 = vperm.xlu1 %7071, %v7872_v43  }
 0xcfb   :  { %7075 = vset.pattern.permute.xlu1 %v7140_v59 }
 0xcfc   :  { %4937 = vperm.xlu1 %7075, %v7872_v43  }
 0xd00   :  { %7076 = vset.pattern.permute.xlu1 %v7141_v62 }
 0xd01   :  { %5017 = vperm.xlu1 %7076, %v7872_v43   ;;  %v2631_v43 = vld [vmem:[%s9548_s1 + $0x5a0] sm:$0xff] }
 0xd02   :  { %v6768_v11 = vpack.c.bf16 %v2632_v8, %v2631_v43 }
 0xd04   :  { %6769 = vmatprep.subr.bf16.mxu0 %v6768_v11 }
 0xd05   :  { %7080 = vset.pattern.permute.xlu1 %v7123_v18  ;;  %6771 = vmatpush3.bf16.msra.mxu0 %v6768_v11 }
 0xd06   :  { %3931 = vperm.xlu1 %7080, %v7895_v60  }
 0xd0a   :  { %7081 = vset.pattern.permute.xlu1 %v7125_v21  ;;  %v8161_v21 = vpop.permute.xlu1 %4761 }
 0xd0b   :  { %4011 = vperm.xlu1 %7081, %v7895_v60  }
 0xd0e   :  { %v8165_v53 = vpop.permute.xlu1 %4841 }
 0xd0f   :  { %7082 = vset.pattern.permute.xlu1 %v7133_v31 }
 0xd10   :  { %4091 = vperm.xlu1 %7082, %v7895_v60  }
 0xd12   :  { %v8170_v42 = vpop.permute.xlu1 %4921 }
 0xd14   :  { %7084 = vset.pattern.permute.xlu1 %v7131_v54 }
 0xd15   :  { %4251 = vperm.xlu1 %7084, %v7895_v60  }
 0xd16   :  { %v8175_v46 = vpop.permute.xlu1 %3743 }
 0xd17   :  { %9560 = vst [vmem:[#allocation5_spill] sm:$0xff] %v8175_v46 }
 0xd19   :  { %7085 = vset.pattern.permute.xlu1 %v7137_v39 }
 0xd1a   :  { %4331 = vperm.xlu1 %7085, %v7895_v60   ;;  %v8179_v6 = vpop.permute.xlu1 %4433 }
 0xd1b   :  { %9561 = vst [vmem:[#allocation6_spill] sm:$0xff] %v8179_v6 }
 0xd1e   :  { %7086 = vset.pattern.permute.xlu1 %v7132_v28 }
 0xd1f   :  { %4549 = vperm.xlu1 %7086, %v7895_v60  }
 0xd23   :  { %7087 = vset.pattern.permute.xlu1 %v7138_v9  ;;  %v8183_v9 = vpop.permute.xlu1 %3835 }
 0xd24   :  { %4629 = vperm.xlu1 %7087, %v7895_v60   ;;  %9562 = vst [vmem:[#allocation7_spill] sm:$0xff] %v8183_v9 }
 0xd27   :  { %v8187_v16 = vpop.permute.xlu1 %3915 }
 0xd28   :  { %7090 = vset.pattern.permute.xlu1 %v7136_v38  ;;  %9563 = vst [vmem:[#allocation8_spill] sm:$0xff] %v8187_v16 }
 0xd29   :  { %4869 = vperm.xlu1 %7090, %v7895_v60  }
 0xd2d   :  { %7091 = vset.pattern.permute.xlu1 %v7140_v59  ;;  %v8192_v59 = vpop.permute.xlu1 %4155 }
 0xd2e   :  { %4949 = vperm.xlu1 %7091, %v7895_v60   ;;  %9564 = vst [vmem:[#allocation9_spill] sm:$0xff] %v8192_v59 }
 0xd32   :  { %7095 = vset.pattern.permute.xlu1 %v7124_v19  ;;  %v8197_v19 = vpop.permute.xlu1 %4315 }
 0xd33   :  { %3847 = vperm.xlu1 %7095, %v7891_v58   ;;  %9565 = vst [vmem:[#allocation10_spill] sm:$0xff] %v8197_v19 }
 0xd37   :  { %7096 = vset.pattern.permute.xlu1 %v7123_v18  ;;  %v8201_v18 = vpop.permute.xlu1 %4533 }
 0xd38   :  { %3927 = vperm.xlu1 %7096, %v7891_v58   ;;  %9566 = vst [vmem:[#allocation11_spill] sm:$0xff] %v8201_v18 }
 0xd3c   :  { %7098 = vset.pattern.permute.xlu1 %v7133_v31 }
 0xd3d   :  { %4087 = vperm.xlu1 %7098, %v7891_v58  }
 0xd41   :  { %7100 = vset.pattern.permute.xlu1 %v7131_v54  ;;  %v8205_v54 = vpop.permute.xlu1 %4613 }
 0xd42   :  { %4247 = vperm.xlu1 %7100, %v7891_v58   ;;  %9567 = vst [vmem:[#allocation12_spill] sm:$0xff] %v8205_v54 }
 0xd45   :  { %v8209_v31 = vpop.permute.xlu1 %4773 }
 0xd46   :  { %7101 = vset.pattern.permute.xlu1 %v7137_v39  ;;  %9568 = vst [vmem:[#allocation13_spill] sm:$0xff] %v8209_v31 }
 0xd47   :  { %4327 = vperm.xlu1 %7101, %v7891_v58  }
 0xd4b   :  { %7102 = vset.pattern.permute.xlu1 %v7132_v28  ;;  %v8214_v28 = vpop.permute.xlu1 %5013 }
 0xd4c   :  { %4545 = vperm.xlu1 %7102, %v7891_v58   ;;  %9569 = vst [vmem:[#allocation14_spill] sm:$0xff] %v8214_v28 }
 0xd50   :  { %7104 = vset.pattern.permute.xlu1 %v7134_v49  ;;  %v2485_v49 = vld [vmem:[%s9550_s2 + $0x16] ss:$0 sm:$0xff] }
 0xd51   :  { %4705 = vperm.xlu1 %7104, %v7891_v58  }
 0xd55   :  { %7105 = vset.pattern.permute.xlu1 %v7139_v14 }
 0xd56   :  { %4785 = vperm.xlu1 %7105, %v7891_v58  }
 0xd5a   :  { %7106 = vset.pattern.permute.xlu1 %v7136_v38 }
 0xd5b   :  { %4865 = vperm.xlu1 %7106, %v7891_v58  }
 0xd5f   :  { %7108 = vset.pattern.permute.xlu1 %v7141_v62 }
 0xd60   :  { %5025 = vperm.xlu1 %7108, %v7891_v58  }
 0xd8a   :  { %v6495_v39 = vpop.f32.mrb[42].mxu1 }
 0xd8b   :  { %v2582_v14 = vadd.f32 %v6495_v39, %v2485_v49  ;;  %v2576_v60 = vpop.f32.mrb[43].mxu1 }
 0xd8c   :  { %v2577_v17 = vadd.f32 %v2576_v60, %v2485_v49 }
 0xd8d   :  { %v2616_v20 = vmul.f32 0.2, %v2582_v14 }
 0xd8e   :  { %v2615_v22 = vmul.f32 0.2, %v2577_v17 }
 0xd8f   :  { %v2624_v38 = vmax.f32 %v2582_v14, %v2616_v20  ;;  %v2779_v20 = vld [vmem:[%s9548_s1 + $0x5c0] sm:$0xff] }
 0xd90   :  { %v2623_v24 = vmax.f32 %v2577_v17, %v2615_v22  ;;  %v2780_v22 = vld [vmem:[%s9548_s1 + $0x5d0] sm:$0xff] }
 0xd92   :  { %6509 = vmatprep.mubr.msk.f32.mxu0 %vm327_vm3, %v2623_v24  ;;  %v6772_v24 = vpack.c.bf16 %v2780_v22, %v2779_v20 }
 0xd93   :  { %6510 = vmatmul.mubr.msk.f32.vlgmr.msra.gmra.mrb[60].mxu0 %vm327_vm3, %v2624_v38 }
 0xd94   :  { %6773 = vmatprep.subr.bf16.mxu1 %v6772_v24 }
 0xd95   :  { %6775 = vmatpush3.bf16.msra.mxu1 %v6772_v24 }
 0xd97   :  { %v6498_v62 = vpop.f32.mrb[44].mxu1 }
 0xd98   :  { %v2592_v26 = vadd.f32 %v6498_v62, %v2485_v49  ;;  %v2586_v27 = vpop.f32.mrb[45].mxu1 }
 0xd99   :  { %v2587_v58 = vadd.f32 %v2586_v27, %v2485_v49 }
 0xd9a   :  { %v2618_v61 = vmul.f32 0.2, %v2592_v26 }
 0xd9b   :  { %v2617_v33 = vmul.f32 0.2, %v2587_v58 }
 0xd9c   :  { %v2626_v25 = vmax.f32 %v2592_v26, %v2618_v61 }
 0xd9d   :  { %v2625_v15 = vmax.f32 %v2587_v58, %v2617_v33 }
 0xd9f   :  { %6512 = vmatprep.mubr.msk.f32.mxu0 %vm327_vm3, %v2625_v15 }
 0xda0   :  { %6513 = vmatmul.mubr.msk.f32.gmra.mrb[62].mxu0 %vm327_vm3, %v2626_v25 }
 0xda3   :  { %v6501_v35 = vpop.f32.mrb[46].mxu1 }
 0xda4   :  { %v2602_v37 = vadd.f32 %v6501_v35, %v2485_v49  ;;  %v2596_v40 = vpop.f32.mrb[47].mxu1 }
 0xda5   :  { %v2597_v41 = vadd.f32 %v2596_v40, %v2485_v49 }
 0xda6   :  { %v2620_v47 = vmul.f32 0.2, %v2602_v37 }
 0xda7   :  { %v2619_v48 = vmul.f32 0.2, %v2597_v41 }
 0xda8   :  { %v2628_v56 = vmax.f32 %v2602_v37, %v2620_v47 }
 0xda9   :  { %v2627_v55 = vmax.f32 %v2597_v41, %v2619_v48 }
 0xdab   :  { %6515 = vmatprep.mubr.msk.f32.mxu0 %vm327_vm3, %v2627_v55 }
 0xdac   :  { %6516 = vmatmul.mubr.msk.f32.gmra.mrb[64].mxu0 %vm327_vm3, %v2628_v56 }
 0xdae   :  { %v6504_v57 = vpop.f32.mrb[48].mxu1 }
 0xdaf   :  { %v2612_v43 = vadd.f32 %v6504_v57, %v2485_v49  ;;  %v2606_v8 = vpop.f32.mrb[49].mxu1 }
 0xdb0   :  { %v2607_v11 = vadd.f32 %v2606_v8, %v2485_v49  ;;  %v2633_v49 = vld [vmem:[%s9550_s2 + $0x17] ss:$0 sm:$0xff] }
 0xdb1   :  { %v2622_v39 = vmul.f32 0.2, %v2612_v43 }
 0xdb2   :  { %v2621_v14 = vmul.f32 0.2, %v2607_v11 }
 0xdb3   :  { %v2630_v17 = vmax.f32 %v2612_v43, %v2622_v39 }
 0xdb4   :  { %v2629_v60 = vmax.f32 %v2607_v11, %v2621_v14 }
 0xdb6   :  { %6518 = vmatprep.mubr.msk.f32.mxu0 %vm327_vm3, %v2629_v60 }
 0xdb7   :  { %6519 = vmatmul.mubr.msk.f32.gmra.mrb[66].mxu0 %vm327_vm3, %v2630_v17 }
 0xe66   :  { %v6511_v38 = vpop.f32.mrb[60].mxu0 }
 0xe67   :  { %v2730_v62 = vadd.f32 %v6511_v38, %v2633_v49  ;;  %v2724_v26 = vpop.f32.mrb[61].mxu0 }
 0xe68   :  { %v2725_v27 = vadd.f32 %v2724_v26, %v2633_v49 }
 0xe69   :  { %v2764_v58 = vmul.f32 0.2, %v2730_v62 }
 0xe6a   :  { %v2763_v61 = vmul.f32 0.2, %v2725_v27 }
 0xe6b   :  { %v2772_v15 = vmax.f32 %v2730_v62, %v2764_v58  ;;  %v2927_v58 = vld [vmem:[%s9548_s1 + $0x5e0] sm:$0xff] }
 0xe6c   :  { %v2771_v33 = vmax.f32 %v2725_v27, %v2763_v61  ;;  %v2928_v61 = vld [vmem:[%s9548_s1 + $0x5f0] sm:$0xff] }
 0xe6e   :  { %6525 = vmatprep.mubr.msk.f32.mxu1 %vm327_vm3, %v2771_v33  ;;  %v6776_v33 = vpack.c.bf16 %v2928_v61, %v2927_v58  ;;  %v3094_v58 = vld [vmem:[%s9548_s1 + $0x6a8] sm:$0xff]  ;;  %v3096_v61 = vld [vmem:[%s9548_s1 + $0x6b8] sm:$0xff] }
 0xe6f   :  { %6526 = vmatmul.mubr.msk.f32.vlgmr.msra.gmra.mrb[50].mxu1 %vm327_vm3, %v2772_v15  ;;  %v2930_v15 = vld [vmem:[%s9548_s1 + $0x610] sm:$0xff] }
 0xe70   :  { %6777 = vmatprep.subr.bf16.mxu0 %v6776_v33 }
 0xe71   :  { %6779 = vmatpush3.bf16.msra.mxu0 %v6776_v33  ;;  %v6800_v33 = vpack.c.bf16 %v3096_v61, %v3094_v58 }
 0xe73   :  { %v6514_v25 = vpop.f32.mrb[62].mxu0 }
 0xe74   :  { %v2740_v35 = vadd.f32 %v6514_v25, %v2633_v49  ;;  %v2734_v37 = vpop.f32.mrb[63].mxu0 }
 0xe75   :  { %v2735_v40 = vadd.f32 %v2734_v37, %v2633_v49  ;;  %v3080_v37 = vld [vmem:[%s9548_s1 + $0x638] sm:$0xff] }
 0xe76   :  { %v2766_v41 = vmul.f32 0.2, %v2740_v35 }
 0xe77   :  { %v2765_v47 = vmul.f32 0.2, %v2735_v40 }
 0xe78   :  { %v2774_v55 = vmax.f32 %v2740_v35, %v2766_v41  ;;  %v3078_v35 = vld [vmem:[%s9548_s1 + $0x628] sm:$0xff] }
 0xe79   :  { %v2773_v48 = vmax.f32 %v2735_v40, %v2765_v47  ;;  %v3077_v40 = vld [vmem:[%s9548_s1 + $0x620] sm:$0xff]  ;;  %v6784_v41 = vpack.c.bf16 %v3080_v37, %v3078_v35  ;;  %v3079_v47 = vld [vmem:[%s9548_s1 + $0x630] sm:$0xff]  ;;  %v3098_v35 = vld [vmem:[%s9548_s1 + $0x6c8] sm:$0xff] }
 0xe7a   :  { %v3100_v37 = vld [vmem:[%s9548_s1 + $0x6d8] sm:$0xff] }
 0xe7b   :  { %6528 = vmatprep.mubr.msk.f32.mxu1 %vm327_vm3, %v2773_v48  ;;  %v3082_v48 = vld [vmem:[%s9548_s1 + $0x648] sm:$0xff]  ;;  %6785 = vmatprep.subr.bf16.mxu1 %v6784_v41  ;;  %v6804_v41 = vpack.c.bf16 %v3100_v37, %v3098_v35 }
 0xe7c   :  { %6529 = vmatmul.mubr.msk.f32.gmra.mrb[52].mxu1 %vm327_vm3, %v2774_v55  ;;  %v3084_v55 = vld [vmem:[%s9548_s1 + $0x658] sm:$0xff] }
 0xe7f   :  { %v6517_v56 = vpop.f32.mrb[64].mxu0 }
 0xe80   :  { %v2750_v57 = vadd.f32 %v6517_v56, %v2633_v49  ;;  %v2744_v43 = vpop.f32.mrb[65].mxu0  ;;  %v6786_v56 = vpack.c.bf16 %v3079_v47, %v3077_v40  ;;  %v3097_v47 = vld [vmem:[%s9548_s1 + $0x6c0] sm:$0xff] }
 0xe81   :  { %v2745_v8 = vadd.f32 %v2744_v43, %v2633_v49  ;;  %v3081_v43 = vld [vmem:[%s9548_s1 + $0x640] sm:$0xff] }
 0xe82   :  { %v2768_v11 = vmul.f32 0.2, %v2750_v57  ;;  %6787 = vmatpush1.bf16.msra.mxu1 %v6786_v56  ;;  %v2781_v56 = vld [vmem:[%s9550_s2 + $0x20] ss:$0 sm:$0xff] }
 0xe83   :  { %v2767_v39 = vmul.f32 0.2, %v2745_v8 }
 0xe84   :  { %v2776_v60 = vmax.f32 %v2750_v57, %v2768_v11  ;;  %v6788_v57 = vpack.c.bf16 %v3084_v55, %v3082_v48  ;;  %v3086_v11 = vld [vmem:[%s9548_s1 + $0x668] sm:$0xff]  ;;  %v3099_v48 = vld [vmem:[%s9548_s1 + $0x6d0] sm:$0xff] }
 0xe85   :  { %v2775_v14 = vmax.f32 %v2745_v8, %v2767_v39  ;;  %v3083_v8 = vld [vmem:[%s9548_s1 + $0x650] sm:$0xff]  ;;  %v3088_v39 = vld [vmem:[%s9548_s1 + $0x678] sm:$0xff]  ;;  %v6806_v55 = vpack.c.bf16 %v3099_v48, %v3097_v47 }
 0xe86   :  { %6789 = vmatprep.subr.bf16.mxu1 %v6788_v57 }
 0xe87   :  { %6531 = vmatprep.mubr.msk.f32.mxu1 %vm327_vm3, %v2775_v14  ;;  %v6790_v14 = vpack.c.bf16 %v3083_v8, %v3081_v43 }
 0xe88   :  { %6532 = vmatmul.mubr.msk.f32.gmra.mrb[54].mxu1 %vm327_vm3, %v2776_v60  ;;  %v6792_v60 = vpack.c.bf16 %v3088_v39, %v3086_v11 }
 0xe89   :  { %6791 = vmatpush1.bf16.msra.mxu1 %v6790_v14 }
 0xe8a   :  { %v6520_v17 = vpop.f32.mrb[66].mxu0  ;;  %6793 = vmatprep.subr.bf16.mxu1 %v6792_v60 }
 0xe8b   :  { %v2760_v20 = vadd.f32 %v6520_v17, %v2633_v49  ;;  %v2754_v22 = vpop.f32.mrb[67].mxu0  ;;  %v3085_v17 = vld [vmem:[%s9548_s1 + $0x660] sm:$0xff] }
 0xe8c   :  { %v2755_v24 = vadd.f32 %v2754_v22, %v2633_v49  ;;  %v2929_v49 = vld [vmem:[%s9548_s1 + $0x600] sm:$0xff]  ;;  %v3090_v22 = vld [vmem:[%s9548_s1 + $0x688] sm:$0xff] }
 0xe8d   :  { %v2770_v38 = vmul.f32 0.2, %v2760_v20  ;;  %v6780_v25 = vpack.c.bf16 %v2930_v15, %v2929_v49  ;;  %v3093_v15 = vld [vmem:[%s9548_s1 + $0x6a0] sm:$0xff] }
 0xe8e   :  { %v2769_v62 = vmul.f32 0.2, %v2755_v24 }
 0xe8f   :  { %v2778_v27 = vmax.f32 %v2760_v20, %v2770_v38  ;;  %6781 = vmatprep.subr.bf16.mxu0 %v6780_v25  ;;  %v3087_v20 = vld [vmem:[%s9548_s1 + $0x670] sm:$0xff] }
 0xe90   :  { %v2777_v26 = vmax.f32 %v2755_v24, %v2769_v62  ;;  %6783 = vmatpush3.bf16.msra.mxu0 %v6780_v25  ;;  %v3092_v24 = vld [vmem:[%s9548_s1 + $0x698] sm:$0xff]  ;;  %v6794_v38 = vpack.c.bf16 %v3087_v20, %v3085_v17  ;;  %v3095_v25 = vld [vmem:[%s9548_s1 + $0x6b0] sm:$0xff] }
 0xe91   :  { %v6796_v62 = vpack.c.bf16 %v3092_v24, %v3090_v22  ;;  %v6802_v40 = vpack.c.bf16 %v3095_v25, %v3093_v15 }
 0xe92   :  { %6534 = vmatprep.mubr.msk.f32.mxu1 %vm327_vm3, %v2777_v26  ;;  %v3089_v26 = vld [vmem:[%s9548_s1 + $0x680] sm:$0xff]  ;;  %6795 = vmatpush1.bf16.msra.mxu1 %v6794_v38 }
 0xe93   :  { %6535 = vmatmul.mubr.msk.f32.gmra.mrb[56].mxu1 %vm327_vm3, %v2778_v27  ;;  %v3091_v27 = vld [vmem:[%s9548_s1 + $0x690] sm:$0xff]  ;;  %6797 = vmatprep.subr.bf16.mxu1 %v6796_v62 }
 0xe94   :  { %3186 = vmatprep.mubr.f32.mxu1 %v9554_v10  ;;  %v6798_v49 = vpack.c.bf16 %v3091_v27, %v3089_v26 }
 0xe96   :  { %6799 = vmatpush1.bf16.msra.mxu1 %v6798_v49 }
 0xe97   :  { %6801 = vmatprep.subr.bf16.mxu1 %v6800_v33 }
 0xe9a   :  { %6803 = vmatpush1.bf16.msra.mxu1 %v6802_v40 }
 0xe9b   :  { %6805 = vmatprep.subr.bf16.mxu1 %v6804_v41 }
 0xe9e   :  { %6807 = vmatpush1.bf16.msra.mxu1 %v6806_v55 }
 0xf42   :  { %v6527_v57 = vpop.f32.mrb[50].mxu1 }
 0xf43   :  { %v2878_v43 = vadd.f32 %v6527_v57, %v2781_v56  ;;  %v2872_v8 = vpop.f32.mrb[51].mxu1 }
 0xf44   :  { %v2873_v11 = vadd.f32 %v2872_v8, %v2781_v56 }
 0xf45   :  { %v2912_v39 = vmul.f32 0.2, %v2878_v43 }
 0xf46   :  { %v2911_v14 = vmul.f32 0.2, %v2873_v11 }
 0xf47   :  { %v2920_v17 = vmax.f32 %v2878_v43, %v2912_v39  ;;  %v3102_v39 = vld [vmem:[%s9548_s1 + $0x6e8] sm:$0xff] }
 0xf48   :  { %v2919_v60 = vmax.f32 %v2873_v11, %v2911_v14  ;;  %v3104_v14 = vld [vmem:[%s9548_s1 + $0x6f8] sm:$0xff] }
 0xf4a   :  { %6545 = vmatprep.mubr.msk.f32.mxu0 %vm626_vm4, %v2919_v60  ;;  %v6808_v60 = vpack.c.bf16 %v3104_v14, %v3102_v39 }
 0xf4b   :  { %6546 = vmatmul.mubr.msk.f32.vlgmr.msra.gmra.mrb[68].mxu0 %vm626_vm4, %v2920_v17  ;;  %v3103_v17 = vld [vmem:[%s9548_s1 + $0x6f0] sm:$0xff] }
 0xf4c   :  { %6809 = vmatprep.subr.bf16.mxu1 %v6808_v60 }
 0xf4f   :  { %v6530_v20 = vpop.f32.mrb[52].mxu1 }
 0xf50   :  { %v2888_v22 = vadd.f32 %v6530_v20, %v2781_v56  ;;  %v2882_v24 = vpop.f32.mrb[53].mxu1  ;;  %v3106_v20 = vld [vmem:[%s9548_s1 + $0x708] sm:$0xff] }
 0xf51   :  { %v2883_v38 = vadd.f32 %v2882_v24, %v2781_v56  ;;  %v3108_v24 = vld [vmem:[%s9548_s1 + $0x718] sm:$0xff] }
 0xf52   :  { %v2914_v62 = vmul.f32 0.2, %v2888_v22 }
 0xf53   :  { %v2913_v26 = vmul.f32 0.2, %v2883_v38 }
 0xf54   :  { %v2922_v58 = vmax.f32 %v2888_v22, %v2914_v62  ;;  %v3107_v62 = vld [vmem:[%s9548_s1 + $0x710] sm:$0xff] }
 0xf55   :  { %v2921_v27 = vmax.f32 %v2883_v38, %v2913_v26  ;;  %v3105_v38 = vld [vmem:[%s9548_s1 + $0x700] sm:$0xff]  ;;  %v6812_v26 = vpack.c.bf16 %v3108_v24, %v3106_v20 }
 0xf57   :  { %6548 = vmatprep.mubr.msk.f32.mxu0 %vm626_vm4, %v2921_v27  ;;  %v6814_v27 = vpack.c.bf16 %v3107_v62, %v3105_v38 }
 0xf58   :  { %6549 = vmatmul.mubr.msk.f32.gmra.mrb[70].mxu0 %vm626_vm4, %v2922_v58  ;;  %v2931_v58 = vld [vmem:[%s9550_s2 + $0x21] ss:$0 sm:$0xff] }
 0xf5b   :  { %v6533_v61 = vpop.f32.mrb[54].mxu1 }
 0xf5c   :  { %v2898_v49 = vadd.f32 %v6533_v61, %v2781_v56  ;;  %v2892_v33 = vpop.f32.mrb[55].mxu1 }
 0xf5d   :  { %v2893_v15 = vadd.f32 %v2892_v33, %v2781_v56 }
 0xf5e   :  { %v2916_v25 = vmul.f32 0.2, %v2898_v49 }
 0xf5f   :  { %v2915_v35 = vmul.f32 0.2, %v2893_v15 }
 0xf60   :  { %v2924_v40 = vmax.f32 %v2898_v49, %v2916_v25 }
 0xf61   :  { %v2923_v37 = vmax.f32 %v2893_v15, %v2915_v35 }
 0xf63   :  { %6551 = vmatprep.mubr.msk.f32.mxu0 %vm626_vm4, %v2923_v37 }
 0xf64   :  { %6552 = vmatmul.mubr.msk.f32.gmra.mrb[72].mxu0 %vm626_vm4, %v2924_v40 }
 0xf66   :  { %v6536_v41 = vpop.f32.mrb[56].mxu1 }
 0xf67   :  { %v2908_v47 = vadd.f32 %v6536_v41, %v2781_v56  ;;  %v2902_v48 = vpop.f32.mrb[57].mxu1 }
 0xf68   :  { %v2903_v55 = vadd.f32 %v2902_v48, %v2781_v56  ;;  %v3101_v56 = vld [vmem:[%s9548_s1 + $0x6e0] sm:$0xff] }
 0xf69   :  { %v2918_v57 = vmul.f32 0.2, %v2908_v47  ;;  %v6810_v22 = vpack.c.bf16 %v3103_v17, %v3101_v56 }
 0xf6a   :  { %v2917_v43 = vmul.f32 0.2, %v2903_v55 }
 0xf6b   :  { %v2926_v11 = vmax.f32 %v2908_v47, %v2918_v57  ;;  %6811 = vmatpush1.bf16.msra.mxu1 %v6810_v22 }
 0xf6c   :  { %v2925_v8 = vmax.f32 %v2903_v55, %v2917_v43  ;;  %6813 = vmatprep.subr.bf16.mxu1 %v6812_v26 }
 0xf6e   :  { %6554 = vmatprep.mubr.msk.f32.mxu0 %vm626_vm4, %v2925_v8 }
 0xf6f   :  { %6555 = vmatmul.mubr.msk.f32.gmra.mrb[74].mxu0 %vm626_vm4, %v2926_v11  ;;  %6815 = vmatpush1.bf16.msra.mxu1 %v6814_v27 }
 0xf70   :  { %6848 = vmatprep.subr.bf16.mxu1 %v9553_v32 }
0x101e   :  { %v6547_v61 = vpop.f32.mrb[68].mxu0 }
0x101f   :  { %v3022_v49 = vpop.f32.mrb[69].mxu0  ;;  %v3028_v33 = vadd.f32 %v6547_v61, %v2931_v58 }
0x1020   :  { %v3023_v15 = vadd.f32 %v3022_v49, %v2931_v58 }
0x1021   :  { %v3062_v35 = vmul.f32 0.2, %v3028_v33 }
0x1022   :  { %v3061_v25 = vmul.f32 0.2, %v3023_v15 }
0x1023   :  { %v3070_v40 = vmax.f32 %v3028_v33, %v3062_v35 }
0x1024   :  { %v3069_v37 = vmax.f32 %v3023_v15, %v3061_v25  ;;  %v3379_v25 = vld [vmem:[%s9548_s1 + $0x820] sm:$0xff] }
0x1026   :  { %3187 = vmatmul.mubr.f32.vlgmr.msra.gmra.mrb[58].mxu1 %v3069_v37  ;;  %v3363_v37 = vld [vmem:[%s9548_s1 + $0x720] sm:$0xff] }
0x1027   :  { %3192 = vmatprep.mubr.f32.mxu1 %v9554_v10 }
0x102a   :  { %3193 = vmatmul.mubr.f32.gmra.mrb[60].mxu1 %v3070_v40  ;;  %v3364_v40 = vld [vmem:[%s9548_s1 + $0x730] sm:$0xff] }
0x102b   :  { %v6550_v41 = vpop.f32.mrb[70].mxu0  ;;  %3198 = vmatprep.mubr.f32.mxu1 %v9554_v10 }
0x102c   :  { %v3032_v47 = vpop.f32.mrb[71].mxu0  ;;  %v3038_v48 = vadd.f32 %v6550_v41, %v2931_v58  ;;  %v6818_v41 = vpack.c.bf16 %v3364_v40, %v3363_v37  ;;  %v3373_v40 = vld [vmem:[%s9548_s1 + $0x7c0] sm:$0xff] }
0x102d   :  { %v3033_v55 = vadd.f32 %v3032_v47, %v2931_v58  ;;  %v3381_v47 = vld [vmem:[%s9548_s1 + $0x840] sm:$0xff] }
0x102e   :  { %v3064_v43 = vmul.f32 0.2, %v3038_v48 }
0x102f   :  { %v3063_v57 = vmul.f32 0.2, %v3033_v55 }
0x1030   :  { %v3072_v11 = vmax.f32 %v3038_v48, %v3064_v43  ;;  %v3382_v48 = vld [vmem:[%s9548_s1 + $0x850] sm:$0xff] }
0x1031   :  { %v3071_v8 = vmax.f32 %v3033_v55, %v3063_v57  ;;  %v6820_v55 = vpack.c.bf16 %v3382_v48, %v3381_v47  ;;  %v3365_v57 = vld [vmem:[%s9548_s1 + $0x740] sm:$0xff]  ;;  %v3366_v43 = vld [vmem:[%s9548_s1 + $0x750] sm:$0xff] }
0x1032   :  { %v3391_v47 = vld [vmem:[%s9548_s1 + $0x8e0] sm:$0xff] }
0x1033   :  { %3199 = vmatmul.mubr.f32.gmra.mrb[62].mxu1 %v3071_v8  ;;  %v6822_v8 = vpack.c.bf16 %v3366_v43, %v3365_v57  ;;  %v3375_v57 = vld [vmem:[%s9548_s1 + $0x7e0] sm:$0xff]  ;;  %v3376_v43 = vld [vmem:[%s9548_s1 + $0x7f0] sm:$0xff] }
0x1034   :  { %3204 = vmatprep.mubr.f32.mxu1 %v9554_v10 }
0x1037   :  { %v6553_v39 = vpop.f32.mrb[72].mxu0  ;;  %3205 = vmatmul.mubr.f32.gmra.mrb[64].mxu1 %v3072_v11  ;;  %v3383_v11 = vld [vmem:[%s9548_s1 + $0x860] sm:$0xff] }
0x1038   :  { %v3042_v14 = vpop.f32.mrb[73].mxu0  ;;  %3210 = vmatprep.mubr.f32.mxu1 %v9554_v10  ;;  %v3048_v60 = vadd.f32 %v6553_v39, %v2931_v58  ;;  %v3384_v39 = vld [vmem:[%s9548_s1 + $0x870] sm:$0xff] }
0x1039   :  { %v3043_v56 = vadd.f32 %v3042_v14, %v2931_v58  ;;  %v6824_v14 = vpack.c.bf16 %v3384_v39, %v3383_v11  ;;  %v3393_v11 = vld [vmem:[%s9548_s1 + $0x900] sm:$0xff]  ;;  %v3394_v39 = vld [vmem:[%s9548_s1 + $0x910] sm:$0xff] }
0x103a   :  { %v3066_v20 = vmul.f32 0.2, %v3048_v60 }
0x103b   :  { %v3065_v17 = vmul.f32 0.2, %v3043_v56 }
0x103c   :  { %v3074_v24 = vmax.f32 %v3048_v60, %v3066_v20  ;;  %v3367_v60 = vld [vmem:[%s9548_s1 + $0x760] sm:$0xff] }
0x103d   :  { %v3073_v22 = vmax.f32 %v3043_v56, %v3065_v17  ;;  %v3368_v56 = vld [vmem:[%s9548_s1 + $0x770] sm:$0xff]  ;;  %v3385_v20 = vld [vmem:[%s9548_s1 + $0x880] sm:$0xff] }
0x103e   :  { %v6826_v17 = vpack.c.bf16 %v3368_v56, %v3367_v60  ;;  %v6844_v60 = vpack.c.bf16 %v3394_v39, %v3393_v11  ;;  %v3377_v56 = vld [vmem:[%s9548_s1 + $0x800] sm:$0xff] }
0x103f   :  { %3211 = vmatmul.mubr.f32.gmra.mrb[66].mxu1 %v3073_v22  ;;  %v3386_v22 = vld [vmem:[%s9548_s1 + $0x890] sm:$0xff] }
0x1040   :  { %3216 = vmatprep.mubr.f32.mxu1 %v9554_v10 }
0x1042   :  { %v6556_v38 = vpop.f32.mrb[74].mxu0 }
0x1043   :  { %3217 = vmatmul.mubr.f32.gmra.mrb[68].mxu1 %v3074_v24  ;;  %v3052_v62 = vpop.f32.mrb[75].mxu0  ;;  %v3058_v26 = vadd.f32 %v6556_v38, %v2931_v58  ;;  %v6828_v24 = vpack.c.bf16 %v3386_v22, %v3385_v20  ;;  %v3369_v38 = vld [vmem:[%s9548_s1 + $0x780] sm:$0xff]  ;;  %v3501_v22 = vld [vmem:[%s9548_s1 + $0x930] sm:$0xff] }
0x1044   :  { %v3053_v27 = vadd.f32 %v3052_v62, %v2931_v58  ;;  %3222 = vmatprep.mubr.f32.mxu1 %v9554_v10  ;;  %v3380_v58 = vld [vmem:[%s9548_s1 + $0x830] sm:$0xff]  ;;  %v3500_v20 = vld [vmem:[%s9548_s1 + $0x920] sm:$0xff] }
0x1045   :  { %v3068_v49 = vmul.f32 0.2, %v3058_v26  ;;  %v6816_v35 = vpack.c.bf16 %v3380_v58, %v3379_v25  ;;  %v3370_v62 = vld [vmem:[%s9548_s1 + $0x790] sm:$0xff]  ;;  %v3389_v58 = vld [vmem:[%s9548_s1 + $0x8c0] sm:$0xff] }
0x1046   :  { %v3067_v61 = vmul.f32 0.2, %v3053_v27 }
0x1047   :  { %v3076_v15 = vmax.f32 %v3058_v26, %v3068_v49  ;;  %6817 = vmatprep.subr.bf16.mxu0 %v6816_v35  ;;  %v6830_v26 = vpack.c.bf16 %v3370_v62, %v3369_v38  ;;  %v3390_v35 = vld [vmem:[%s9548_s1 + $0x8d0] sm:$0xff]  ;;  %v6849_v38 = vpack.c.bf16 %v3501_v22, %v3500_v20 }
0x1048   :  { %v3075_v33 = vmax.f32 %v3053_v27, %v3067_v61  ;;  %6819 = vmatpush3.bf16.msra.mxu0 %v6818_v41  ;;  %v3387_v27 = vld [vmem:[%s9548_s1 + $0x8a0] sm:$0xff]  ;;  %v3388_v61 = vld [vmem:[%s9548_s1 + $0x8b0] sm:$0xff]  ;;  %v6836_v37 = vpack.c.bf16 %v3390_v35, %v3389_v58 }
0x1049   :  { %6821 = vmatprep.subr.bf16.mxu0 %v6820_v55  ;;  %v6832_v49 = vpack.c.bf16 %v3388_v61, %v3387_v27  ;;  %v3374_v41 = vld [vmem:[%s9548_s1 + $0x7d0] sm:$0xff]  ;;  %6850 = vmatpush3.bf16.msra.mxu1 %v6849_v38  ;;  %v3504_v61 = vld [vmem:[%s9548_s1 + $0x960] sm:$0xff] }
0x104a   :  { %3223 = vmatmul.mubr.f32.gmra.mrb[70].mxu1 %v3075_v33  ;;  %v3371_v33 = vld [vmem:[%s9548_s1 + $0x7a0] sm:$0xff]  ;;  %v6838_v48 = vpack.c.bf16 %v3374_v41, %v3373_v40  ;;  %v3392_v55 = vld [vmem:[%s9548_s1 + $0x8f0] sm:$0xff]  ;;  %6851 = vmatprep.subr.bf16.mxu1 %v9553_v32 }
0x104b   :  { %3228 = vmatprep.mubr.f32.mxu1 %v9554_v10  ;;  %v3503_v62 = vld [vmem:[%s9548_s1 + $0x950] sm:$0xff]  ;;  %v3508_v35 = vld [vmem:[%s9548_s1 + $0x9a0] sm:$0xff] }
0x104c   :  { %6823 = vmatpush3.bf16.msra.mxu0 %v6822_v8  ;;  %v6840_v8 = vpack.c.bf16 %v3392_v55, %v3391_v47  ;;  %v3510_v41 = vld [vmem:[%s9548_s1 + $0x9c0] sm:$0xff]  ;;  %v3511_v47 = vld [vmem:[%s9548_s1 + $0x9d0] sm:$0xff] }
0x104d   :  { %6825 = vmatprep.subr.bf16.mxu0 %v6824_v14  ;;  %v6842_v14 = vpack.c.bf16 %v3376_v43, %v3375_v57  ;;  %v5972_v55 = vld [vmem:[%s9550_s2 + $0x22] ss:$8 sm:$0x3] }
0x104e   :  { %3229 = vmatmul.mubr.f32.gmra.mrb[72].mxu1 %v3076_v15  ;;  %v3372_v15 = vld [vmem:[%s9548_s1 + $0x7b0] sm:$0xff]  ;;  %v8520_v57 = vrot.slane %v5972_v55, %v7533_v50  ;;  %v8523_v43 = vrot.slane %v5972_v55, %v7539_v52 }
0x104f   :  { %6589 = vmatprep.mubr.msk.f32.mxu1 %vm7122_vm12, %v9554_v10  ;;  %v6834_v25 = vpack.c.bf16 %v3372_v15, %v3371_v33  ;;  %v3506_v15 = vld [vmem:[%s9548_s1 + $0x980] sm:$0xff] }
0x1050   :  { %6827 = vmatpush3.bf16.msra.mxu0 %v6826_v17  ;;  %v3378_v17 = vld [vmem:[%s9548_s1 + $0x810] sm:$0xff] }
0x1051   :  { %6829 = vmatprep.subr.bf16.mxu0 %v6828_v24  ;;  %v3502_v24 = vld [vmem:[%s9548_s1 + $0x940] sm:$0xff] }
0x1052   :  { %v6852_v27 = vpack.c.bf16 %v3503_v62, %v3502_v24 }
0x1054   :  { %6831 = vmatpush3.bf16.msra.mxu0 %v6830_v26  ;;  %v6846_v26 = vpack.c.bf16 %v3378_v17, %v3377_v56  ;;  %6853 = vmatpush3.bf16.msra.mxu1 %v6852_v27 }
0x1055   :  { %6833 = vmatprep.subr.bf16.mxu0 %v6832_v49  ;;  %v3505_v49 = vld [vmem:[%s9548_s1 + $0x970] sm:$0xff]  ;;  %6854 = vmatprep.subr.bf16.mxu1 %v9553_v32 }
0x1056   :  { %v6855_v33 = vpack.c.bf16 %v3505_v49, %v3504_v61 }
0x1058   :  { %6835 = vmatpush3.bf16.msra.mxu0 %v6834_v25  ;;  %v3507_v25 = vld [vmem:[%s9548_s1 + $0x990] sm:$0xff]  ;;  %6856 = vmatpush3.bf16.msra.mxu1 %v6855_v33 }
0x1059   :  { %6837 = vmatprep.subr.bf16.mxu0 %v6836_v37  ;;  %v6858_v58 = vpack.c.bf16 %v3507_v25, %v3506_v15  ;;  %6857 = vmatprep.subr.bf16.mxu1 %v9553_v32  ;;  %v3509_v37 = vld [vmem:[%s9548_s1 + $0x9b0] sm:$0xff] }
0x105a   :  { %v6861_v40 = vpack.c.bf16 %v3509_v37, %v3508_v35 }
0x105c   :  { %6839 = vmatpush3.bf16.msra.mxu0 %v6838_v48  ;;  %6859 = vmatpush3.bf16.msra.mxu1 %v6858_v58  ;;  %v6864_v48 = vpack.c.bf16 %v3511_v47, %v3510_v41 }
0x105d   :  { %6841 = vmatprep.subr.bf16.mxu0 %v6840_v8  ;;  %6860 = vmatprep.subr.bf16.mxu1 %v9553_v32 }
0x1060   :  { %6843 = vmatpush3.bf16.msra.mxu0 %v6842_v14  ;;  %6862 = vmatpush3.bf16.msra.mxu1 %v6861_v40 }
0x1061   :  { %6845 = vmatprep.subr.bf16.mxu0 %v6844_v60  ;;  %6863 = vmatprep.subr.bf16.mxu1 %v9553_v32 }
0x1064   :  { %6847 = vmatpush3.bf16.msra.mxu0 %v6846_v26  ;;  %6865 = vmatpush3.bf16.msra.mxu1 %v6864_v48 }
0x1065   :  { %6866 = vmatprep.subr.bf16.mxu1 %v9553_v32 }
0x10f9   :  { %v3188_v8 = vpop.f32.mrb[58].mxu1 }
0x10fa   :  { %v3189_v11 = vadd.f32 %v3188_v8, %v8520_v57  ;;  %v3190_v39 = vpop.f32.mrb[59].mxu1 }
0x10fb   :  { %v3191_v14 = vadd.f32 %v3190_v39, %v8523_v43 }
0x10fc   :  { %v3235_v60 = vmul.f32 0.2, %v3189_v11 }
0x10fd   :  { %v3236_v56 = vmul.f32 0.2, %v3191_v14  ;;  %v3194_v17 = vpop.f32.mrb[60].mxu1 }
0x10fe   :  { %v3251_v20 = vmax.f32 %v3189_v11, %v3235_v60  ;;  %v3195_v22 = vadd.f32 %v3194_v17, %v8520_v57  ;;  %v3196_v24 = vpop.f32.mrb[61].mxu1 }
0x10ff   :  { %v3252_v38 = vmax.f32 %v3191_v14, %v3236_v56  ;;  %v3197_v62 = vadd.f32 %v3196_v24, %v8523_v43 }
0x1100   :  { %v3267_v26 = vrot.slane %v3251_v20, 4  ;;  %v3237_v27 = vmul.f32 0.2, %v3195_v22 }
0x1101   :  { %v3273_v61 = vrot.slane %v3252_v38, 4  ;;  %v3238_v49 = vmul.f32 0.2, %v3197_v62 }
0x1102   :  { %v3268_v33 = vmax.f32 %v3251_v20, %v3267_v26  ;;  %v3253_v15 = vmax.f32 %v3195_v22, %v3237_v27 }
0x1103   :  { %v3274_v25 = vmax.f32 %v3252_v38, %v3273_v61  ;;  %v3254_v58 = vmax.f32 %v3197_v62, %v3238_v49 }
0x1104   :  { %v3269_v35 = vrot.slane %v3268_v33, 2  ;;  %v3279_v37 = vrot.slane %v3253_v15, 4 }
0x1105   :  { %v3275_v40 = vrot.slane %v3274_v25, 2  ;;  %v3285_v41 = vrot.slane %v3254_v58, 4 }
0x1106   :  { %v3270_v47 = vmax.f32 %v3268_v33, %v3269_v35  ;;  %v3280_v48 = vmax.f32 %v3253_v15, %v3279_v37  ;;  %v3200_v55 = vpop.f32.mrb[62].mxu1 }
0x1107   :  { %v3276_v8 = vmax.f32 %v3274_v25, %v3275_v40  ;;  %v3286_v11 = vmax.f32 %v3254_v58, %v3285_v41  ;;  %v3201_v39 = vadd.f32 %v3200_v55, %v8520_v57  ;;  %v3202_v14 = vpop.f32.mrb[63].mxu1 }
0x1108   :  { %v3281_v60 = vrot.slane %v3280_v48, 2  ;;  %v3203_v56 = vadd.f32 %v3202_v14, %v8523_v43  ;;  %v3271_v22 = vrot.slane %v3270_v47, 1 }
0x1109   :  { %v3287_v17 = vrot.slane %v3286_v11, 2  ;;  %v3239_v20 = vmul.f32 0.2, %v3201_v39  ;;  %v3277_v26 = vrot.slane %v3276_v8, 1 }
0x110a   :  { %v3282_v24 = vmax.f32 %v3280_v48, %v3281_v60  ;;  %v3240_v38 = vmul.f32 0.2, %v3203_v56  ;;  %v3206_v62 = vpop.f32.mrb[64].mxu1  ;;  %v3272_v41 = vmax.f32 %v3270_v47, %v3271_v22 }
0x110b   :  { %v3288_v27 = vmax.f32 %v3286_v11, %v3287_v17  ;;  %v3255_v61 = vmax.f32 %v3201_v39, %v3239_v20  ;;  %v3207_v49 = vadd.f32 %v3206_v62, %v8520_v57  ;;  %v3208_v33 = vpop.f32.mrb[65].mxu1  ;;  %v3278_v48 = vmax.f32 %v3276_v8, %v3277_v26 }
0x110c   :  { %v3283_v15 = vrot.slane %v3282_v24, 1  ;;  %v3256_v25 = vmax.f32 %v3203_v56, %v3240_v38  ;;  %v3209_v58 = vadd.f32 %v3208_v33, %v8523_v43 }
0x110d   :  { %v3289_v35 = vrot.slane %v3288_v27, 1  ;;  %v3291_v37 = vrot.slane %v3255_v61, 4  ;;  %v3241_v40 = vmul.f32 0.2, %v3207_v49 }
0x110e   :  { %v3284_v55 = vmax.f32 %v3282_v24, %v3283_v15  ;;  %v3297_v14 = vrot.slane %v3256_v25, 4  ;;  %v3242_v32 = vmul.f32 0.2, %v3209_v58 }
0x110f   :  { %v3290_v60 = vmax.f32 %v3288_v27, %v3289_v35  ;;  %v3292_v10 = vmax.f32 %v3255_v61, %v3291_v37  ;;  %v3257_v28 = vmax.f32 %v3207_v49, %v3241_v40 }
0x1110   :  { %v3412_v11 = vsel %vm1107_vm5, %v3284_v55, %v3272_v41  ;;  %v3298_v39 = vmax.f32 %v3256_v25, %v3297_v14  ;;  %v3258_v17 = vmax.f32 %v3209_v58, %v3242_v32 }
0x1111   :  { %v3419_v20 = vsel %vm1107_vm5, %v3290_v60, %v3278_v48  ;;  %v3293_v56 = vrot.slane %v3292_v10, 2  ;;  %v3303_v38 = vrot.slane %v3257_v28, 4 }
0x1112   :  { %v3299_v62 = vrot.slane %v3298_v39, 2  ;;  %v3309_v33 = vrot.slane %v3258_v17, 4  ;;  %v3212_v31 = vpop.f32.mrb[66].mxu1 }
0x1113   :  { %v3294_v30 = vmax.f32 %v3292_v10, %v3293_v56  ;;  %v3304_v47 = vmax.f32 %v3257_v28, %v3303_v38  ;;  %v3213_v22 = vadd.f32 %v3212_v31, %v8520_v57  ;;  %v3214_v24 = vpop.f32.mrb[67].mxu1 }
0x1114   :  { %v3300_v8 = vmax.f32 %v3298_v39, %v3299_v62  ;;  %v3310_v26 = vmax.f32 %v3258_v17, %v3309_v33  ;;  %v3215_v27 = vadd.f32 %v3214_v24, %v8523_v43 }
0x1115   :  { %v3295_v61 = vrot.slane %v3294_v30, 1  ;;  %v3305_v49 = vrot.slane %v3304_v47, 2  ;;  %v3243_v15 = vmul.f32 0.2, %v3213_v22 }
0x1116   :  { %v3301_v32 = vrot.slane %v3300_v8, 1  ;;  %v3311_v25 = vrot.slane %v3310_v26, 2  ;;  %v3244_v58 = vmul.f32 0.2, %v3215_v27  ;;  %v3218_v35 = vpop.f32.mrb[68].mxu1 }
0x1117   :  { %v3296_v37 = vmax.f32 %v3294_v30, %v3295_v61  ;;  %v3306_v40 = vmax.f32 %v3304_v47, %v3305_v49  ;;  %v3259_v41 = vmax.f32 %v3213_v22, %v3243_v15  ;;  %v3219_v10 = vadd.f32 %v3218_v35, %v8520_v57  ;;  %v3220_v28 = vpop.f32.mrb[69].mxu1 }
0x1118   :  { %v3302_v55 = vmax.f32 %v3300_v8, %v3301_v32  ;;  %v3312_v31 = vmax.f32 %v3310_v26, %v3311_v25  ;;  %v3260_v14 = vmax.f32 %v3215_v27, %v3244_v58  ;;  %v3221_v48 = vadd.f32 %v3220_v28, %v8523_v43 }
0x1119   :  { %v3413_v60 = vsel %vm1109_vm6, %v3296_v37, %v3412_v11  ;;  %v3307_v39 = vrot.slane %v3306_v40, 1  ;;  %v3315_v17 = vrot.slane %v3259_v41, 4  ;;  %v3245_v56 = vmul.f32 0.2, %v3219_v10 }
0x111a   :  { %v3313_v38 = vrot.slane %v3312_v31, 1  ;;  %v3321_v62 = vrot.slane %v3260_v14, 4  ;;  %v3246_v33 = vmul.f32 0.2, %v3221_v48  ;;  %v3420_v30 = vsel %vm1109_vm6, %v3302_v55, %v3419_v20 }
0x111b   :  { %v3308_v47 = vmax.f32 %v3306_v40, %v3307_v39  ;;  %v3316_v22 = vmax.f32 %v3259_v41, %v3315_v17  ;;  %v3261_v24 = vmax.f32 %v3219_v10, %v3245_v56 }
0x111c   :  { %v3314_v61 = vmax.f32 %v3312_v31, %v3313_v38  ;;  %v3322_v49 = vmax.f32 %v3260_v14, %v3321_v62  ;;  %v3262_v8 = vmax.f32 %v3221_v48, %v3246_v33 }
0x111d   :  { %v3414_v26 = vsel %vm1111_vm7, %v3308_v47, %v3413_v60  ;;  %v3317_v27 = vrot.slane %v3316_v22, 2  ;;  %v3327_v15 = vrot.slane %v3261_v24, 4  ;;  %v3224_v32 = vpop.f32.mrb[70].mxu1 }
0x111e   :  { %v3323_v11 = vrot.slane %v3322_v49, 2  ;;  %v3333_v25 = vrot.slane %v3262_v8, 4  ;;  %v3225_v58 = vadd.f32 %v3224_v32, %v8520_v57  ;;  %v3226_v35 = vpop.f32.mrb[71].mxu1  ;;  %v3421_v37 = vsel %vm1111_vm7, %v3314_v61, %v3420_v30 }
0x111f   :  { %v3318_v28 = vmax.f32 %v3316_v22, %v3317_v27  ;;  %v3328_v20 = vmax.f32 %v3261_v24, %v3327_v15  ;;  %v3227_v40 = vadd.f32 %v3226_v35, %v8523_v43 }
0x1120   :  { %v3324_v41 = vmax.f32 %v3322_v49, %v3323_v11  ;;  %v3334_v10 = vmax.f32 %v3262_v8, %v3333_v25  ;;  %v3247_v55 = vmul.f32 0.2, %v3225_v58 }
0x1121   :  { %v3319_v31 = vrot.slane %v3318_v28, 1  ;;  %v3329_v14 = vrot.slane %v3328_v20, 2  ;;  %v3248_v48 = vmul.f32 0.2, %v3227_v40  ;;  %v3230_v60 = vpop.f32.mrb[72].mxu1 }
0x1122   :  { %v3325_v39 = vrot.slane %v3324_v41, 1  ;;  %v3335_v17 = vrot.slane %v3334_v10, 2  ;;  %v3263_v56 = vmax.f32 %v3225_v58, %v3247_v55  ;;  %v3231_v38 = vadd.f32 %v3230_v60, %v8520_v57  ;;  %v3232_v62 = vpop.f32.mrb[73].mxu1 }
0x1123   :  { %v3320_v33 = vmax.f32 %v3318_v28, %v3319_v31  ;;  %v3330_v47 = vmax.f32 %v3328_v20, %v3329_v14  ;;  %v3264_v30 = vmax.f32 %v3227_v40, %v3248_v48  ;;  %v3233_v22 = vadd.f32 %v3232_v62, %v8523_v43 }
0x1124   :  { %v3326_v24 = vmax.f32 %v3324_v41, %v3325_v39  ;;  %v3336_v61 = vmax.f32 %v3334_v10, %v3335_v17  ;;  %v3339_v49 = vrot.slane %v3263_v56, 4  ;;  %v3249_v8 = vmul.f32 0.2, %v3231_v38 }
0x1125   :  { %v3331_v27 = vrot.slane %v3330_v47, 1  ;;  %v3345_v15 = vrot.slane %v3264_v30, 4  ;;  %v3250_v32 = vmul.f32 0.2, %v3233_v22  ;;  %v3415_v11 = vsel %vm1113_vm8, %v3320_v33, %v3414_v26 }
0x1126   :  { %v3337_v25 = vrot.slane %v3336_v61, 1  ;;  %v3340_v35 = vmax.f32 %v3263_v56, %v3339_v49  ;;  %v3265_v58 = vmax.f32 %v3231_v38, %v3249_v8  ;;  %v3422_v57 = vsel %vm1113_vm8, %v3326_v24, %v3421_v37 }
0x1127   :  { %v3332_v55 = vmax.f32 %v3330_v47, %v3331_v27  ;;  %v3346_v28 = vmax.f32 %v3264_v30, %v3345_v15  ;;  %v3266_v20 = vmax.f32 %v3233_v22, %v3250_v32 }
0x1128   :  { %v3338_v40 = vmax.f32 %v3336_v61, %v3337_v25  ;;  %v3341_v31 = vrot.slane %v3340_v35, 2  ;;  %v3351_v43 = vrot.slane %v3265_v58, 4  ;;  %v9570_v25 = vmov 0.0  }
0x1129   :  { %v3347_v41 = vrot.slane %v3346_v28, 2  ;;  %v3357_v10 = vrot.slane %v3266_v20, 4  ;;  %v3416_v14 = vsel %vm1115_vm9, %v3332_v55, %v3415_v11 }
0x112a   :  { %v3342_v48 = vmax.f32 %v3340_v35, %v3341_v31  ;;  %v3352_v60 = vmax.f32 %v3265_v58, %v3351_v43  ;;  %v3423_v39 = vsel %vm1115_vm9, %v3338_v40, %v3422_v57  ;;  %v3512_v35 = vld [vmem:[%s9548_s1 + $0x9e0] sm:$0xff]  ;;  %v3513_v58 = vld [vmem:[%s9548_s1 + $0x9f0] sm:$0xff]  ;;  %v3592_v40 = vld [vmem:[%s9548_s1 + $0xa38] sm:$0xff] }
0x112b   :  { %v3348_v26 = vmax.f32 %v3346_v28, %v3347_v41  ;;  %v3358_v17 = vmax.f32 %v3266_v20, %v3357_v10  ;;  %v3514_v57 = vld [vmem:[%s9548_s1 + $0xa00] sm:$0xff]  ;;  %v6867_v55 = vpack.c.bf16 %v3513_v58, %v3512_v35  ;;  %v3515_v28 = vld [vmem:[%s9548_s1 + $0xa10] sm:$0xff]  ;;  %v3590_v20 = vld [vmem:[%s9548_s1 + $0xa28] sm:$0xff] }
0x112c   :  { %v3343_v56 = vrot.slane %v3342_v48, 1  ;;  %v3353_v38 = vrot.slane %v3352_v60, 2  ;;  %v3589_v31 = vld [vmem:[%s9548_s1 + $0xa20] sm:$0xff]  ;;  %v6870_v43 = vpack.c.bf16 %v3515_v28, %v3514_v57  ;;  %v6872_v41 = vpack.c.bf16 %v3592_v40, %v3590_v20  ;;  %v3591_v10 = vld [vmem:[%s9548_s1 + $0xa30] sm:$0xff]  ;;  %v3604_v35 = vld [vmem:[%s9548_s1 + $0xa98] sm:$0xff] }
0x112d   :  { %v3349_v62 = vrot.slane %v3348_v26, 1  ;;  %v3359_v37 = vrot.slane %v3358_v17, 2  ;;  %6868 = vmatpush3.bf16.msra.mxu1 %v6867_v55  ;;  %v3601_v58 = vld [vmem:[%s9548_s1 + $0xa80] sm:$0xff]  ;;  %v3603_v57 = vld [vmem:[%s9548_s1 + $0xa90] sm:$0xff] }
0x112e   :  { %v3344_v33 = vmax.f32 %v3342_v48, %v3343_v56  ;;  %v3354_v47 = vmax.f32 %v3352_v60, %v3353_v38  ;;  %v3596_v48 = vld [vmem:[%s9548_s1 + $0xa58] sm:$0xff]  ;;  %v9571_v60 = vmov 0.0|0.0   ;;  %v3595_v56 = vld [vmem:[%s9548_s1 + $0xa50] sm:$0xff]  ;;  %v3598_v38 = vld [vmem:[%s9548_s1 + $0xa68] sm:$0xff]  ;;  %6873 = vmatprep.subr.bf16.mxu0 %v6872_v41  ;;  %v6886_v28 = vpack.c.bf16 %v3603_v57, %v3601_v58 }
0x112f   :  { %v3360_v30 = vmax.f32 %v3358_v17, %v3359_v37  ;;  %v3350_v22 = vmax.f32 %v3348_v26, %v3349_v62  ;;  %6869 = vmatprep.subr.bf16.mxu1 %v9571_v60  ;;  %v3593_v17 = vld [vmem:[%s9548_s1 + $0xa40] sm:$0xff]  ;;  %v3600_v62 = vld [vmem:[%s9548_s1 + $0xa78] sm:$0xff] }
0x1130   :  { %v3355_v24 = vrot.slane %v3354_v47, 1  ;;  %v3417_v61 = vsel %vm1117_vm10, %v3344_v33, %v3416_v14  ;;  %v3594_v14 = vld [vmem:[%s9548_s1 + $0xa48] sm:$0xff]  ;;  %v6878_v37 = vpack.c.bf16 %v3595_v56, %v3593_v17  ;;  %v6880_v33 = vpack.c.bf16 %v3600_v62, %v3598_v38  ;;  %v3516_v20 = vld [vmem:[%s9550_s2 + $0x24] ss:$0 sm:$0xff] }
0x1131   :  { %v3361_v49 = vrot.slane %v3360_v30, 1  ;;  %v3424_v8 = vsel %vm1117_vm10, %v3350_v22, %v3423_v39  ;;  %v6874_v39 = vpack.c.bf16 %v3591_v10, %v3589_v31  ;;  %v6876_v26 = vpack.c.bf16 %v3596_v48, %v3594_v14  ;;  %6871 = vmatpush3.bf16.msra.mxu1 %v6870_v43  ;;  %v8624_v14 = vpop.permute.xlu0 %3907  ;;  %v8626_v48 = vpop.permute.xlu1 %3755 }
0x1132   :  { %v3356_v27 = vmax.f32 %v3354_v47, %v3355_v24  ;;  %9572 = vst [vmem:[#allocation15_spill] sm:$0xff] %v8626_v48 }
0x1133   :  { %v3362_v15 = vmax.f32 %v3360_v30, %v3361_v49  ;;  %v3395_v30 = vld [vmem:[%s9550_s2 + $0x23] ss:$0 sm:$0xff] }
0x1134   :  { %v3418_v32 = vsel %vm1119_vm11, %v3356_v27, %v3417_v61  ;;  %v3597_v27 = vld [vmem:[%s9548_s1 + $0xa60] sm:$0xff] }
0x1135   :  { %v3425_v11 = vsel %vm1119_vm11, %v3362_v15, %v3424_v8  ;;  %v3599_v15 = vld [vmem:[%s9548_s1 + $0xa70] sm:$0xff]  ;;  %v8628_v60 = vpop.permute.xlu0 %4227 }
0x1136   :  { %3492 = vmatprep.mubr.f32.mxu0 %v3425_v11  ;;  %v6882_v11 = vpack.c.bf16 %v3599_v15, %v3597_v27 }
0x1137   :  { %3493 = vmatmul.mubr.f32.vlgmr.msra.gmra.mrb[76].mxu0 %v3418_v32  ;;  %v3602_v32 = vld [vmem:[%s9548_s1 + $0xa88] sm:$0xff] }
0x1138   :  { %3685 = vmatprep.mubr.f32.mxu0 %v9570_v25  ;;  %6875 = vmatpush1.bf16.msra.mxu0 %v6874_v39  ;;  %v6884_v55 = vpack.c.bf16 %v3604_v35, %v3602_v32  ;;  %v8630_v39 = vpop.permute.xlu1 %4445 }
0x1139   :  { %6877 = vmatprep.subr.bf16.mxu0 %v6876_v26  ;;  %9573 = vst [vmem:[#allocation16_spill] sm:$0xff] %v8630_v39  ;;  %v8632_v26 = vpop.permute.xlu0 %4525 }
0x113c   :  { %6879 = vmatpush1.bf16.msra.mxu0 %v6878_v37  ;;  %v8634_v17 = vpop.permute.xlu1 %3831 }
0x113d   :  { %6881 = vmatprep.subr.bf16.mxu0 %v6880_v33  ;;  %v8636_v56 = vpop.permute.xlu0 %4685 }
0x1140   :  { %6883 = vmatpush1.bf16.msra.mxu0 %v6882_v11  ;;  %v8638_v38 = vpop.permute.xlu1 %3991 }
0x1141   :  { %6885 = vmatprep.subr.bf16.mxu0 %v6884_v55  ;;  %v8640_v62 = vpop.permute.xlu0 %4845 }
0x1144   :  { %6887 = vmatpush1.bf16.msra.mxu0 %v6886_v28  ;;  %v8642_v37 = vpop.permute.xlu1 %4071 }
0x1145   :  { %v8644_v33 = vpop.permute.xlu0 %3823 }
0x120a   :  { %v6231_v47 = vpop.f32.mrb[76].mxu0 }
0x120b   :  { %v6232_v22 = vpop.f32.mrb[77].mxu0 }
0x120c   :  { %v6233_v24 = vadd.f32 %v6232_v22, %v6231_v47  ;;  %v8646_v47 = vpop.permute.xlu1 %4151 }
0x120e   :  { %v3495_v61 = vadd.f32 %v6233_v24, %v3395_v30  ;;  %v4064_v30 = vpop.permute.xlu0 %4063 }
0x1210   :  { %v3498_v49 = vmul.f32 0.2, %v3495_v61  ;;  %v8648_v22 = vpop.permute.xlu1 %4311 }
0x1212   :  { %v3499_v8 = vmax.f32 %v3495_v61, %v3498_v49  ;;  %v8650_v24 = vpop.permute.xlu0 %4143 }
0x1214   :  { %6590 = vmatmul.mubr.f32.vlgmr.msra.gmra.mrb[74].mxu1 %v3499_v8  ;;  %v8652_v61 = vpop.permute.xlu1 %4529 }
0x1216   :  { %v8654_v49 = vpop.permute.xlu0 %4521 }
0x1218   :  { %v8656_v8 = vpop.permute.xlu1 %4689 }
0x121a   :  { %v8658_v27 = vpop.permute.xlu0 %5001 }
0x121c   :  { %v8660_v15 = vpop.permute.xlu1 %4849 }
0x121e   :  { %v8662_v32 = vpop.permute.xlu0 %3995 }
0x121f   :  { %9574 = vst [vmem:[#allocation17_spill] sm:$0xff] %v8662_v32 }
0x1220   :  { %v8664_v11 = vpop.permute.xlu1 %5009 }
0x1222   :  { %v8666_v35 = vpop.permute.xlu0 %4075 }
0x1223   :  { %9575 = vst [vmem:[#allocation18_spill] sm:$0xff] %v8666_v35 }
0x1224   :  { %v8668_v58 = vpop.permute.xlu1 %4441 }
0x1225   :  { %9576 = vst [vmem:[#allocation19_spill] sm:$0xff] %v8668_v58 }
0x1226   :  { %v8670_v57 = vpop.permute.xlu0 %4235 }
0x1227   :  { %9577 = vst [vmem:[#allocation20_spill] sm:$0xff] %v8670_v57 }
0x1228   :  { %v8672_v55 = vpop.permute.xlu1 %3843 }
0x122a   :  { %v8674_v28 = vpop.permute.xlu0 %4693 }
0x122b   :  { %9578 = vst [vmem:[#allocation21_spill] sm:$0xff] %v8674_v28 }
0x12e7   :  { %v3583_v40 = vpop.f32.mrb[74].mxu1 }
0x12e8   :  { %v3584_v31 = vadd.f32 %v3583_v40, %v3516_v20  ;;  %v6591_v43 = vpop.f32.mrb[75].mxu1  ;;  %v8676_v20 = vpop.permute.xlu1 %3923 }
0x12e9   :  { %v8678_v40 = vpop.permute.xlu0 %4853 }
0x12ea   :  { %v3587_v41 = vmul.f32 0.2, %v3584_v31  ;;  %9579 = vst [vmem:[#allocation22_spill] sm:$0xff] %v8678_v40 }
0x12ec   :  { %v3588_v10 = vmax.f32 %v3584_v31, %v3587_v41  ;;  %v8680_v31 = vpop.permute.xlu1 %4163 }
0x12ed   :  { %9580 = vst [vmem:[#allocation23_spill] sm:$0xff] %v8680_v31  ;;  %v8682_v43 = vpop.permute.xlu0 %4933 }
0x12ee   :  { %5974 = vmatmul.mubr.msk.f32.vlgmr.msra.gmra.mrb[78].mxu0 %vm1300_vm13, %v3588_v10  ;;  %9581 = vst [vmem:[#allocation24_spill] sm:$0xff] %v8682_v43 }
0x12f0   :  { %v8684_v41 = vpop.permute.xlu1 %4323 }
0x12f1   :  { %9582 = vst [vmem:[#allocation25_spill] sm:$0xff] %v8684_v41  ;;  %v8686_v10 = vpop.permute.xlu0 %3911 }
0x12f4   :  { %v8688_v25 = vpop.permute.xlu1 %4541 }
0x12f5   :  { %9583 = vst [vmem:[#allocation26_spill] sm:$0xff] %v8688_v25  ;;  %v8690_v39 = vpop.permute.xlu0 %4231 }
0x12f8   :  { %v8692_v48 = vpop.permute.xlu1 %4621 }
0x12f9   :  { %9584 = vst [vmem:[#allocation27_spill] sm:$0xff] %v8692_v48  ;;  %v8694_v58 = vpop.permute.xlu0 %4609 }
0x12fc   :  { %v8696_v28 = vpop.permute.xlu1 %4781 }
0x12fd   :  { %9585 = vst [vmem:[#allocation28_spill] sm:$0xff] %v8696_v28  ;;  %v8698_v19 = vpop.permute.xlu0 %4769 }
0x1300   :  { %v8700_v40 = vpop.permute.xlu1 %4861 }
0x1301   :  { %9586 = vst [vmem:[#allocation29_spill] sm:$0xff] %v8700_v40  ;;  %v8702_v31 = vpop.permute.xlu0 %4929 }
0x1304   :  { %v8704_v43 = vpop.permute.xlu1 %5021 }
0x1305   :  { %9587 = vst [vmem:[#allocation30_spill] sm:$0xff] %v8704_v43  ;;  %v8706_v41 = vpop.permute.xlu0 %3751 }
0x1306   :  { %9588 = vst [vmem:[#allocation31_spill] sm:$0xff] %v8706_v41  ;;  %v5973_v41 = vld [vmem:[%s9550_s2 + $0x25] ss:$8 sm:$0x3] }
0x1307   :  { %v3611_v32 = vrot.slane %v5973_v41, %v7533_v50  ;;  %v3615_v6 = vrot.slane %v5973_v41, %v7539_v52 }
0x1308   :  { %v8708_v0 = vpop.permute.xlu1 %3839 }
0x1309   :  { %v8710_v57 = vpop.permute.xlu0 %4003 }
0x130a   :  { %9589 = vst [vmem:[#allocation32_spill] sm:$0xff] %v8710_v57 }
0x130c   :  { %v8712_v25 = vpop.permute.xlu1 %3919 }
0x130d   :  { %v8714_v48 = vpop.permute.xlu0 %4083 }
0x130e   :  { %9590 = vst [vmem:[#allocation33_spill] sm:$0xff] %v8714_v48 }
0x1310   :  { %v8716_v59 = vpop.permute.xlu1 %4079 }
0x1311   :  { %v8718_v28 = vpop.permute.xlu0 %4243 }
0x1312   :  { %9591 = vst [vmem:[#allocation34_spill] sm:$0xff] %v8718_v28 }
0x1314   :  { %v8720_v54 = vpop.permute.xlu1 %4239 }
0x1315   :  { %v8722_v40 = vpop.permute.xlu0 %4701 }
0x1316   :  { %9592 = vst [vmem:[#allocation35_spill] sm:$0xff] %v8722_v40 }
0x1318   :  { %v8724_v35 = vpop.permute.xlu1 %4319 }
0x1319   :  { %v8726_v43 = vpop.permute.xlu0 %4941 }
0x131a   :  { %9593 = vst [vmem:[#allocation36_spill] sm:$0xff] %v8726_v43 }
0x131c   :  { %v8731_v18 = vpop.permute.xlu1 %4537 }
0x131d   :  { %9594 = vst [vmem:[#allocation37_spill] sm:$0xff] %v8731_v18  ;;  %v8735_v16 = vpop.permute.xlu0 %3763 }
0x131e   :  { %9595 = vst [vmem:[#allocation38_spill] sm:$0xff] %v8735_v16 }
0x1320   :  { %v8737_v9 = vpop.permute.xlu1 %4617 }
0x1321   :  { %9596 = vst [vmem:[#allocation39_spill] sm:$0xff] %v8737_v9  ;;  %v8753_v41 = vpop.permute.xlu0 %4453 }
0x1322   :  { %9597 = vst [vmem:[#allocation40_spill] sm:$0xff] %v8753_v41 }
0x13c1   :  { %v3687_v28 = vpop.f32.mrb[78].mxu0 }
0x13c2   :  { %v8739_v40 = vadd.f32 %v3687_v28, %v3611_v32  ;;  %v3689_v46 = vpop.f32.mrb[79].mxu0  ;;  %v8755_v32 = vpop.permute.xlu1 %4937 }
0x13c3   :  { %v8741_v48 = vadd.f32 %v3689_v46, %v3615_v6  ;;  %9598 = vst [vmem:[#allocation41_spill] sm:$0xff] %v8755_v32  ;;  %v8764_v28 = vpop.permute.xlu0 %3999 }
0x13c4   :  { %v3700_v43 = vrot.slane %v8739_v40, %v7675_v44  ;;  %5846 = vst [vmem:[%s9551_s4] sm:$0xff] %v8739_v40 }
0x13c5   :  { %5847 = vst [vmem:[%s9551_s4 + $0x8] sm:$0xff] %v8741_v48  ;;  %v8770_v16 = vrot.slane %v8741_v48, %v7675_v44  ;;  %s7143_s4 = smov 64  }
0x13c6   :  { %v8758_v46 = vrot.slane %v3700_v43, %v7675_v44  ;;  %v8766_v52 = vpop.permute.xlu1 %5017 }
0x13c7   :  { %9599 = vst [vmem:[#allocation42_spill] sm:$0xff] %v8766_v52  ;;  %v8777_v32 = vpop.permute.xlu0 %4159  ;;  %v3708_v52 = vcombine.high %v3700_v43, %v3700_v43  ;;  %v8783_v18 = vrot.slane %v8770_v16, %v7675_v44 }
0x13c8   :  { %v8762_v6 = vrot.slane %v8758_v46, %v7533_v50 }
0x13c9   :  { %v8796_v43 = vrot.slane %v8783_v18, %v7533_v50 }
0x13ca   :  { %v4094_v9 = vmul.f32 %v4064_v30, %v8762_v6  ;;  %v3854_v41 = vmul.f32 %v8644_v33, %v8762_v6  ;;  %v8779_v57 = vpop.permute.xlu1 %3931  ;;  %v4174_v30 = vmul.f32 %v8650_v24, %v8762_v6  ;;  %v3934_v33 = vmul.f32 %v8129_v1, %v8762_v6 }
0x13cb   :  { %9600 = vst [vmem:[#allocation43_spill] sm:$0xff] %v8779_v57  ;;  %v4014_v24 = vmul.f32 %v8133_v34, %v8762_v6  ;;  %v8802_v1 = vpop.permute.xlu0 %4697  ;;  %v4552_v34 = vmul.f32 %v8654_v49, %v8796_v43 }
0x13cc   :  { %4110 = vrot.lane.b32.xlu0 %v4094_v9, %s7143_s4  ;;  %3870 = vrot.lane.b32.xlu1 %v3854_v41, %s7144_s14  ;;  %v8792_v9 = vrot.slane %v3708_v52, %v7675_v44  ;;  %v4254_v41 = vmul.f32 %v8137_v2, %v8762_v6  ;;  %v4334_v2 = vmul.f32 %v8142_v3, %v8762_v6 }
0x13cd   :  { %v4712_v3 = vmul.f32 %v8157_v12, %v8796_v43 }
0x13ce   :  { %v8804_v57 = vpop.permute.xlu1 %4011  ;;  %v8810_v52 = vrot.slane %v8792_v9, %v7533_v50 }
0x13d0   :  { %4190 = vrot.lane.b32.xlu0 %v4174_v30, %s7145_s15  ;;  %3950 = vrot.lane.b32.xlu1 %v3934_v33, %s7146_s16  ;;  %v8818_v30 = vpop.permute.xlu0 %4777  ;;  %v3935_v49 = vmul.f32 %v8624_v14, %v8810_v52 }
0x13d2   :  { %v8820_v33 = vpop.permute.xlu1 %4091 }
0x13d4   :  { %4270 = vrot.lane.b32.xlu0 %v4254_v41, %s7147_s17  ;;  %4030 = vrot.lane.b32.xlu1 %v4014_v24, %s7148_s18  ;;  %v4632_v41 = vmul.f32 %v8147_v4, %v8796_v43  ;;  %v3855_v24 = vmul.f32 %v8056_v5, %v8810_v52  ;;  %v4792_v5 = vmul.f32 %v8161_v21, %v8796_v43 }
0x13d5   :  { %v4015_v4 = vmul.f32 %v8064_v13, %v8810_v52  ;;  %v3738_v13 = vcombine.high %v8758_v46, %v8758_v46  ;;  %v4952_v21 = vmul.f32 %v8170_v42, %v8796_v43  ;;  %v4335_v42 = vmul.f32 %v8090_v29, %v8810_v52 }
0x13d8   :  { %4350 = vrot.lane.b32.xlu0 %v4334_v2, %s7149_s19  ;;  %4568 = vrot.lane.b32.xlu1 %v4552_v34, %s7144_s14  ;;  %v8832_v2 = vpop.permute.xlu0 %4857  ;;  %v8834_v34 = vpop.permute.xlu1 %4251 }
0x13dc   :  { %4648 = vrot.lane.b32.xlu1 %v4632_v41, %s7146_s16  ;;  %3872 = vrot.lane.b32.xlu0 %v3855_v24, %s7144_s14  ;;  %v8844_v12 = vpop.permute.xlu0 %3759  ;;  %v8846_v14 = vpop.permute.xlu1 %4331  ;;  %v4872_v41 = vmul.f32 %v8165_v53, %v8796_v43  ;;  %v4175_v24 = vmul.f32 %v8080_v23, %v8810_v52  ;;  %v8867_v23 = vrot.slane %v3738_v13, %v7533_v50 }
0x13dd   :  { %v5032_v53 = vmul.f32 %v8658_v27, %v8796_v43 }
0x13de   :  { %v4096_v27 = vmul.f32 %v8642_v37, %v8867_v23  ;;  %v3856_v13 = vmul.f32 %v8634_v17, %v8867_v23  ;;  %v3936_v17 = vmul.f32 %v8686_v10, %v8867_v23  ;;  %v4016_v10 = vmul.f32 %v8638_v38, %v8867_v23 }
0x13e0   :  { %4728 = vrot.lane.b32.xlu1 %v4712_v3, %s7148_s18  ;;  %3952 = vrot.lane.b32.xlu0 %v3935_v49, %s7146_s16  ;;  %v4255_v3 = vmul.f32 %v8628_v60, %v8810_v52  ;;  %v8860_v49 = vpop.permute.xlu0 %4449 }
0x13e4   :  { %4808 = vrot.lane.b32.xlu1 %v4792_v5, %s7143_s4  ;;  %4032 = vrot.lane.b32.xlu0 %v4015_v4, %s7148_s18  ;;  %v8862_v5 = vpop.permute.xlu1 %4549  ;;  %v8875_v60 = vpop.permute.xlu0 %3851  ;;  %v3693_v4 = vcombine.high %v8739_v40, %v8739_v40  ;;  %v4176_v40 = vmul.f32 %v8646_v47, %v8867_v23  ;;  %v4256_v47 = vmul.f32 %v8690_v39, %v8867_v23 }
0x13e5   :  { %v4336_v39 = vmul.f32 %v8648_v22, %v8867_v23 }
0x13e6   :  { %v8888_v29 = vrot.slane %v3693_v4, %v7675_v44 }
0x13e8   :  { %4888 = vrot.lane.b32.xlu1 %v4872_v41, %s7145_s15  ;;  %4192 = vrot.lane.b32.xlu0 %v4175_v24, %s7145_s15  ;;  %v8877_v46 = vpop.permute.xlu1 %4629  ;;  %v4095_v41 = vmul.f32 %v8072_v7, %v8810_v52  ;;  %v4398_v24 = vcombine.high %v8770_v16, %v8770_v16  ;;  %v8896_v7 = vpop.permute.xlu0 %4171  ;;  %v8904_v37 = vrot.slane %v8888_v29, %v7675_v44 }
0x13ea   :  { %v8907_v16 = vrot.slane %v4398_v24, %v7675_v44 }
0x13ec   :  { %4968 = vrot.lane.b32.xlu1 %v4952_v21, %s7147_s17  ;;  %4272 = vrot.lane.b32.xlu0 %v4255_v3, %s7147_s17  ;;  %v8898_v21 = vpop.permute.xlu1 %4869  ;;  %v8915_v3 = vpop.permute.xlu0 %4709  ;;  %v8925_v4 = vrot.slane %v8907_v16, %v7533_v50 }
0x13f0   :  { %5048 = vrot.lane.b32.xlu1 %v5032_v53, %s7149_s19  ;;  %4352 = vrot.lane.b32.xlu0 %v4335_v42, %s7149_s19  ;;  %v8917_v53 = vpop.permute.xlu1 %4949  ;;  %v8921_v42 = vrot.slane %v8904_v37, %v7533_v50 }
0x13f2   :  { %v3858_v24 = vmul.f32 %v8708_v0, %v8921_v42 }
0x13f4   :  { %4112 = vrot.lane.b32.xlu1 %v4095_v41, %s7143_s4  ;;  %4114 = vrot.lane.b32.xlu0 %v4096_v27, %s7143_s4  ;;  %v4428_v41 = vcombine.high %v8783_v18, %v8783_v18  ;;  %v4553_v27 = vmul.f32 %v8632_v26, %v8925_v4  ;;  %v4633_v18 = vmul.f32 %v8098_v36, %v8925_v4 }
0x13f5   :  { %v3938_v26 = vmul.f32 %v8712_v25, %v8921_v42  ;;  %v4098_v25 = vmul.f32 %v8716_v59, %v8921_v42 }
0x13f6   :  { %v8946_v38 = vrot.slane %v4428_v41, %v7533_v50  ;;  %v4383_v41 = vcombine.high %v8741_v48, %v8741_v48 }
0x13f8   :  { %3874 = vrot.lane.b32.xlu1 %v3856_v13, %s7144_s14  ;;  %4194 = vrot.lane.b32.xlu0 %v4176_v40, %s7145_s15  ;;  %v8939_v13 = vpop.permute.xlu0 %4789  ;;  %v8941_v40 = vpop.permute.xlu1 %3847  ;;  %v4634_v36 = vmul.f32 %v8694_v58, %v8946_v38 }
0x13fc   :  { %3954 = vrot.lane.b32.xlu1 %v3936_v17, %s7146_s16  ;;  %4274 = vrot.lane.b32.xlu0 %v4256_v47, %s7147_s17  ;;  %v8954_v0 = vpop.permute.xlu0 %5029  ;;  %v8956_v22 = vpop.permute.xlu1 %3927  ;;  %v4554_v17 = vmul.f32 %v8652_v61, %v8946_v38  ;;  %v4018_v47 = vmul.f32 %v8764_v28, %v8921_v42  ;;  %v4714_v61 = vmul.f32 %v8656_v8, %v8946_v38 }
0x13fd   :  { %v4178_v28 = vmul.f32 %v8777_v32, %v8921_v42  ;;  %v4258_v8 = vmul.f32 %v8720_v54, %v8921_v42  ;;  %v8993_v32 = vrot.slane %v4383_v41, %v7675_v44 }
0x13ff   :  { %v9009_v54 = vrot.slane %v8993_v32, %v7675_v44 }
0x1400   :  { %4034 = vrot.lane.b32.xlu1 %v4016_v10, %s7148_s18  ;;  %4354 = vrot.lane.b32.xlu0 %v4336_v39, %s7149_s19  ;;  %v8968_v10 = vpop.permute.xlu0 %3771  ;;  %v8970_v39 = vpop.permute.xlu1 %4087 }
0x1404   :  { %4570 = vrot.lane.b32.xlu0 %v4553_v27, %s7144_s14  ;;  %3878 = vrot.lane.b32.xlu1 %v3858_v24, %s7144_s14  ;;  %v8980_v58 = vpop.permute.xlu0 %4461  ;;  %v8982_v59 = vpop.permute.xlu1 %4247  ;;  %v5033_v27 = vmul.f32 %v8115_v45, %v8925_v4  ;;  %v4874_v24 = vmul.f32 %v8660_v15, %v8946_v38  ;;  %v3709_v45 = vcombine.high %v8888_v29, %v8888_v29  ;;  %v5080_v29 = vld [vmem:[%s9548_s1 + $0xaa0] sm:$0xff] }
0x1405   :  { %9601 = vst [vmem:[#allocation44_spill] sm:$0xff] %v8980_v58  ;;  %v4954_v15 = vmul.f32 %v8702_v31, %v8946_v38 }
0x1408   :  { %4650 = vrot.lane.b32.xlu0 %v4633_v18, %s7146_s16  ;;  %3958 = vrot.lane.b32.xlu1 %v3938_v26, %s7146_s16  ;;  %v4338_v18 = vmul.f32 %v8724_v35, %v8921_v42  ;;  %v8999_v48 = vpop.permute.xlu0 %4007  ;;  %v9001_v26 = vpop.permute.xlu1 %4327  ;;  %v4713_v35 = vmul.f32 %v8636_v56, %v8925_v4  ;;  %v9032_v56 = vrot.slane %v9009_v54, %v7533_v50 }
0x140c   :  { %4572 = vrot.lane.b32.xlu0 %v4554_v17, %s7144_s14  ;;  %4038 = vrot.lane.b32.xlu1 %v4018_v47, %s7148_s18  ;;  %v9018_v17 = vrot.slane %v3709_v45, %v7675_v44  ;;  %v5081_v47 = vld [vmem:[%s9548_s1 + $0xab0] sm:$0xff]  ;;  %v9028_v31 = vpop.permute.xlu1 %4545  ;;  %v4794_v45 = vmul.f32 %v8698_v19, %v8946_v38 }
0x140e   :  { %v9042_v41 = vrot.slane %v9018_v17, %v7533_v50 }
0x1410   :  { %4652 = vrot.lane.b32.xlu0 %v4634_v36, %s7146_s16  ;;  %4118 = vrot.lane.b32.xlu1 %v4098_v25, %s7143_s4  ;;  %v9026_v36 = vpop.permute.xlu0 %4167  ;;  %v5034_v25 = vmul.f32 %v8664_v11, %v8946_v38 }
0x1414   :  { %4732 = vrot.lane.b32.xlu0 %v4714_v61, %s7148_s18  ;;  %4198 = vrot.lane.b32.xlu1 %v4178_v28, %s7145_s15  ;;  %v4793_v61 = vmul.f32 %v8105_v51, %v8925_v4  ;;  %v6888_v28 = vpack.c.bf16 %v5081_v47, %v5080_v29  ;;  %v9048_v11 = vpop.permute.xlu0 %4625  ;;  %v9050_v51 = vpop.permute.xlu1 %4705  ;;  %v9603_v29 = vld [vmem:[#allocation32_spill] sm:$0xff] }
0x1415   :  { %v4019_v47 = vmul.f32 %v9603_v29, %v9042_v41 }
0x1416   :  { %6889 = vmatprep.subr.bf16.mxu0 %v6888_v28 }
0x1417   :  { %6891 = vmatpush3.bf16.msra.mxu0 %v6888_v28  ;;  %v9605_v28 = vld [vmem:[#allocation33_spill] sm:$0xff] }
0x1418   :  { %5050 = vrot.lane.b32.xlu0 %v5033_v27, %s7149_s19  ;;  %4278 = vrot.lane.b32.xlu1 %v4258_v8, %s7147_s17  ;;  %v4796_v27 = vmul.f32 %v8818_v30, %v9032_v56  ;;  %v4873_v8 = vmul.f32 %v8640_v62, %v8925_v4  ;;  %v9060_v62 = vpop.permute.xlu0 %4945  ;;  %v9062_v30 = vpop.permute.xlu1 %4785 }
0x141c   :  { %4892 = vrot.lane.b32.xlu0 %v4874_v24, %s7145_s15  ;;  %4358 = vrot.lane.b32.xlu1 %v4338_v18, %s7149_s19  ;;  %v4953_v24 = vmul.f32 %v8111_v63, %v8925_v4  ;;  %v3859_v18 = vmul.f32 %v8672_v55, %v9042_v41  ;;  %v3739_v63 = vcombine.high %v8904_v37, %v8904_v37  ;;  %v9602_v55 = vld [vmem:[#allocation37_spill] sm:$0xff] }
0x141e   :  { %v9083_v19 = vrot.slane %v3739_v63, %v7533_v50 }
0x1420   :  { %4972 = vrot.lane.b32.xlu0 %v4954_v15, %s7147_s17  ;;  %4730 = vrot.lane.b32.xlu1 %v4713_v35, %s7148_s18  ;;  %v3939_v15 = vmul.f32 %v8676_v20, %v9042_v41  ;;  %v4556_v35 = vmul.f32 %v9602_v55, %v9032_v56  ;;  %v9604_v20 = vld [vmem:[#allocation39_spill] sm:$0xff]  ;;  %v4876_v55 = vmul.f32 %v8832_v2, %v9032_v56 }
0x1421   :  { %v4636_v37 = vmul.f32 %v9604_v20, %v9032_v56  ;;  %v4020_v2 = vmul.f32 %v8999_v48, %v9083_v19 }
0x1424   :  { %5052 = vrot.lane.b32.xlu0 %v5034_v25, %s7149_s19  ;;  %4810 = vrot.lane.b32.xlu1 %v4793_v61, %s7143_s4  ;;  %v9076_v25 = vpop.permute.xlu0 %3767  ;;  %v9078_v61 = vpop.permute.xlu1 %4865 }
0x1428   :  { %4816 = vrot.lane.b32.xlu0 %v4796_v27, %s7143_s4  ;;  %4890 = vrot.lane.b32.xlu1 %v4873_v8, %s7145_s15  ;;  %v4099_v27 = vmul.f32 %v9605_v28, %v9042_v41  ;;  %v9091_v8 = vpop.permute.xlu0 %4457 }
0x142c   :  { %4970 = vrot.lane.b32.xlu1 %v4953_v24, %s7147_s17  ;;  %3880 = vrot.lane.b32.xlu0 %v3859_v18, %s7144_s14  ;;  %v9093_v24 = vpop.permute.xlu1 %5025  ;;  %v4716_v18 = vmul.f32 %v8802_v1, %v9032_v56  ;;  %v9606_v1 = vld [vmem:[#allocation5_spill] sm:$0xff] }
0x142d   :  { %v3814_v29 = vmul.f32 %v8762_v6, %v9606_v1 }
0x1430   :  { %4812 = vrot.lane.b32.xlu1 %v4794_v45, %s7143_s4  ;;  %3960 = vrot.lane.b32.xlu0 %v3939_v15, %s7146_s16  ;;  %v3860_v45 = vmul.f32 %v8941_v40, %v9083_v19  ;;  %v3740_v40 = vcombine.high %v8792_v9, %v8792_v9  ;;  %v9608_v9 = vld [vmem:[#allocation42_spill] sm:$0xff] }
0x1434   :  { %4576 = vrot.lane.b32.xlu1 %v4556_v35, %s7144_s14  ;;  %4040 = vrot.lane.b32.xlu0 %v4019_v47, %s7148_s18  ;;  %v3940_v35 = vmul.f32 %v8956_v22, %v9083_v19 }
0x1438   :  { %4656 = vrot.lane.b32.xlu1 %v4636_v37, %s7146_s16  ;;  %4120 = vrot.lane.b32.xlu0 %v4099_v27, %s7143_s4  ;;  %v9607_v37 = vld [vmem:[#allocation41_spill] sm:$0xff] }
0x1439   :  { %v4956_v28 = vmul.f32 %v9607_v37, %v9032_v56 }
0x143c   :  { %4736 = vrot.lane.b32.xlu1 %v4716_v18, %s7148_s18  ;;  %3882 = vrot.lane.b32.xlu0 %v3860_v45, %s7144_s14  ;;  %v9118_v18 = vrot.slane %v3740_v40, %v7533_v50 }
0x143e   :  { %v4111_v15 = vpop.permute.xlu0 %4110  ;;  %v3871_v63 = vpop.permute.xlu1 %3870 }
0x143f   :  { %v3894_v27 = vadd.f32 %v3871_v63, %v3814_v29  ;;  %v4430_v63 = vcombine.high %v8907_v16, %v8907_v16 }
0x1440   :  { %4896 = vrot.lane.b32.xlu1 %v4876_v55, %s7145_s15  ;;  %3962 = vrot.lane.b32.xlu0 %v3940_v35, %s7146_s16  ;;  %v5036_v55 = vmul.f32 %v9608_v9, %v9032_v56  ;;  %v4180_v35 = vmul.f32 %v9026_v36, %v9083_v19 }
0x1442   :  { %v4191_v47 = vpop.permute.xlu0 %4190  ;;  %v3951_v20 = vpop.permute.xlu1 %3950 }
0x1443   :  { %v3974_v22 = vadd.f32 %v3951_v20, %v3894_v27  ;;  %v9609_v20 = vld [vmem:[#allocation7_spill] sm:$0xff]  ;;  %v9137_v27 = vrot.slane %v4430_v63, %v7533_v50  ;;  %v9612_v63 = vld [vmem:[#allocation17_spill] sm:$0xff] }
0x1444   :  { %4976 = vrot.lane.b32.xlu1 %v4956_v28, %s7147_s17  ;;  %4042 = vrot.lane.b32.xlu0 %v4020_v2, %s7148_s18  ;;  %v3857_v37 = vmul.f32 %v9609_v20, %v9118_v18  ;;  %v4260_v28 = vmul.f32 %v8982_v59, %v9083_v19  ;;  %v4340_v59 = vmul.f32 %v9001_v26, %v9083_v19 }
0x1445   :  { %v4017_v20 = vmul.f32 %v9612_v63, %v9118_v18 }
0x1446   :  { %v4271_v6 = vpop.permute.xlu0 %4270  ;;  %v4031_v45 = vpop.permute.xlu1 %4030 }
0x1447   :  { %v4054_v1 = vadd.f32 %v4031_v45, %v3974_v22  ;;  %v9610_v45 = vld [vmem:[#allocation8_spill] sm:$0xff] }
0x1448   :  { %5056 = vrot.lane.b32.xlu1 %v5036_v55, %s7149_s19  ;;  %4202 = vrot.lane.b32.xlu0 %v4180_v35, %s7145_s15  ;;  %v3937_v9 = vmul.f32 %v9610_v45, %v9118_v18  ;;  %v9611_v55 = vld [vmem:[#allocation6_spill] sm:$0xff]  ;;  %v9615_v45 = vld [vmem:[#allocation12_spill] sm:$0xff] }
0x1449   :  { %v4134_v48 = vadd.f32 %v4111_v15, %v4054_v1  ;;  %v4399_v15 = vcombine.high %v8993_v32, %v8993_v32  ;;  %v4504_v35 = vmul.f32 %v8796_v43, %v9611_v55 }
0x144a   :  { %v4351_v29 = vpop.permute.xlu0 %4350  ;;  %v4569_v40 = vpop.permute.xlu1 %4568 }
0x144b   :  { %v4214_v2 = vadd.f32 %v4191_v47, %v4134_v48 }
0x144c   :  { %3876 = vrot.lane.b32.xlu1 %v3857_v37, %s7144_s14  ;;  %4282 = vrot.lane.b32.xlu0 %v4260_v28, %s7147_s17  ;;  %v9613_v37 = vld [vmem:[#allocation11_spill] sm:$0xff] }
0x144d   :  { %v4294_v36 = vadd.f32 %v4271_v6, %v4214_v2  ;;  %v9148_v6 = vrot.slane %v4399_v15, %v7675_v44  ;;  %v4555_v26 = vmul.f32 %v9613_v37, %v9137_v27 }
0x144e   :  { %v4649_v16 = vpop.permute.xlu1 %4648  ;;  %v3873_v22 = vpop.permute.xlu0 %3872 }
0x144f   :  { %v4374_v47 = vadd.f32 %v4351_v29, %v4294_v36  ;;  %v9158_v28 = vrot.slane %v9148_v6, %v7533_v50  ;;  %v9614_v36 = vld [vmem:[#allocation18_spill] sm:$0xff] }
0x1450   :  { %3956 = vrot.lane.b32.xlu1 %v3937_v9, %s7146_s16  ;;  %4362 = vrot.lane.b32.xlu0 %v4340_v59, %s7149_s19  ;;  %v4097_v15 = vmul.f32 %v9614_v36, %v9118_v18  ;;  %v4635_v9 = vmul.f32 %v9615_v45, %v9137_v27 }
0x1451   :  { %v4512_v32 = vadd.f32 %v4504_v35, %v4374_v47  ;;  %v9617_v35 = vld [vmem:[#allocation26_spill] sm:$0xff] }
0x1452   :  { %v4729_v1 = vpop.permute.xlu1 %4728  ;;  %v3953_v48 = vpop.permute.xlu0 %3952 }
0x1453   :  { %v4592_v29 = vadd.f32 %v4569_v40, %v4512_v32  ;;  %v4557_v32 = vmul.f32 %v9617_v35, %v9158_v28  ;;  %v9621_v35 = vld [vmem:[#allocation10_spill] sm:$0xff] }
0x1454   :  { %4036 = vrot.lane.b32.xlu1 %v4017_v20, %s7148_s18  ;;  %4574 = vrot.lane.b32.xlu0 %v4555_v26, %s7144_s14  ;;  %v9618_v26 = vld [vmem:[#allocation20_spill] sm:$0xff] }
0x1455   :  { %v4672_v43 = vadd.f32 %v4649_v16, %v4592_v29  ;;  %v9616_v16 = vld [vmem:[#allocation9_spill] sm:$0xff]  ;;  %v4257_v29 = vmul.f32 %v9618_v26, %v9118_v18  ;;  %v9622_v26 = vld [vmem:[#allocation35_spill] sm:$0xff] }
0x1456   :  { %v4809_v44 = vpop.permute.xlu1 %4808  ;;  %v4033_v2 = vpop.permute.xlu0 %4032  ;;  %v4177_v55 = vmul.f32 %v9616_v16, %v9118_v18 }
0x1457   :  { %v4752_v59 = vadd.f32 %v4729_v1, %v4672_v43  ;;  %v4429_v1 = vcombine.high %v9009_v54, %v9009_v54  ;;  %v9619_v43 = vld [vmem:[#allocation27_spill] sm:$0xff] }
0x1458   :  { %4116 = vrot.lane.b32.xlu1 %v4097_v15, %s7143_s4  ;;  %4654 = vrot.lane.b32.xlu0 %v4635_v9, %s7146_s16  ;;  %v4637_v36 = vmul.f32 %v9619_v43, %v9158_v28  ;;  %v9620_v15 = vld [vmem:[#allocation3_spill] sm:$0xff]  ;;  %v4717_v43 = vmul.f32 %v9622_v26, %v9158_v28 }
0x1459   :  { %v4832_v63 = vadd.f32 %v4809_v44, %v4752_v59  ;;  %v3815_v45 = vmul.f32 %v8810_v52, %v9620_v15  ;;  %v9183_v54 = vrot.slane %v4429_v1, %v7533_v50  ;;  %v9623_v1 = vld [vmem:[#allocation23_spill] sm:$0xff] }
0x145a   :  { %v4889_v40 = vpop.permute.xlu1 %4888  ;;  %v4193_v47 = vpop.permute.xlu0 %4192 }
0x145b   :  { %v4912_v9 = vadd.f32 %v4889_v40, %v4832_v63  ;;  %v3895_v44 = vadd.f32 %v3873_v22, %v3815_v45 }
0x145c   :  { %4196 = vrot.lane.b32.xlu1 %v4177_v55, %s7145_s15  ;;  %4578 = vrot.lane.b32.xlu0 %v4557_v32, %s7144_s14  ;;  %v4337_v32 = vmul.f32 %v9621_v35, %v9118_v18 }
0x145d   :  { %v3975_v58 = vadd.f32 %v3953_v48, %v3895_v44 }
0x145e   :  { %v4969_v20 = vpop.permute.xlu1 %4968  ;;  %v4273_v37 = vpop.permute.xlu0 %4272 }
0x145f   :  { %v4992_v59 = vadd.f32 %v4969_v20, %v4912_v9  ;;  %v4055_v40 = vadd.f32 %v4033_v2, %v3975_v58  ;;  %v4179_v20 = vmul.f32 %v9623_v1, %v9042_v41  ;;  %v9624_v58 = vld [vmem:[#allocation34_spill] sm:$0xff]  ;;  %v4638_v9 = vmul.f32 %v9048_v11, %v9183_v54 }
0x1460   :  { %4276 = vrot.lane.b32.xlu1 %v4257_v29, %s7147_s17  ;;  %4658 = vrot.lane.b32.xlu0 %v4637_v36, %s7146_s16  ;;  %v4558_v29 = vmul.f32 %v9028_v31, %v9183_v54  ;;  %v4259_v2 = vmul.f32 %v9624_v58, %v9042_v41  ;;  %v9625_v31 = vld [vmem:[#allocation31_spill] sm:$0xff]  ;;  %v4100_v1 = vmul.f32 %v8970_v39, %v9083_v19  ;;  %v9628_v58 = vld [vmem:[#allocation21_spill] sm:$0xff] }
0x1462   :  { %v5049_v16 = vpop.permute.xlu1 %5048  ;;  %v4353_v55 = vpop.permute.xlu0 %4352 }
0x1463   :  { %v5072_v52 = vadd.f32 %v5049_v16, %v4992_v59  ;;  %v3816_v59 = vmul.f32 %v8867_v23, %v9625_v31  ;;  %v9626_v16 = vld [vmem:[#allocation4_spill] sm:$0xff] }
0x1464   :  { %4356 = vrot.lane.b32.xlu1 %v4337_v32, %s7149_s19  ;;  %4738 = vrot.lane.b32.xlu0 %v4717_v43, %s7148_s18  ;;  %v4505_v35 = vmul.f32 %v8925_v4, %v9626_v16  ;;  %v3741_v32 = vcombine.high %v9018_v17, %v9018_v17 }
0x1465   :  { %6596 = vmatprep.mubr.msk.f32.mxu0 %vm327_vm3, %v5072_v52  ;;  %v9627_v52 = vld [vmem:[#allocation25_spill] sm:$0xff] }
0x1466   :  { %v4113_v22 = vpop.permute.xlu1 %4112  ;;  %v4115_v63 = vpop.permute.xlu0 %4114  ;;  %v4339_v11 = vmul.f32 %v9627_v52, %v9042_v41  ;;  %v9219_v4 = vrot.slane %v3741_v32, %v7533_v50  ;;  %v9631_v32 = vld [vmem:[#allocation19_spill] sm:$0xff]  ;;  %v9632_v52 = vld [vmem:[#allocation22_spill] sm:$0xff] }
0x1467   :  { %v4135_v36 = vadd.f32 %v4113_v22, %v4055_v40 }
0x1468   :  { %4200 = vrot.lane.b32.xlu1 %v4179_v20, %s7145_s15  ;;  %4580 = vrot.lane.b32.xlu0 %v4558_v29, %s7144_s14  ;;  %v4798_v20 = vmul.f32 %v9062_v30, %v9183_v54  ;;  %v3861_v39 = vmul.f32 %v8875_v60, %v9219_v4  ;;  %v4506_v60 = vmul.f32 %v8946_v38, %v9631_v32 }
0x1469   :  { %v4215_v48 = vadd.f32 %v4193_v47, %v4135_v36  ;;  %v3818_v36 = vmul.f32 %v8921_v42, %v8844_v12  ;;  %v9629_v12 = vld [vmem:[#allocation13_spill] sm:$0xff]  ;;  %v4431_v38 = vcombine.high %v9148_v6, %v9148_v6  ;;  %v9634_v6 = vld [vmem:[#allocation14_spill] sm:$0xff] }
0x146a   :  { %v3875_v15 = vpop.permute.xlu1 %3874  ;;  %v4195_v45 = vpop.permute.xlu0 %4194  ;;  %v4795_v42 = vmul.f32 %v9629_v12, %v9137_v27 }
0x146b   :  { %v4295_v44 = vadd.f32 %v4273_v37, %v4215_v48  ;;  %v4718_v37 = vmul.f32 %v9050_v51, %v9183_v54  ;;  %v3896_v40 = vadd.f32 %v3875_v15, %v3816_v59  ;;  %v9630_v59 = vld [vmem:[#allocation43_spill] sm:$0xff] }
0x146c   :  { %4280 = vrot.lane.b32.xlu1 %v4259_v2, %s7147_s17  ;;  %4660 = vrot.lane.b32.xlu0 %v4638_v9, %s7146_s16  ;;  %v4715_v2 = vmul.f32 %v9628_v58, %v9137_v27  ;;  %v3941_v16 = vmul.f32 %v9630_v59, %v9219_v4  ;;  %v4878_v58 = vmul.f32 %v9078_v61, %v9183_v54 }
0x146d   :  { %v4375_v47 = vadd.f32 %v4353_v55, %v4295_v44 }
0x146e   :  { %v3955_v26 = vpop.permute.xlu1 %3954  ;;  %v4275_v43 = vpop.permute.xlu0 %4274 }
0x146f   :  { %v9214_v22 = vadd.f32 %v4505_v35, %v4375_v47  ;;  %v3976_v23 = vadd.f32 %v3955_v26, %v3896_v40 }
0x1470   :  { %4360 = vrot.lane.b32.xlu1 %v4339_v11, %s7149_s19  ;;  %4740 = vrot.lane.b32.xlu0 %v4718_v37, %s7148_s18  ;;  %v4875_v11 = vmul.f32 %v9632_v52, %v9137_v27  ;;  %v4021_v37 = vmul.f32 %v8804_v57, %v9219_v4  ;;  %v9260_v57 = vrot.slane %v4431_v38, %v7533_v50 }
0x1471   :  { %v4958_v38 = vmul.f32 %v9060_v62, %v9183_v54 }
0x1472   :  { %v4035_v17 = vpop.permute.xlu1 %4034  ;;  %v4355_v55 = vpop.permute.xlu0 %4354 }
0x1473   :  { %v4056_v51 = vadd.f32 %v4035_v17, %v3976_v23 }
0x1474   :  { %4122 = vrot.lane.b32.xlu1 %v4100_v1, %s7143_s4  ;;  %4820 = vrot.lane.b32.xlu0 %v4798_v20, %s7143_s4  ;;  %v4101_v20 = vmul.f32 %v8820_v33, %v9219_v4 }
0x1475   :  { %v4136_v29 = vadd.f32 %v4115_v63, %v4056_v51 }
0x1476   :  { %v9229_v48 = vpop.permute.xlu0 %4570  ;;  %v3879_v15 = vpop.permute.xlu1 %3878 }
0x1477   :  { %v4216_v9 = vadd.f32 %v4195_v45, %v4136_v29  ;;  %v3898_v30 = vadd.f32 %v3879_v15, %v3818_v36  ;;  %v5035_v15 = vmul.f32 %v9634_v6, %v9137_v27 }
0x1478   :  { %4734 = vrot.lane.b32.xlu1 %v4715_v2, %s7148_s18  ;;  %3884 = vrot.lane.b32.xlu0 %v3861_v39, %s7144_s14 }
0x1479   :  { %v4296_v44 = vadd.f32 %v4275_v43, %v4216_v9  ;;  %v9635_v9 = vld [vmem:[#allocation28_spill] sm:$0xff] }
0x147a   :  { %v4651_v63 = vpop.permute.xlu0 %4650  ;;  %v3959_v31 = vpop.permute.xlu1 %3958 }
0x147b   :  { %v4376_v35 = vadd.f32 %v4355_v55, %v4296_v44  ;;  %v3978_v47 = vadd.f32 %v3959_v31, %v3898_v30  ;;  %v9633_v55 = vld [vmem:[#allocation24_spill] sm:$0xff]  ;;  %v4797_v30 = vmul.f32 %v9635_v9, %v9158_v28  ;;  %v4559_v44 = vmul.f32 %v8862_v5, %v9260_v57 }
0x147c   :  { %4814 = vrot.lane.b32.xlu1 %v4795_v42, %s7143_s4  ;;  %3964 = vrot.lane.b32.xlu0 %v3941_v16, %s7146_s16  ;;  %v4955_v1 = vmul.f32 %v9633_v55, %v9137_v27  ;;  %v9636_v42 = vld [vmem:[#allocation29_spill] sm:$0xff]  ;;  %v4639_v16 = vmul.f32 %v8877_v46, %v9260_v57 }
0x147d   :  { %v4514_v45 = vadd.f32 %v4506_v60, %v4376_v35  ;;  %v4877_v59 = vmul.f32 %v9636_v42, %v9158_v28 }
0x147e   :  { %v4573_v26 = vpop.permute.xlu0 %4572  ;;  %v4039_v43 = vpop.permute.xlu1 %4038 }
0x147f   :  { %v4058_v40 = vadd.f32 %v4039_v43, %v3978_v47  ;;  %v4508_v47 = vmul.f32 %v9032_v56, %v8860_v49  ;;  %v9637_v43 = vld [vmem:[#allocation36_spill] sm:$0xff]  ;;  %v4593_v49 = vadd.f32 %v9229_v48, %v9214_v22  ;;  %v5038_v22 = vmul.f32 %v9093_v24, %v9183_v54 }
0x1480   :  { %4894 = vrot.lane.b32.xlu1 %v4875_v11, %s7145_s15  ;;  %4044 = vrot.lane.b32.xlu0 %v4021_v37, %s7148_s18  ;;  %v4957_v52 = vmul.f32 %v9637_v43, %v9158_v28  ;;  %v4719_v11 = vmul.f32 %v8915_v3, %v9260_v57  ;;  %v9638_v37 = vld [vmem:[#allocation30_spill] sm:$0xff]  ;;  %v4594_v62 = vadd.f32 %v4573_v26, %v4514_v45 }
0x1481   :  { %v4341_v45 = vmul.f32 %v8846_v14, %v9219_v4 }
0x1482   :  { %v4653_v23 = vpop.permute.xlu0 %4652  ;;  %v4119_v17 = vpop.permute.xlu1 %4118 }
0x1483   :  { %v4138_v51 = vadd.f32 %v4119_v17, %v4058_v40  ;;  %v5037_v40 = vmul.f32 %v9638_v37, %v9158_v28  ;;  %v4673_v17 = vadd.f32 %v4651_v63, %v4593_v49 }
0x1484   :  { %4974 = vrot.lane.b32.xlu1 %v4955_v1, %s7147_s17  ;;  %4124 = vrot.lane.b32.xlu0 %v4101_v20, %s7143_s4  ;;  %v4181_v20 = vmul.f32 %v8896_v7, %v9219_v4 }
0x1486   :  { %v4733_v29 = vpop.permute.xlu0 %4732  ;;  %v4199_v36 = vpop.permute.xlu1 %4198 }
0x1487   :  { %v4218_v2 = vadd.f32 %v4199_v36, %v4138_v51  ;;  %v9639_v51 = vld [vmem:[#allocation38_spill] sm:$0xff] }
0x1488   :  { %5054 = vrot.lane.b32.xlu1 %v5035_v15, %s7149_s19  ;;  %4900 = vrot.lane.b32.xlu0 %v4878_v58, %s7145_s15  ;;  %v3819_v36 = vmul.f32 %v9042_v41, %v9639_v51  ;;  %v4261_v58 = vmul.f32 %v8834_v34, %v9219_v4 }
0x148a   :  { %v5051_v33 = vpop.permute.xlu0 %5050  ;;  %v4279_v39 = vpop.permute.xlu1 %4278 }
0x148b   :  { %v4298_v31 = vadd.f32 %v4279_v39, %v4218_v2  ;;  %v4674_v2 = vadd.f32 %v4653_v23, %v4594_v62 }
0x148c   :  { %4818 = vrot.lane.b32.xlu1 %v4797_v30, %s7143_s4  ;;  %4582 = vrot.lane.b32.xlu0 %v4559_v44, %s7144_s14 }
0x148d   :  { %v4754_v24 = vadd.f32 %v4733_v29, %v4674_v2 }
0x148e   :  { %v4893_v12 = vpop.permute.xlu0 %4892  ;;  %v4359_v61 = vpop.permute.xlu1 %4358 }
0x148f   :  { %v4378_v35 = vadd.f32 %v4359_v61, %v4298_v31  ;;  %v4799_v61 = vmul.f32 %v8939_v13, %v9260_v57  ;;  %v3820_v13 = vmul.f32 %v9083_v19, %v9076_v25 }
0x1490   :  { %4898 = vrot.lane.b32.xlu1 %v4877_v59, %s7145_s15  ;;  %4662 = vrot.lane.b32.xlu0 %v4639_v16, %s7146_s16 }
0x1491   :  { %v4516_v5 = vadd.f32 %v4508_v47, %v4378_v35  ;;  %v4879_v35 = vmul.f32 %v8898_v21, %v9260_v57 }
0x1492   :  { %v4973_v32 = vpop.permute.xlu0 %4972  ;;  %v4731_v60 = vpop.permute.xlu1 %4730 }
0x1493   :  { %v4753_v3 = vadd.f32 %v4731_v60, %v4673_v17 }
0x1494   :  { %4978 = vrot.lane.b32.xlu1 %v4957_v52, %s7147_s17  ;;  %4742 = vrot.lane.b32.xlu0 %v4719_v11, %s7148_s18 }
0x1496   :  { %v5053_v46 = vpop.permute.xlu0 %5052  ;;  %v4811_v56 = vpop.permute.xlu1 %4810 }
0x1497   :  { %v4833_v48 = vadd.f32 %v4811_v56, %v4753_v3 }
0x1498   :  { %5058 = vrot.lane.b32.xlu1 %v5037_v40, %s7149_s19  ;;  %4980 = vrot.lane.b32.xlu0 %v4958_v38, %s7147_s17 }
0x149a   :  { %v4817_v55 = vpop.permute.xlu0 %4816  ;;  %v4891_v1 = vpop.permute.xlu1 %4890 }
0x149b   :  { %v4913_v63 = vadd.f32 %v4891_v1, %v4833_v48 }
0x149c   :  { %4204 = vrot.lane.b32.xlu1 %v4181_v20, %s7145_s15  ;;  %5060 = vrot.lane.b32.xlu0 %v5038_v22, %s7149_s19 }
0x149e   :  { %v4971_v6 = vpop.permute.xlu1 %4970  ;;  %v3881_v15 = vpop.permute.xlu0 %3880 }
0x149f   :  { %v4993_v7 = vadd.f32 %v4971_v6, %v4913_v63  ;;  %v3899_v39 = vadd.f32 %v3881_v15, %v3819_v36  ;;  %v9640_v63 = vld [vmem:[#allocation15_spill] sm:$0xff] }
0x14a0   :  { %4284 = vrot.lane.b32.xlu1 %v4261_v58, %s7147_s17 }
0x14a1   :  { %v5073_v9 = vadd.f32 %v5051_v33, %v4993_v7 }
0x14a2   :  { %v4813_v30 = vpop.permute.xlu1 %4812  ;;  %v3961_v44 = vpop.permute.xlu0 %3960 }
0x14a3   :  { %v4834_v26 = vadd.f32 %v4813_v30, %v4754_v24  ;;  %v3979_v31 = vadd.f32 %v3961_v44, %v3899_v39  ;;  %6597 = vmatmul.mubr.msk.f32.vlgmr.msra.gmra.mrb[80].mxu0 %vm327_vm3, %v5073_v9 }
0x14a4   :  { %4364 = vrot.lane.b32.xlu1 %v4341_v45, %s7149_s19 }
0x14a5   :  { %v4914_v41 = vadd.f32 %v4893_v12, %v4834_v26 }
0x14a6   :  { %v4577_v34 = vpop.permute.xlu1 %4576  ;;  %v4041_v23 = vpop.permute.xlu0 %4040 }
0x14a7   :  { %v4994_v42 = vadd.f32 %v4973_v32, %v4914_v41  ;;  %v4596_v29 = vadd.f32 %v4577_v34, %v4516_v5  ;;  %v4059_v33 = vadd.f32 %v4041_v23, %v3979_v31  ;;  %v4959_v32 = vmul.f32 %v8917_v53, %v9260_v57  ;;  %v9641_v31 = vld [vmem:[#allocation16_spill] sm:$0xff] }
0x14a8   :  { %4822 = vrot.lane.b32.xlu1 %v4799_v61, %s7143_s4  ;;  %v4507_v41 = vmul.f32 %v9137_v27, %v9641_v31 }
0x14a9   :  { %v5074_v59 = vadd.f32 %v5053_v46, %v4994_v42  ;;  %v5039_v46 = vmul.f32 %v8954_v0, %v9260_v57  ;;  %v3817_v0 = vmul.f32 %v9118_v18, %v9640_v63 }
0x14aa   :  { %v4657_v16 = vpop.permute.xlu1 %4656  ;;  %v4121_v14 = vpop.permute.xlu0 %4120 }
0x14ab   :  { %v4676_v47 = vadd.f32 %v4657_v16, %v4596_v29  ;;  %v4139_v60 = vadd.f32 %v4121_v14, %v4059_v33  ;;  %6599 = vmatprep.mubr.msk.f32.mxu0 %vm327_vm3, %v5074_v59 }
0x14ac   :  { %4902 = vrot.lane.b32.xlu1 %v4879_v35, %s7145_s15  ;;  %v9642_v35 = vld [vmem:[#allocation40_spill] sm:$0xff] }
0x14ae   :  { %v4737_v12 = vpop.permute.xlu1 %4736  ;;  %v3883_v5 = vpop.permute.xlu0 %3882 }
0x14af   :  { %v4756_v43 = vadd.f32 %v4737_v12, %v4676_v47  ;;  %v3900_v52 = vadd.f32 %v3883_v5, %v3820_v13  ;;  %v4509_v47 = vmul.f32 %v9158_v28, %v9642_v35 }
0x14b0   :  { %4982 = vrot.lane.b32.xlu1 %v4959_v32, %s7147_s17 }
0x14b1   :  { %v4836_v11 = vadd.f32 %v4817_v55, %v4756_v43 }
0x14b2   :  { %v4897_v21 = vpop.permute.xlu1 %4896  ;;  %v3963_v49 = vpop.permute.xlu0 %3962 }
0x14b3   :  { %v4916_v56 = vadd.f32 %v4897_v21, %v4836_v11  ;;  %v3980_v37 = vadd.f32 %v3963_v49, %v3900_v52 }
0x14b4   :  { %5062 = vrot.lane.b32.xlu1 %v5039_v46, %s7149_s19  ;;  %v4510_v46 = vmul.f32 %v9183_v54, %v9091_v8  ;;  %v5228_v8 = vld [vmem:[%s9548_s1 + $0xac0] sm:$0xff]  ;;  %v5229_v54 = vld [vmem:[%s9548_s1 + $0xad0] sm:$0xff] }
0x14b6   :  { %v4977_v25 = vpop.permute.xlu1 %4976  ;;  %v4043_v19 = vpop.permute.xlu0 %4042 }
0x14b7   :  { %v4996_v40 = vadd.f32 %v4977_v25, %v4916_v56  ;;  %v4060_v38 = vadd.f32 %v4043_v19, %v3980_v37 }
0x14ba   :  { %v5057_v17 = vpop.permute.xlu1 %5056  ;;  %v4203_v53 = vpop.permute.xlu0 %4202 }
0x14bb   :  { %v9326_v3 = vadd.f32 %v5057_v17, %v4996_v40 }
0x14be   :  { %v3877_v1 = vpop.permute.xlu1 %3876  ;;  %v4283_v20 = vpop.permute.xlu0 %4282 }
0x14bf   :  { %v3897_v6 = vadd.f32 %v3877_v1, %v3817_v0 }
0x14c2   :  { %v3957_v55 = vpop.permute.xlu1 %3956  ;;  %v4363_v22 = vpop.permute.xlu0 %4362 }
0x14c3   :  { %v3977_v15 = vadd.f32 %v3957_v55, %v3897_v6 }
0x14c6   :  { %v4037_v48 = vpop.permute.xlu1 %4036  ;;  %v4575_v62 = vpop.permute.xlu0 %4574 }
0x14c7   :  { %v4057_v7 = vadd.f32 %v4037_v48, %v3977_v15 }
0x14ca   :  { %v4117_v51 = vpop.permute.xlu1 %4116  ;;  %v4655_v36 = vpop.permute.xlu0 %4654 }
0x14cb   :  { %v4137_v39 = vadd.f32 %v4117_v51, %v4057_v7  ;;  %v6892_v51 = vpack.c.bf16 %v5229_v54, %v5228_v8 }
0x14cd   :  { %6893 = vmatprep.subr.bf16.mxu1 %v6892_v51 }
0x14ce   :  { %v4197_v58 = vpop.permute.xlu1 %4196  ;;  %v4579_v2 = vpop.permute.xlu0 %4578  ;;  %6895 = vmatpush3.bf16.msra.mxu1 %v6892_v51 }
0x14cf   :  { %v4217_v30 = vadd.f32 %v4197_v58, %v4137_v39 }
0x14d2   :  { %v4277_v24 = vpop.permute.xlu1 %4276  ;;  %v4659_v9 = vpop.permute.xlu0 %4658 }
0x14d3   :  { %v4297_v44 = vadd.f32 %v4277_v24, %v4217_v30 }
0x14d6   :  { %v4357_v45 = vpop.permute.xlu1 %4356  ;;  %v4739_v26 = vpop.permute.xlu0 %4738 }
0x14d7   :  { %v4377_v34 = vadd.f32 %v4357_v45, %v4297_v44 }
0x14d9   :  { %v4515_v23 = vadd.f32 %v4507_v41, %v4377_v34  ;;  %v3821_v34 = vmul.f32 %v9219_v4, %v8968_v10 }
0x14da   :  { %v4201_v18 = vpop.permute.xlu1 %4200  ;;  %v4581_v61 = vpop.permute.xlu0 %4580 }
0x14db   :  { %v4219_v33 = vadd.f32 %v4201_v18, %v4139_v60  ;;  %v4595_v60 = vadd.f32 %v4575_v62, %v4515_v23 }
0x14dd   :  { %v4675_v19 = vadd.f32 %v4655_v36, %v4595_v60 }
0x14de   :  { %v4281_v42 = vpop.permute.xlu1 %4280  ;;  %v4661_v29 = vpop.permute.xlu0 %4660 }
0x14df   :  { %v4299_v59 = vadd.f32 %v4281_v42, %v4219_v33 }
0x14e2   :  { %v4361_v16 = vpop.permute.xlu1 %4360  ;;  %v4741_v14 = vpop.permute.xlu0 %4740 }
0x14e3   :  { %v4379_v13 = vadd.f32 %v4361_v16, %v4299_v59 }
0x14e5   :  { %v4517_v12 = vadd.f32 %v4509_v47, %v4379_v13 }
0x14e6   :  { %v4123_v5 = vpop.permute.xlu1 %4122  ;;  %v4821_v32 = vpop.permute.xlu0 %4820 }
0x14e7   :  { %v4140_v43 = vadd.f32 %v4123_v5, %v4060_v38 }
0x14e9   :  { %v4220_v52 = vadd.f32 %v4203_v53, %v4140_v43 }
0x14ea   :  { %v4735_v27 = vpop.permute.xlu1 %4734  ;;  %v3885_v11 = vpop.permute.xlu0 %3884 }
0x14eb   :  { %v4300_v21 = vadd.f32 %v4283_v20, %v4220_v52  ;;  %v4755_v17 = vadd.f32 %v4735_v27, %v4675_v19  ;;  %v4597_v20 = vadd.f32 %v4579_v2, %v4517_v12  ;;  %v9643_v12 = vld [vmem:[#allocation44_spill] sm:$0xff] }
0x14ec   :  { %v4511_v5 = vmul.f32 %v9260_v57, %v9643_v12 }
0x14ed   :  { %v4380_v49 = vadd.f32 %v4363_v22, %v4300_v21  ;;  %v4677_v15 = vadd.f32 %v4659_v9, %v4597_v20 }
0x14ee   :  { %v4815_v56 = vpop.permute.xlu1 %4814  ;;  %v3965_v37 = vpop.permute.xlu0 %3964 }
0x14ef   :  { %v4518_v25 = vadd.f32 %v4510_v46, %v4380_v49  ;;  %v4835_v1 = vadd.f32 %v4815_v56, %v4755_v17  ;;  %v4757_v39 = vadd.f32 %v4739_v26, %v4677_v15  ;;  %v5378_v15 = vld [vmem:[%s9548_s1 + $0xb00] sm:$0xff] }
0x14f1   :  { %v4598_v62 = vadd.f32 %v4581_v61, %v4518_v25  ;;  %v3901_v61 = vadd.f32 %v3885_v11, %v3821_v34 }
0x14f2   :  { %v4895_v40 = vpop.permute.xlu1 %4894  ;;  %v4045_v28 = vpop.permute.xlu0 %4044 }
0x14f3   :  { %v4915_v38 = vadd.f32 %v4895_v40, %v4835_v1  ;;  %v4678_v58 = vadd.f32 %v4661_v29, %v4598_v62  ;;  %v3981_v33 = vadd.f32 %v3965_v37, %v3901_v61  ;;  %v5082_v40 = vld [vmem:[%s9550_s2 + $0x26] ss:$0 sm:$0xff] }
0x14f5   :  { %v4758_v24 = vadd.f32 %v4741_v14, %v4678_v58  ;;  %v4061_v16 = vadd.f32 %v4045_v28, %v3981_v33 }
0x14f6   :  { %v4975_v55 = vpop.permute.xlu1 %4974  ;;  %v4125_v48 = vpop.permute.xlu0 %4124 }
0x14f7   :  { %v4995_v53 = vadd.f32 %v4975_v55, %v4915_v38  ;;  %v4838_v41 = vadd.f32 %v4821_v32, %v4758_v24  ;;  %v4141_v35 = vadd.f32 %v4125_v48, %v4061_v16 }
0x14fa   :  { %v5055_v63 = vpop.permute.xlu1 %5054  ;;  %v4901_v0 = vpop.permute.xlu0 %4900 }
0x14fb   :  { %v5075_v22 = vadd.f32 %v5055_v63, %v4995_v53  ;;  %v4918_v9 = vadd.f32 %v4901_v0, %v4838_v41 }
0x14fd   :  { %6600 = vmatmul.mubr.msk.f32.gmra.mrb[82].mxu0 %vm327_vm3, %v5075_v22 }
0x14fe   :  { %v4819_v36 = vpop.permute.xlu1 %4818  ;;  %6602 = vmatprep.mubr.msk.f32.mxu0 %vm327_vm3, %v9326_v3  ;;  %v4583_v6 = vpop.permute.xlu0 %4582 }
0x14ff   :  { %v4837_v30 = vadd.f32 %v4819_v36, %v4757_v39  ;;  %v5376_v36 = vld [vmem:[%s9548_s1 + $0xae0] sm:$0xff] }
0x1502   :  { %v4899_v2 = vpop.permute.xlu1 %4898  ;;  %v4663_v7 = vpop.permute.xlu0 %4662 }
0x1503   :  { %v4917_v31 = vadd.f32 %v4899_v2, %v4837_v30  ;;  %v5379_v2 = vld [vmem:[%s9548_s1 + $0xb10] sm:$0xff] }
0x1506   :  { %v4979_v44 = vpop.permute.xlu1 %4978  ;;  %v4743_v45 = vpop.permute.xlu0 %4742 }
0x1507   :  { %v4997_v23 = vadd.f32 %v4979_v44, %v4917_v31 }
0x150a   :  { %v5059_v18 = vpop.permute.xlu1 %5058  ;;  %v4981_v3 = vpop.permute.xlu0 %4980 }
0x150b   :  { %v5077_v42 = vadd.f32 %v5059_v18, %v4997_v23  ;;  %v4998_v29 = vadd.f32 %v4981_v3, %v4918_v9 }
0x150d   :  { %6603 = vmatmul.mubr.msk.f32.gmra.mrb[84].mxu0 %vm327_vm3, %v5077_v42 }
0x150e   :  { %v4205_v26 = vpop.permute.xlu1 %4204  ;;  %v5061_v59 = vpop.permute.xlu0 %5060 }
0x150f   :  { %v5078_v14 = vadd.f32 %v5061_v59, %v4998_v29  ;;  %v4221_v13 = vadd.f32 %v4205_v26, %v4141_v35  ;;  %v9644_v26 = vmov 0.0   ;;  %v9379_v59 = vld [vmem:[%s9550_s2 + $0x27] ss:$0 sm:$0xff] }
0x1511   :  { %6605 = vmatprep.mubr.msk.f32.mxu0 %vm327_vm3, %v5078_v14 }
0x1512   :  { %v4285_v47 = vpop.permute.xlu1 %4284 }
0x1513   :  { %v4301_v10 = vadd.f32 %v4285_v47, %v4221_v13 }
0x1516   :  { %v4365_v4 = vpop.permute.xlu1 %4364 }
0x1517   :  { %v4381_v32 = vadd.f32 %v4365_v4, %v4301_v10 }
0x1519   :  { %v4519_v43 = vadd.f32 %v4511_v5, %v4381_v32  ;;  %v5527_v5 = vld [vmem:[%s9548_s1 + $0xb28] sm:$0xff]  ;;  %v5529_v32 = vld [vmem:[%s9548_s1 + $0xb38] sm:$0xff] }
0x151a   :  { %v4823_v52 = vpop.permute.xlu1 %4822 }
0x151b   :  { %v4599_v27 = vadd.f32 %v4583_v6, %v4519_v43  ;;  %v5377_v6 = vld [vmem:[%s9548_s1 + $0xaf0] sm:$0xff]  ;;  %v5526_v43 = vld [vmem:[%s9548_s1 + $0xb20] sm:$0xff] }
0x151c   :  { %v6896_v58 = vpack.c.bf16 %v5377_v6, %v5376_v36 }
0x151d   :  { %v4679_v11 = vadd.f32 %v4663_v7, %v4599_v27  ;;  %v6900_v7 = vpack.c.bf16 %v5379_v2, %v5378_v15  ;;  %v5528_v27 = vld [vmem:[%s9548_s1 + $0xb30] sm:$0xff]  ;;  %v5546_v15 = vld [vmem:[%s9548_s1 + $0xbc0] sm:$0xff] }
0x151e   :  { %v4903_v21 = vpop.permute.xlu1 %4902  ;;  %6897 = vmatprep.subr.bf16.mxu0 %v6896_v58 }
0x151f   :  { %v4759_v49 = vadd.f32 %v4743_v45, %v4679_v11  ;;  %6899 = vmatpush3.bf16.msra.mxu0 %v6896_v58  ;;  %v5531_v11 = vld [vmem:[%s9548_s1 + $0xb48] sm:$0xff]  ;;  %v5548_v58 = vld [vmem:[%s9548_s1 + $0xbd0] sm:$0xff] }
0x1520   :  { %6901 = vmatprep.subr.bf16.mxu0 %v6900_v7  ;;  %v6926_v2 = vpack.c.bf16 %v5548_v58, %v5546_v15 }
0x1521   :  { %v4839_v46 = vadd.f32 %v4823_v52, %v4759_v49  ;;  %v6904_v52 = vpack.c.bf16 %v5529_v32, %v5527_v5  ;;  %v6906_v49 = vpack.c.bf16 %v5528_v27, %v5526_v43 }
0x1522   :  { %v4983_v60 = vpop.permute.xlu1 %4982 }
0x1523   :  { %v4919_v56 = vadd.f32 %v4903_v21, %v4839_v46  ;;  %6903 = vmatpush3.bf16.msra.mxu0 %v6900_v7  ;;  %v5533_v21 = vld [vmem:[%s9548_s1 + $0xb58] sm:$0xff]  ;;  %6905 = vmatprep.subr.bf16.mxu1 %v6904_v52 }
0x1524   :  { %v6908_v46 = vpack.c.bf16 %v5533_v21, %v5531_v11 }
0x1525   :  { %v4999_v37 = vadd.f32 %v4983_v60, %v4919_v56  ;;  %v5530_v60 = vld [vmem:[%s9548_s1 + $0xb40] sm:$0xff]  ;;  %v5532_v56 = vld [vmem:[%s9548_s1 + $0xb50] sm:$0xff] }
0x1526   :  { %v5063_v25 = vpop.permute.xlu1 %5062 }
0x1527   :  { %v5079_v19 = vadd.f32 %v5063_v25, %v4999_v37  ;;  %v5535_v37 = vld [vmem:[%s9548_s1 + $0xb68] sm:$0xff]  ;;  %v5537_v25 = vld [vmem:[%s9548_s1 + $0xb78] sm:$0xff] }
0x1529   :  { %6606 = vmatmul.mubr.msk.f32.gmra.mrb[86].mxu0 %vm327_vm3, %v5079_v19  ;;  %v6910_v19 = vpack.c.bf16 %v5532_v56, %v5530_v60 }
0x1576   :  { %v6598_v57 = vpop.f32.mrb[80].mxu0 }
0x1577   :  { %v5179_v28 = vadd.f32 %v6598_v57, %v5082_v40  ;;  %v5173_v17 = vpop.f32.mrb[81].mxu0  ;;  %v5534_v57 = vld [vmem:[%s9548_s1 + $0xb60] sm:$0xff] }
0x1578   :  { %v5174_v1 = vadd.f32 %v5173_v17, %v5082_v40  ;;  %v5539_v17 = vld [vmem:[%s9548_s1 + $0xb88] sm:$0xff] }
0x1579   :  { %v5213_v55 = vmul.f32 0.2, %v5179_v28 }
0x157a   :  { %v5212_v48 = vmul.f32 0.2, %v5174_v1 }
0x157b   :  { %v5221_v53 = vmax.f32 %v5179_v28, %v5213_v55  ;;  %v5536_v28 = vld [vmem:[%s9548_s1 + $0xb70] sm:$0xff] }
0x157c   :  { %v5220_v38 = vmax.f32 %v5174_v1, %v5212_v48  ;;  %v5541_v1 = vld [vmem:[%s9548_s1 + $0xb98] sm:$0xff]  ;;  %v6914_v55 = vpack.c.bf16 %v5536_v28, %v5534_v57 }
0x157d   :  { %v6916_v48 = vpack.c.bf16 %v5541_v1, %v5539_v17 }
0x157e   :  { %6612 = vmatprep.mubr.msk.f32.mxu1 %vm327_vm3, %v5220_v38  ;;  %v5538_v38 = vld [vmem:[%s9548_s1 + $0xb80] sm:$0xff] }
0x157f   :  { %6613 = vmatmul.mubr.msk.f32.vlgmr.msra.gmra.mrb[76].mxu1 %vm327_vm3, %v5221_v53  ;;  %v5540_v53 = vld [vmem:[%s9548_s1 + $0xb90] sm:$0xff] }
0x1580   :  { %6907 = vmatpush1.bf16.msra.mxu1 %v6906_v49 }
0x1581   :  { %6909 = vmatprep.subr.bf16.mxu1 %v6908_v46 }
0x1584   :  { %6911 = vmatpush1.bf16.msra.mxu1 %v6910_v19 }
0x15d0   :  { %v6601_v63 = vpop.f32.mrb[82].mxu0 }
0x15d1   :  { %v5189_v0 = vadd.f32 %v6601_v63, %v5082_v40  ;;  %v5183_v20 = vpop.f32.mrb[83].mxu0  ;;  %v5543_v63 = vld [vmem:[%s9548_s1 + $0xba8] sm:$0xff] }
0x15d2   :  { %v5184_v22 = vadd.f32 %v5183_v20, %v5082_v40  ;;  %v6918_v20 = vpack.c.bf16 %v5540_v53, %v5538_v38 }
0x15d3   :  { %v5215_v8 = vmul.f32 0.2, %v5189_v0 }
0x15d4   :  { %v5214_v54 = vmul.f32 0.2, %v5184_v22 }
0x15d5   :  { %v5223_v51 = vmax.f32 %v5189_v0, %v5215_v8  ;;  %v5545_v0 = vld [vmem:[%s9548_s1 + $0xbb8] sm:$0xff]  ;;  %v5542_v8 = vld [vmem:[%s9548_s1 + $0xba0] sm:$0xff] }
0x15d6   :  { %v5222_v62 = vmax.f32 %v5184_v22, %v5214_v54  ;;  %v6920_v22 = vpack.c.bf16 %v5545_v0, %v5543_v63  ;;  %v5544_v54 = vld [vmem:[%s9548_s1 + $0xbb0] sm:$0xff] }
0x15d7   :  { %v6922_v36 = vpack.c.bf16 %v5544_v54, %v5542_v8 }
0x15d8   :  { %6615 = vmatprep.mubr.msk.f32.mxu1 %vm327_vm3, %v5222_v62  ;;  %v5547_v62 = vld [vmem:[%s9548_s1 + $0xbc8] sm:$0xff] }
0x15d9   :  { %6616 = vmatmul.mubr.msk.f32.gmra.mrb[78].mxu1 %vm327_vm3, %v5223_v51  ;;  %v5549_v51 = vld [vmem:[%s9548_s1 + $0xbd8] sm:$0xff] }
0x15da   :  { %v6924_v6 = vpack.c.bf16 %v5549_v51, %v5547_v62 }
0x15e0   :  { %v6604_v39 = vpop.f32.mrb[84].mxu0 }
0x15e1   :  { %v5199_v24 = vadd.f32 %v6604_v39, %v5082_v40  ;;  %v5193_v30 = vpop.f32.mrb[85].mxu0 }
0x15e2   :  { %v5194_v44 = vadd.f32 %v5193_v30, %v5082_v40 }
0x15e3   :  { %v5217_v45 = vmul.f32 0.2, %v5199_v24 }
0x15e4   :  { %v5216_v31 = vmul.f32 0.2, %v5194_v44 }
0x15e5   :  { %v5225_v34 = vmax.f32 %v5199_v24, %v5217_v45 }
0x15e6   :  { %v5224_v41 = vmax.f32 %v5194_v44, %v5216_v31 }
0x15e8   :  { %6618 = vmatprep.mubr.msk.f32.mxu1 %vm327_vm3, %v5224_v41 }
0x15e9   :  { %6619 = vmatmul.mubr.msk.f32.gmra.mrb[80].mxu1 %vm327_vm3, %v5225_v34  ;;  %v5551_v34 = vld [vmem:[%s9548_s1 + $0xbe8] sm:$0xff] }
0x15fc   :  { %v6607_v23 = vpop.f32.mrb[86].mxu0 }
0x15fd   :  { %v5209_v18 = vadd.f32 %v6607_v23, %v5082_v40  ;;  %v5203_v3 = vpop.f32.mrb[87].mxu0  ;;  %v5553_v23 = vld [vmem:[%s9548_s1 + $0xbf8] sm:$0xff] }
0x15fe   :  { %v5204_v61 = vadd.f32 %v5203_v3, %v5082_v40  ;;  %v6912_v40 = vpack.c.bf16 %v5537_v25, %v5535_v37  ;;  %v5550_v3 = vld [vmem:[%s9548_s1 + $0xbe0] sm:$0xff]  ;;  %v5380_v37 = vld [vmem:[%s9550_s2 + $0x30] ss:$0 sm:$0xff] }
0x15ff   :  { %v5219_v9 = vmul.f32 0.2, %v5209_v18 }
0x1600   :  { %v5218_v42 = vmul.f32 0.2, %v5204_v61  ;;  %6913 = vmatprep.subr.bf16.mxu1 %v6912_v40 }
0x1601   :  { %v5227_v29 = vmax.f32 %v5209_v18, %v5219_v9  ;;  %6915 = vmatpush1.bf16.msra.mxu1 %v6914_v55  ;;  %v6928_v18 = vpack.c.bf16 %v5553_v23, %v5551_v34  ;;  %v5555_v9 = vld [vmem:[%s9548_s1 + $0xc08] sm:$0xff]  ;;  %v9645_v23 = vld [vmem:[#allocation2_spill] sm:$0xff] }
0x1602   :  { %v5226_v33 = vmax.f32 %v5204_v61, %v5218_v42  ;;  %6917 = vmatprep.subr.bf16.mxu1 %v6916_v48  ;;  %v5552_v61 = vld [vmem:[%s9548_s1 + $0xbf0] sm:$0xff] }
0x1603   :  { %v6930_v42 = vpack.c.bf16 %v5552_v61, %v5550_v3 }
0x1604   :  { %6621 = vmatprep.mubr.msk.f32.mxu1 %vm327_vm3, %v5226_v33  ;;  %v5557_v33 = vld [vmem:[%s9548_s1 + $0xc18] sm:$0xff] }
0x1605   :  { %6622 = vmatmul.mubr.msk.f32.gmra.mrb[82].mxu1 %vm327_vm3, %v5227_v29  ;;  %v5554_v29 = vld [vmem:[%s9548_s1 + $0xc00] sm:$0xff] }
0x1606   :  { %5635 = vmatprep.mubr.f32.mxu1 %v9644_v26  ;;  %6919 = vmatpush1.bf16.msra.mxu1 %v6918_v20 }
0x1607   :  { %6921 = vmatprep.subr.bf16.mxu1 %v6920_v22 }
0x160a   :  { %6923 = vmatpush1.bf16.msra.mxu1 %v6922_v36 }
0x160b   :  { %6925 = vmatprep.subr.bf16.mxu1 %v6924_v6 }
0x160e   :  { %6927 = vmatpush1.bf16.msra.mxu1 %v6926_v2 }
0x160f   :  { %6929 = vmatprep.subr.bf16.mxu1 %v6928_v18 }
0x1612   :  { %6931 = vmatpush1.bf16.msra.mxu1 %v6930_v42 }
0x1652   :  { %v6614_v16 = vpop.f32.mrb[76].mxu1 }
0x1653   :  { %v5327_v14 = vadd.f32 %v6614_v16, %v9379_v59  ;;  %v5321_v35 = vpop.f32.mrb[77].mxu1  ;;  %v5556_v16 = vld [vmem:[%s9548_s1 + $0xc10] sm:$0xff] }
0x1654   :  { %v5322_v47 = vadd.f32 %v5321_v35, %v9379_v59  ;;  %v6934_v35 = vpack.c.bf16 %v5556_v16, %v5554_v29 }
0x1655   :  { %v5361_v13 = vmul.f32 0.2, %v5327_v14 }
0x1656   :  { %v5360_v10 = vmul.f32 0.2, %v5322_v47 }
0x1657   :  { %v5369_v12 = vmax.f32 %v5327_v14, %v5361_v13  ;;  %v6932_v14 = vpack.c.bf16 %v5557_v33, %v5555_v9 }
0x1658   :  { %v5368_v4 = vmax.f32 %v5322_v47, %v5360_v10 }
0x1659   :  { %6933 = vmatprep.subr.bf16.mxu1 %v6932_v14 }
0x165a   :  { %6632 = vmatprep.mubr.msk.f32.mxu0 %vm626_vm4, %v5368_v4  ;;  %6935 = vmatpush1.bf16.msra.mxu1 %v6934_v35 }
0x165b   :  { %6633 = vmatmul.mubr.msk.f32.vlgmr.msra.gmra.mrb[88].mxu0 %vm626_vm4, %v5369_v12 }
0x16ac   :  { %v6617_v7 = vpop.f32.mrb[78].mxu1 }
0x16ad   :  { %v5337_v39 = vadd.f32 %v6617_v7, %v9379_v59  ;;  %v5331_v24 = vpop.f32.mrb[79].mxu1 }
0x16ae   :  { %v5332_v30 = vadd.f32 %v5331_v24, %v9379_v59 }
0x16af   :  { %v5363_v44 = vmul.f32 0.2, %v5337_v39 }
0x16b0   :  { %v5362_v45 = vmul.f32 0.2, %v5332_v30 }
0x16b1   :  { %v5371_v41 = vmax.f32 %v5337_v39, %v5363_v44 }
0x16b2   :  { %v5370_v31 = vmax.f32 %v5332_v30, %v5362_v45 }
0x16b4   :  { %6635 = vmatprep.mubr.msk.f32.mxu0 %vm626_vm4, %v5370_v31 }
0x16b5   :  { %6636 = vmatmul.mubr.msk.f32.gmra.mrb[90].mxu0 %vm626_vm4, %v5371_v41  ;;  %v5999_v41 = vld [vmem:[%s9550_s2 + $0x31] ss:$8 sm:$0x3] }
0x16b6   :  { %v9507_v34 = vrot.slane %v5999_v41, %v7533_v50  ;;  %v9510_v18 = vrot.slane %v5999_v41, %v9645_v23 }
0x16bc   :  { %v6620_v47 = vpop.f32.mrb[80].mxu1 }
0x16bd   :  { %v5347_v13 = vadd.f32 %v6620_v47, %v9379_v59  ;;  %v5341_v10 = vpop.f32.mrb[81].mxu1 }
0x16be   :  { %v5342_v4 = vadd.f32 %v5341_v10, %v9379_v59 }
0x16bf   :  { %v5365_v12 = vmul.f32 0.2, %v5347_v13 }
0x16c0   :  { %v5364_v5 = vmul.f32 0.2, %v5342_v4 }
0x16c1   :  { %v5373_v43 = vmax.f32 %v5347_v13, %v5365_v12 }
0x16c2   :  { %v5372_v32 = vmax.f32 %v5342_v4, %v5364_v5 }
0x16c4   :  { %6638 = vmatprep.mubr.msk.f32.mxu0 %vm626_vm4, %v5372_v32 }
0x16c5   :  { %6639 = vmatmul.mubr.msk.f32.gmra.mrb[92].mxu0 %vm626_vm4, %v5373_v43 }
0x16d8   :  { %v6623_v52 = vpop.f32.mrb[82].mxu1 }
0x16d9   :  { %v5357_v27 = vadd.f32 %v6623_v52, %v9379_v59  ;;  %v5351_v11 = vpop.f32.mrb[83].mxu1 }
0x16da   :  { %v5352_v21 = vadd.f32 %v5351_v11, %v9379_v59 }
0x16db   :  { %v5367_v49 = vmul.f32 0.2, %v5357_v27 }
0x16dc   :  { %v5366_v46 = vmul.f32 0.2, %v5352_v21 }
0x16dd   :  { %v5375_v56 = vmax.f32 %v5357_v27, %v5367_v49 }
0x16de   :  { %v5374_v60 = vmax.f32 %v5352_v21, %v5366_v46 }
0x16e0   :  { %6641 = vmatprep.mubr.msk.f32.mxu0 %vm626_vm4, %v5374_v60 }
0x16e1   :  { %6642 = vmatmul.mubr.msk.f32.gmra.mrb[94].mxu0 %vm626_vm4, %v5375_v56 }
0x172e   :  { %v6634_v25 = vpop.f32.mrb[88].mxu0 }
0x172f   :  { %v5471_v19 = vpop.f32.mrb[89].mxu0  ;;  %v5477_v40 = vadd.f32 %v6634_v25, %v5380_v37 }
0x1730   :  { %v5472_v57 = vadd.f32 %v5471_v19, %v5380_v37 }
0x1731   :  { %v5511_v17 = vmul.f32 0.2, %v5477_v40 }
0x1732   :  { %v5510_v28 = vmul.f32 0.2, %v5472_v57 }
0x1733   :  { %v5519_v59 = vmax.f32 %v5477_v40, %v5511_v17 }
0x1734   :  { %v5518_v1 = vmax.f32 %v5472_v57, %v5510_v28 }
0x1736   :  { %5636 = vmatmul.mubr.f32.vlgmr.msra.gmra.mrb[84].mxu1 %v5518_v1 }
0x1737   :  { %5641 = vmatprep.mubr.f32.mxu1 %v9644_v26 }
0x173a   :  { %5642 = vmatmul.mubr.f32.gmra.mrb[86].mxu1 %v5519_v59 }
0x173b   :  { %5647 = vmatprep.mubr.f32.mxu1 %v9644_v26 }
0x1788   :  { %v6637_v55 = vpop.f32.mrb[90].mxu0 }
0x1789   :  { %v5481_v48 = vpop.f32.mrb[91].mxu0  ;;  %v5487_v38 = vadd.f32 %v6637_v55, %v5380_v37 }
0x178a   :  { %v5482_v53 = vadd.f32 %v5481_v48, %v5380_v37 }
0x178b   :  { %v5513_v0 = vmul.f32 0.2, %v5487_v38 }
0x178c   :  { %v5512_v63 = vmul.f32 0.2, %v5482_v53 }
0x178d   :  { %v5521_v22 = vmax.f32 %v5487_v38, %v5513_v0 }
0x178e   :  { %v5520_v20 = vmax.f32 %v5482_v53, %v5512_v63 }
0x1790   :  { %5648 = vmatmul.mubr.f32.gmra.mrb[88].mxu1 %v5520_v20 }
0x1791   :  { %5653 = vmatprep.mubr.f32.mxu1 %v9644_v26 }
0x1794   :  { %5654 = vmatmul.mubr.f32.gmra.mrb[90].mxu1 %v5521_v22 }
0x1795   :  { %5659 = vmatprep.mubr.f32.mxu1 %v9644_v26 }
0x1798   :  { %v6640_v8 = vpop.f32.mrb[92].mxu0 }
0x1799   :  { %v5491_v54 = vpop.f32.mrb[93].mxu0  ;;  %v5497_v62 = vadd.f32 %v6640_v8, %v5380_v37 }
0x179a   :  { %v5492_v51 = vadd.f32 %v5491_v54, %v5380_v37 }
0x179b   :  { %v5515_v6 = vmul.f32 0.2, %v5497_v62 }
0x179c   :  { %v5514_v36 = vmul.f32 0.2, %v5492_v51 }
0x179d   :  { %v5523_v58 = vmax.f32 %v5497_v62, %v5515_v6 }
0x179e   :  { %v5522_v15 = vmax.f32 %v5492_v51, %v5514_v36 }
0x17a0   :  { %5660 = vmatmul.mubr.f32.gmra.mrb[92].mxu1 %v5522_v15 }
0x17a1   :  { %5665 = vmatprep.mubr.f32.mxu1 %v9644_v26 }
0x17a4   :  { %5666 = vmatmul.mubr.f32.gmra.mrb[94].mxu1 %v5523_v58 }
0x17a5   :  { %5671 = vmatprep.mubr.f32.mxu1 %v9644_v26 }
0x17b4   :  { %v6643_v2 = vpop.f32.mrb[94].mxu0 }
0x17b5   :  { %v5501_v7 = vpop.f32.mrb[95].mxu0  ;;  %v5507_v39 = vadd.f32 %v6643_v2, %v5380_v37 }
0x17b6   :  { %v5502_v24 = vadd.f32 %v5501_v7, %v5380_v37 }
0x17b7   :  { %v5517_v44 = vmul.f32 0.2, %v5507_v39 }
0x17b8   :  { %v5516_v30 = vmul.f32 0.2, %v5502_v24 }
0x17b9   :  { %v5525_v31 = vmax.f32 %v5507_v39, %v5517_v44 }
0x17ba   :  { %v5524_v45 = vmax.f32 %v5502_v24, %v5516_v30 }
0x17bc   :  { %5672 = vmatmul.mubr.f32.gmra.mrb[96].mxu1 %v5524_v45 }
0x17bd   :  { %5677 = vmatprep.mubr.f32.mxu1 %v9644_v26 }
0x17c0   :  { %5678 = vmatmul.mubr.f32.gmra.mrb[98].mxu1 %v5525_v31 }
0x1809   :  { %v5637_v3 = vpop.f32.mrb[84].mxu1 }
0x180a   :  { %v5638_v61 = vadd.f32 %v5637_v3, %v9507_v34  ;;  %v5639_v9 = vpop.f32.mrb[85].mxu1 }
0x180b   :  { %v5640_v42 = vadd.f32 %v5639_v9, %v9510_v18 }
0x180c   :  { %v5684_v33 = vmul.f32 0.2, %v5638_v61 }
0x180d   :  { %v5685_v26 = vmul.f32 0.2, %v5640_v42  ;;  %v5643_v29 = vpop.f32.mrb[86].mxu1 }
0x180e   :  { %v5700_v16 = vmax.f32 %v5638_v61, %v5684_v33  ;;  %v5644_v14 = vadd.f32 %v5643_v29, %v9507_v34  ;;  %v5645_v35 = vpop.f32.mrb[87].mxu1 }
0x180f   :  { %v5701_v47 = vmax.f32 %v5640_v42, %v5685_v26  ;;  %v5646_v50 = vadd.f32 %v5645_v35, %v9510_v18 }
0x1810   :  { %v5716_v13 = vrot.slane %v5700_v16, 4  ;;  %v5686_v10 = vmul.f32 0.2, %v5644_v14 }
0x1811   :  { %v5722_v4 = vrot.slane %v5701_v47, 4  ;;  %v5687_v12 = vmul.f32 0.2, %v5646_v50 }
0x1812   :  { %v5717_v5 = vmax.f32 %v5700_v16, %v5716_v13  ;;  %v5702_v32 = vmax.f32 %v5644_v14, %v5686_v10 }
0x1813   :  { %v5723_v43 = vmax.f32 %v5701_v47, %v5722_v4  ;;  %v5703_v52 = vmax.f32 %v5646_v50, %v5687_v12 }
0x1814   :  { %v5718_v27 = vrot.slane %v5717_v5, 2  ;;  %v5728_v11 = vrot.slane %v5702_v32, 4 }
0x1815   :  { %v5724_v21 = vrot.slane %v5723_v43, 2  ;;  %v5734_v49 = vrot.slane %v5703_v52, 4 }
0x1816   :  { %v5719_v46 = vmax.f32 %v5717_v5, %v5718_v27  ;;  %v5729_v60 = vmax.f32 %v5702_v32, %v5728_v11 }
0x1817   :  { %v5725_v56 = vmax.f32 %v5723_v43, %v5724_v21  ;;  %v5735_v37 = vmax.f32 %v5703_v52, %v5734_v49 }
0x1818   :  { %v5730_v25 = vrot.slane %v5729_v60, 2  ;;  %v5720_v40 = vrot.slane %v5719_v46, 1 }
0x1819   :  { %v5736_v19 = vrot.slane %v5735_v37, 2  ;;  %v5726_v28 = vrot.slane %v5725_v56, 1 }
0x181a   :  { %v5731_v57 = vmax.f32 %v5729_v60, %v5730_v25  ;;  %v5721_v55 = vmax.f32 %v5719_v46, %v5720_v40 }
0x181b   :  { %v5737_v17 = vmax.f32 %v5735_v37, %v5736_v19  ;;  %v5727_v38 = vmax.f32 %v5725_v56, %v5726_v28 }
0x181c   :  { %v5732_v1 = vrot.slane %v5731_v57, 1 }
0x181d   :  { %v5738_v59 = vrot.slane %v5737_v17, 1 }
0x181e   :  { %v5733_v48 = vmax.f32 %v5731_v57, %v5732_v1 }
0x181f   :  { %v5739_v53 = vmax.f32 %v5737_v17, %v5738_v59 }
0x1820   :  { %v5828_v63 = vsel %vm1107_vm5, %v5733_v48, %v5721_v55 }
0x1821   :  { %v5835_v0 = vsel %vm1107_vm5, %v5739_v53, %v5727_v38 }
0x1863   :  { %v5649_v20 = vpop.f32.mrb[88].mxu1 }
0x1864   :  { %v5650_v22 = vadd.f32 %v5649_v20, %v9507_v34  ;;  %v5651_v8 = vpop.f32.mrb[89].mxu1 }
0x1865   :  { %v5652_v54 = vadd.f32 %v5651_v8, %v9510_v18 }
0x1866   :  { %v5688_v62 = vmul.f32 0.2, %v5650_v22 }
0x1867   :  { %v5689_v51 = vmul.f32 0.2, %v5652_v54  ;;  %v5655_v36 = vpop.f32.mrb[90].mxu1 }
0x1868   :  { %v5704_v6 = vmax.f32 %v5650_v22, %v5688_v62  ;;  %v5656_v15 = vadd.f32 %v5655_v36, %v9507_v34  ;;  %v5657_v58 = vpop.f32.mrb[91].mxu1 }
0x1869   :  { %v5705_v2 = vmax.f32 %v5652_v54, %v5689_v51  ;;  %v5658_v7 = vadd.f32 %v5657_v58, %v9510_v18 }
0x186a   :  { %v5740_v39 = vrot.slane %v5704_v6, 4  ;;  %v5690_v24 = vmul.f32 0.2, %v5656_v15 }
0x186b   :  { %v5746_v30 = vrot.slane %v5705_v2, 4  ;;  %v5691_v44 = vmul.f32 0.2, %v5658_v7 }
0x186c   :  { %v5741_v45 = vmax.f32 %v5704_v6, %v5740_v39  ;;  %v5706_v31 = vmax.f32 %v5656_v15, %v5690_v24 }
0x186d   :  { %v5747_v41 = vmax.f32 %v5705_v2, %v5746_v30  ;;  %v5707_v23 = vmax.f32 %v5658_v7, %v5691_v44 }
0x186e   :  { %v5742_v3 = vrot.slane %v5741_v45, 2  ;;  %v5752_v61 = vrot.slane %v5706_v31, 4 }
0x186f   :  { %v5748_v9 = vrot.slane %v5747_v41, 2  ;;  %v5758_v42 = vrot.slane %v5707_v23, 4 }
0x1870   :  { %v5743_v33 = vmax.f32 %v5741_v45, %v5742_v3  ;;  %v5753_v26 = vmax.f32 %v5706_v31, %v5752_v61 }
0x1871   :  { %v5749_v29 = vmax.f32 %v5747_v41, %v5748_v9  ;;  %v5759_v16 = vmax.f32 %v5707_v23, %v5758_v42 }
0x1872   :  { %v5744_v14 = vrot.slane %v5743_v33, 1  ;;  %v5754_v35 = vrot.slane %v5753_v26, 2 }
0x1873   :  { %v5750_v47 = vrot.slane %v5749_v29, 1  ;;  %v5760_v50 = vrot.slane %v5759_v16, 2  ;;  %v5661_v13 = vpop.f32.mrb[92].mxu1 }
0x1874   :  { %v5745_v10 = vmax.f32 %v5743_v33, %v5744_v14  ;;  %v5755_v4 = vmax.f32 %v5753_v26, %v5754_v35  ;;  %v5662_v12 = vadd.f32 %v5661_v13, %v9507_v34  ;;  %v5663_v5 = vpop.f32.mrb[93].mxu1 }
0x1875   :  { %v5751_v32 = vmax.f32 %v5749_v29, %v5750_v47  ;;  %v5761_v43 = vmax.f32 %v5759_v16, %v5760_v50  ;;  %v5664_v52 = vadd.f32 %v5663_v5, %v9510_v18 }
0x1876   :  { %v5829_v27 = vsel %vm1109_vm6, %v5745_v10, %v5828_v63  ;;  %v5756_v11 = vrot.slane %v5755_v4, 1  ;;  %v5692_v21 = vmul.f32 0.2, %v5662_v12 }
0x1877   :  { %v5836_v49 = vsel %vm1109_vm6, %v5751_v32, %v5835_v0  ;;  %v5762_v46 = vrot.slane %v5761_v43, 1  ;;  %v5693_v60 = vmul.f32 0.2, %v5664_v52  ;;  %v5667_v56 = vpop.f32.mrb[94].mxu1 }
0x1878   :  { %v5757_v37 = vmax.f32 %v5755_v4, %v5756_v11  ;;  %v5708_v25 = vmax.f32 %v5662_v12, %v5692_v21  ;;  %v5668_v19 = vadd.f32 %v5667_v56, %v9507_v34  ;;  %v5669_v40 = vpop.f32.mrb[95].mxu1 }
0x1879   :  { %v5763_v57 = vmax.f32 %v5761_v43, %v5762_v46  ;;  %v5709_v28 = vmax.f32 %v5664_v52, %v5693_v60  ;;  %v5670_v17 = vadd.f32 %v5669_v40, %v9510_v18 }
0x187a   :  { %v5830_v1 = vsel %vm1111_vm7, %v5757_v37, %v5829_v27  ;;  %v5764_v59 = vrot.slane %v5708_v25, 4  ;;  %v5694_v55 = vmul.f32 0.2, %v5668_v19 }
0x187b   :  { %v5837_v48 = vsel %vm1111_vm7, %v5763_v57, %v5836_v49  ;;  %v5770_v38 = vrot.slane %v5709_v28, 4  ;;  %v5695_v53 = vmul.f32 0.2, %v5670_v17 }
0x187c   :  { %v5765_v63 = vmax.f32 %v5708_v25, %v5764_v59  ;;  %v5710_v0 = vmax.f32 %v5668_v19, %v5694_v55 }
0x187d   :  { %v5771_v20 = vmax.f32 %v5709_v28, %v5770_v38  ;;  %v5711_v22 = vmax.f32 %v5670_v17, %v5695_v53 }
0x187e   :  { %v5766_v8 = vrot.slane %v5765_v63, 2  ;;  %v5776_v54 = vrot.slane %v5710_v0, 4 }
0x187f   :  { %v5772_v62 = vrot.slane %v5771_v20, 2  ;;  %v5782_v51 = vrot.slane %v5711_v22, 4 }
0x1880   :  { %v5767_v36 = vmax.f32 %v5765_v63, %v5766_v8  ;;  %v5777_v6 = vmax.f32 %v5710_v0, %v5776_v54 }
0x1881   :  { %v5773_v15 = vmax.f32 %v5771_v20, %v5772_v62  ;;  %v5783_v58 = vmax.f32 %v5711_v22, %v5782_v51 }
0x1882   :  { %v5768_v2 = vrot.slane %v5767_v36, 1  ;;  %v5778_v7 = vrot.slane %v5777_v6, 2 }
0x1883   :  { %v5774_v39 = vrot.slane %v5773_v15, 1  ;;  %v5784_v24 = vrot.slane %v5783_v58, 2 }
0x1884   :  { %v5769_v30 = vmax.f32 %v5767_v36, %v5768_v2  ;;  %v5779_v44 = vmax.f32 %v5777_v6, %v5778_v7 }
0x1885   :  { %v5775_v45 = vmax.f32 %v5773_v15, %v5774_v39  ;;  %v5785_v31 = vmax.f32 %v5783_v58, %v5784_v24 }
0x1886   :  { %v5831_v41 = vsel %vm1113_vm8, %v5769_v30, %v5830_v1  ;;  %v5780_v23 = vrot.slane %v5779_v44, 1 }
0x1887   :  { %v5838_v3 = vsel %vm1113_vm8, %v5775_v45, %v5837_v48  ;;  %v5786_v61 = vrot.slane %v5785_v31, 1 }
0x1888   :  { %v5781_v9 = vmax.f32 %v5779_v44, %v5780_v23 }
0x1889   :  { %v5787_v42 = vmax.f32 %v5785_v31, %v5786_v61 }
0x188a   :  { %v5832_v33 = vsel %vm1115_vm9, %v5781_v9, %v5831_v41 }
0x188b   :  { %v5839_v26 = vsel %vm1115_vm9, %v5787_v42, %v5838_v3 }
0x188f   :  { %v5673_v29 = vpop.f32.mrb[96].mxu1 }
0x1890   :  { %v5674_v16 = vadd.f32 %v5673_v29, %v9507_v34  ;;  %v5675_v14 = vpop.f32.mrb[97].mxu1 }
0x1891   :  { %v5676_v35 = vadd.f32 %v5675_v14, %v9510_v18 }
0x1892   :  { %v5696_v47 = vmul.f32 0.2, %v5674_v16 }
0x1893   :  { %v5697_v50 = vmul.f32 0.2, %v5676_v35  ;;  %v5679_v13 = vpop.f32.mrb[98].mxu1 }
0x1894   :  { %v5712_v10 = vmax.f32 %v5674_v16, %v5696_v47  ;;  %v5680_v4 = vadd.f32 %v5679_v13, %v9507_v34  ;;  %v5681_v12 = vpop.f32.mrb[99].mxu1 }
0x1895   :  { %v5713_v5 = vmax.f32 %v5676_v35, %v5697_v50  ;;  %v5682_v32 = vadd.f32 %v5681_v12, %v9510_v18 }
0x1896   :  { %v5788_v43 = vrot.slane %v5712_v10, 4  ;;  %v5698_v52 = vmul.f32 0.2, %v5680_v4 }
0x1897   :  { %v5794_v27 = vrot.slane %v5713_v5, 4  ;;  %v5699_v11 = vmul.f32 0.2, %v5682_v32 }
0x1898   :  { %v5789_v21 = vmax.f32 %v5712_v10, %v5788_v43  ;;  %v5714_v49 = vmax.f32 %v5680_v4, %v5698_v52 }
0x1899   :  { %v5795_v46 = vmax.f32 %v5713_v5, %v5794_v27  ;;  %v5715_v60 = vmax.f32 %v5682_v32, %v5699_v11 }
0x189a   :  { %v5790_v56 = vrot.slane %v5789_v21, 2  ;;  %v5800_v37 = vrot.slane %v5714_v49, 4 }
0x189b   :  { %v5796_v25 = vrot.slane %v5795_v46, 2  ;;  %v5806_v19 = vrot.slane %v5715_v60, 4 }
0x189c   :  { %v5791_v40 = vmax.f32 %v5789_v21, %v5790_v56  ;;  %v5801_v57 = vmax.f32 %v5714_v49, %v5800_v37 }
0x189d   :  { %v5797_v28 = vmax.f32 %v5795_v46, %v5796_v25  ;;  %v5807_v34 = vmax.f32 %v5715_v60, %v5806_v19 }
0x189e   :  { %v5792_v17 = vrot.slane %v5791_v40, 1  ;;  %v5802_v1 = vrot.slane %v5801_v57, 2 }
0x189f   :  { %v5798_v59 = vrot.slane %v5797_v28, 1  ;;  %v5808_v18 = vrot.slane %v5807_v34, 2 }
0x18a0   :  { %v5793_v55 = vmax.f32 %v5791_v40, %v5792_v17  ;;  %v5803_v48 = vmax.f32 %v5801_v57, %v5802_v1 }
0x18a1   :  { %v5799_v38 = vmax.f32 %v5797_v28, %v5798_v59  ;;  %v5809_v53 = vmax.f32 %v5807_v34, %v5808_v18 }
0x18a2   :  { %v5833_v63 = vsel %vm1117_vm10, %v5793_v55, %v5832_v33  ;;  %v5804_v0 = vrot.slane %v5803_v48, 1 }
0x18a3   :  { %v5840_v20 = vsel %vm1117_vm10, %v5799_v38, %v5839_v26  ;;  %v5810_v22 = vrot.slane %v5809_v53, 1 }
0x18a4   :  { %v5805_v8 = vmax.f32 %v5803_v48, %v5804_v0 }
0x18a5   :  { %v5811_v54 = vmax.f32 %v5809_v53, %v5810_v22 }
0x18a6   :  { %v5834_v62 = vsel %vm1119_vm11, %v5805_v8, %v5833_v63 }
0x18a7   :  { %5844 = vst [vmem:[%s9552_s3] sm:$0xff] %v5834_v62  ;;  %v5841_v51 = vsel %vm1119_vm11, %v5811_v54, %v5840_v20 }
0x18a8   :  { %5845 = vst [vmem:[%s9552_s3 + $0x8] sm:$0xff] %v5841_v51 }

</bundles_post_ra>
